<compile_context>
chip_gen: v7x
topology: tpu7x:2x2x1
jax: 0.10.0
libtpu: 0.0.40
codegen_flags: <defaults>
</compile_context>

<pallas_src>
import functools

import jax
import jax.numpy as jnp
from jax import lax
from jax.experimental import pallas as pl
from jax.experimental.pallas import tpu as pltpu

# ----------------------------- model config ---------------------------------
D_MODEL = 32
N_LAYER = 2
EXPAND = 2
D_INNER = EXPAND * D_MODEL            # 64
D_STATE = 16
D_CONV = 4
DT_RANK = max(1, -(-D_MODEL // 16))   # ceil(d_model / 16) = 2
EPS = 1e-5

BATCH = 2
SEQLEN = 8


# ----------------------------- Pallas kernel ---------------------------------
def _layer_norm(x, w, b, eps):
    mu = jnp.mean(x, axis=-1, keepdims=True)
    var = jnp.mean(jnp.square(x - mu), axis=-1, keepdims=True)
    return (x - mu) * lax.rsqrt(var + eps) * w + b


def _fused_mamba_kernel(x_ref,
                        ln_w_ref, ln_b_ref,
                        in_wx_ref, in_wz_ref,
                        conv_w_ref, conv_b_ref,
                        bproj_ref, cproj_ref,
                        dtproj_ref, dt_b_ref,
                        a_neg_ref, d_ref, out_w_ref,
                        nf_w_ref, nf_b_ref,
                        out_ref,
                        *, n_layer, seqlen, d_inner, d_state, d_conv, eps):
    """Full MixerModel forward for ONE batch element, all layers fused."""
    hidden = x_ref[0]                                      # (L, D_MODEL)
    residual = hidden                                      # residual==None case
    row = lax.broadcasted_iota(jnp.int32, (seqlen, 1), 0)  # (L, 1) row index

    for l in range(n_layer):                               # static: N_LAYER = 2
        # ---- residual add + pre-norm LayerNorm ----
        residual = hidden if l == 0 else hidden + residual
        xn = _layer_norm(residual, ln_w_ref[l], ln_b_ref[l], eps)

        # ---- in_proj, pre-split into x / z halves (two clean dots) ----
        x = jnp.dot(xn, in_wx_ref[l], preferred_element_type=jnp.float32)  # (L, d_inner)
        z = jnp.dot(xn, in_wz_ref[l], preferred_element_type=jnp.float32)  # (L, d_inner)

        # ---- causal depthwise conv1d + SiLU ----
        # NOTE: pad+concat kept (spans <2 vregs at L=8); a masked sublane roll
        # would avoid the relayout if SEQLEN ever grows.
        conv_w = conv_w_ref[l]                             # (d_conv, d_inner)
        pad = jnp.zeros((d_conv - 1, d_inner), dtype=jnp.float32)
        xp = jnp.concatenate([pad, x], axis=0)             # (L + d_conv - 1, d_inner)
        xc = conv_b_ref[l]                                 # (1, d_inner) broadcast
        for k in range(d_conv):                            # static unroll (d_conv = 4)
            xc = xc + xp[k:k + seqlen, :] * conv_w[k:k + 1, :]
        x = xc * jax.nn.sigmoid(xc)                        # SiLU

        # ---- B / C projections (separate dots, no unaligned column slices) ----
        b_ssm = jnp.dot(x, bproj_ref[l], preferred_element_type=jnp.float32)  # (L, d_state)
        c_ssm = jnp.dot(x, cproj_ref[l], preferred_element_type=jnp.float32)  # (L, d_state)

        # ---- dt = softplus(x @ (W_xproj_dt @ W_dt) + b_dt), threshold = 20 ----
        dt = jnp.dot(x, dtproj_ref[l], preferred_element_type=jnp.float32) + dt_b_ref[l]
        dt = jnp.where(dt <= 20.0, jnp.log1p(jnp.exp(jnp.minimum(dt, 20.0))), dt)

        # ---- selective SSM scan over time ----
        a_neg = a_neg_ref[l]                               # (d_state, d_inner) = -exp(A_log)
        # batch the broadcasts / EUP exp for all timesteps up front
        decay = jnp.exp(dt[:, None, :] * a_neg[None, :, :])      # (L, d_state, d_inner)
        dB = (dt * x)[:, None, :] * b_ssm[:, :, None]            # (L, d_state, d_inner)
        c3 = c_ssm[:, :, None]                                   # (L, d_state, 1)

        h = jnp.zeros((d_state, d_inner), dtype=jnp.float32)
        y = jnp.zeros((seqlen, d_inner), dtype=jnp.float32)
        for t in range(seqlen):                            # static unroll (L = 8)
            h = decay[t] * h + dB[t]                                  # (d_state, d_inner)
            y_t = jnp.sum(c3[t] * h, axis=0, keepdims=True)           # VPU mul + sublane reduce
            y = y + jnp.where(row == t, y_t, 0.0)                     # masked row accumulate

        # ---- D skip + SiLU(z) gate + out_proj ----
        y = y + x * d_ref[l]
        y = y * (z * jax.nn.sigmoid(z))
        hidden = jnp.dot(y, out_w_ref[l], preferred_element_type=jnp.float32)  # (L, D_MODEL)

    # ---- final residual add + norm_f ----
    residual = hidden + residual
    out_ref[0] = _layer_norm(residual, nf_w_ref[...], nf_b_ref[...], eps)


# ----------------------------- wrapper ----------------------------------------
def _full_spec(shape):
    return pl.BlockSpec(shape, lambda b, n=len(shape): (0,) * n)


_WEIGHT_ORDER = ("ln_w", "ln_b", "in_wx", "in_wz", "conv_w", "conv_b",
                 "bproj", "cproj", "dt_comb", "dt_b", "a_neg", "d",
                 "out_w", "norm_f_w", "norm_f_b")


def mamba_forward_fused(x, packed):
    B, L, D = x.shape
    seq_spec = pl.BlockSpec((1, L, D), lambda b: (b, 0, 0))
    weights = [packed[name] for name in _WEIGHT_ORDER]

    kernel = functools.partial(
        _fused_mamba_kernel,
        n_layer=N_LAYER, seqlen=L, d_inner=D_INNER, d_state=D_STATE,
        d_conv=D_CONV, eps=EPS)

    grid_spec = pltpu.PrefetchScalarGridSpec(
        num_scalar_prefetch=0,
        grid=(B,),
        in_specs=[seq_spec] + [_full_spec(w.shape) for w in weights],
        out_specs=seq_spec,
    )
    return pl.pallas_call(
        kernel,
        grid_spec=grid_spec,
        out_shape=jax.ShapeDtypeStruct((B, L, D), jnp.float32),
        compiler_params=pltpu.CompilerParams(dimension_semantics=("parallel",)),
    )(x, *weights)


def mamba_lm_forward(hidden_states, packed, num_last_tokens=0):
    """Equivalent of MambaLMModel.forward (dropout p=0.0, checkpoint are no-ops)."""
    out = mamba_forward_fused(hidden_states, packed)
    if num_last_tokens > 0:
        out = out[:, -num_last_tokens:]
    return out


# ----------------------------- parameter init --------------------------------
def init_layer_params(key):
    k = jax.random.split(key, 6)
    s_in = 1.0 / jnp.sqrt(float(D_MODEL))
    s_inner = 1.0 / jnp.sqrt(float(D_INNER))

    in_w = jax.random.uniform(k[0], (D_MODEL, 2 * D_INNER), jnp.float32, -s_in, s_in)
    conv_w = jax.random.uniform(k[1], (D_CONV, D_INNER), jnp.float32, -0.5, 0.5)
    conv_b = jax.random.uniform(k[2], (1, D_INNER), jnp.float32, -0.5, 0.5)
    xproj_w = jax.random.uniform(k[3], (D_INNER, DT_RANK + 2 * D_STATE),
                                 jnp.float32, -s_inner, s_inner)
    dt_w = jax.random.uniform(k[4], (DT_RANK, D_INNER), jnp.float32,
                              -DT_RANK ** -0.5, DT_RANK ** -0.5)
    # dt bias: inverse softplus of dt values in [1e-3, 0.1] (standard Mamba init)
    dt_init = jnp.exp(jax.random.uniform(k[5], (1, D_INNER), jnp.float32)
                      * (jnp.log(0.1) - jnp.log(1e-3)) + jnp.log(1e-3))
    dt_b = dt_init + jnp.log(-jnp.expm1(-dt_init))
    # A_log stored transposed as (d_state, d_inner); A_log[n, c] = log(n + 1)
    a_log = jnp.log(jnp.broadcast_to(
        jnp.arange(1, D_STATE + 1, dtype=jnp.float32)[:, None], (D_STATE, D_INNER)))
    d = jnp.ones((1, D_INNER), jnp.float32)
    # out_proj rescaled by 1/sqrt(n_layer) as in _init_weights
    out_w = jax.random.uniform(jax.random.fold_in(key, 7), (D_INNER, D_MODEL),
                               jnp.float32, -s_inner, s_inner) / jnp.sqrt(float(N_LAYER))
    return dict(
        ln_w=jnp.ones((1, D_MODEL), jnp.float32),
        ln_b=jnp.zeros((1, D_MODEL), jnp.float32),
        in_w=in_w, conv_w=conv_w, conv_b=conv_b,
        xproj_w=xproj_w, dt_w=dt_w, dt_b=dt_b,
        a_log=a_log, d=d, out_w=out_w)


def init_params(key):
    layer_keys = jax.random.split(key, N_LAYER)
    return {
        "layers": [init_layer_params(k) for k in layer_keys],
        "norm_f_w": jnp.ones((1, D_MODEL), jnp.float32),
        "norm_f_b": jnp.zeros((1, D_MODEL), jnp.float32),
    }


def pack_params(params):
    """Stack per-layer weights and pre-split / pre-fold them for the fused kernel."""
    layers = params["layers"]
    stack = lambda name: jnp.stack([lp[name] for lp in layers], axis=0)

    in_w = stack("in_w")                     # (NL, D, 2*d_inner)
    xproj = stack("xproj_w")                 # (NL, d_inner, dt_rank + 2*d_state)
    dt_w = stack("dt_w")                     # (NL, dt_rank, d_inner)

    return dict(
        ln_w=stack("ln_w"), ln_b=stack("ln_b"),
        in_wx=in_w[:, :, :D_INNER],                         # (NL, D, d_inner)
        in_wz=in_w[:, :, D_INNER:],                         # (NL, D, d_inner)
        conv_w=stack("conv_w"), conv_b=stack("conv_b"),
        bproj=xproj[:, :, DT_RANK:DT_RANK + D_STATE],       # (NL, d_inner, d_state)
        cproj=xproj[:, :, DT_RANK + D_STATE:],              # (NL, d_inner, d_state)
        # fold x_proj's dt rows into dt_proj: exact up to fp rounding
        dt_comb=jnp.einsum("lik,lkj->lij", xproj[:, :, :DT_RANK], dt_w),  # (NL, d_inner, d_inner)
        dt_b=stack("dt_b"),
        a_neg=-jnp.exp(stack("a_log")),                     # (NL, d_state, d_inner)
        d=stack("d"),
        out_w=stack("out_w"),
        norm_f_w=params["norm_f_w"], norm_f_b=params["norm_f_b"],
    )


# ----------------------------- pure-JAX reference -----------------------------
def _reference_forward(x, params):
    """Straight port of the PyTorch forward (un-split / un-folded weights)."""
    def ln(v, w, b):
        mu = jnp.mean(v, axis=-1, keepdims=True)
        var = jnp.mean(jnp.square(v - mu), axis=-1, keepdims=True)
        return (v - mu) * lax.rsqrt(var + EPS) * w + b

    outs = []
    for bi in range(x.shape[0]):
        hidden = x[bi]
        residual = None
        for lp in params["layers"]:
            residual = hidden if residual is None else hidden + residual
            xn = ln(residual, lp["ln_w"][0], lp["ln_b"][0])
            xz = xn @ lp["in_w"]
            xi, z = xz[:, :D_INNER], xz[:, D_INNER:]
            xp = jnp.pad(xi, ((D_CONV - 1, 0), (0, 0)))
            xc = lp["conv_b"][0]
            for k in range(D_CONV):
                xc = xc + xp[k:k + SEQLEN] * lp["conv_w"][k]
            u = xc * jax.nn.sigmoid(xc)
            x_dbl = u @ lp["xproj_w"]
            dt = x_dbl[:, :DT_RANK] @ lp["dt_w"] + lp["dt_b"][0]
            dt = jnp.where(dt <= 20.0, jnp.log1p(jnp.exp(jnp.minimum(dt, 20.0))), dt)
            b_ssm = x_dbl[:, DT_RANK:DT_RANK + D_STATE]
            c_ssm = x_dbl[:, DT_RANK + D_STATE:]
            a_neg = -jnp.exp(lp["a_log"])                     # (d_state, d_inner)
            h = jnp.zeros((D_STATE, D_INNER), jnp.float32)
            ys = []
            for t in range(SEQLEN):
                h = (jnp.exp(dt[t][None, :] * a_neg) * h
                     + (dt[t] * u[t])[None, :] * b_ssm[t][:, None])
                ys.append(jnp.sum(c_ssm[t][:, None] * h, axis=0))
            y = jnp.stack(ys, axis=0) + u * lp["d"][0]
            y = y * (z * jax.nn.sigmoid(z))
            hidden = y @ lp["out_w"]
        residual = hidden + residual
        outs.append(ln(residual, params["norm_f_w"][0], params["norm_f_b"][0]))
    return jnp.stack(outs, axis=0)


# ----------------------------- main -------------------------------------------
if __name__ == "__main__":
    root = jax.random.PRNGKey(0)
    pkey, xkey = jax.random.split(root)
    params = init_params(pkey)
    packed = pack_params(params)

    # MixerModel has no embedding: "input_ids" is already (B, L, d_model) floats.
    x = jax.random.normal(xkey, (BATCH, SEQLEN, D_MODEL), dtype=jnp.float32)

    out = mamba_lm_forward(x, packed, num_last_tokens=0)
    out = jax.block_until_ready(out)

    assert out.shape == (BATCH, SEQLEN, D_MODEL), out.shape
    assert bool(jnp.all(jnp.isfinite(out)))

    ref = jax.block_until_ready(_reference_forward(x, params))
    err = float(jnp.max(jnp.abs(out - ref)))
    assert err < 1e-3, f"kernel vs reference mismatch: max abs err {err}"

    print("KERNEL_OK")
</pallas_src>

<mosaic_0001>
module attributes {stable_mosaic.version = 11 : i64} {
  func.func @_fused_mamba_kernel(%arg0: i32, %arg1: memref<1x8x32xf32, #tpu.memory_space<vmem>>, %arg2: memref<2x1x32xf32, #tpu.memory_space<vmem>>, %arg3: memref<2x1x32xf32, #tpu.memory_space<vmem>>, %arg4: memref<2x32x64xf32, #tpu.memory_space<vmem>>, %arg5: memref<2x32x64xf32, #tpu.memory_space<vmem>>, %arg6: memref<2x4x64xf32, #tpu.memory_space<vmem>>, %arg7: memref<2x1x64xf32, #tpu.memory_space<vmem>>, %arg8: memref<2x64x16xf32, #tpu.memory_space<vmem>>, %arg9: memref<2x64x16xf32, #tpu.memory_space<vmem>>, %arg10: memref<2x64x64xf32, #tpu.memory_space<vmem>>, %arg11: memref<2x1x64xf32, #tpu.memory_space<vmem>>, %arg12: memref<2x16x64xf32, #tpu.memory_space<vmem>>, %arg13: memref<2x1x64xf32, #tpu.memory_space<vmem>>, %arg14: memref<2x64x32xf32, #tpu.memory_space<vmem>>, %arg15: memref<1x32xf32, #tpu.memory_space<vmem>>, %arg16: memref<1x32xf32, #tpu.memory_space<vmem>>, %arg17: memref<1x8x32xf32, #tpu.memory_space<vmem>>) attributes {dimension_semantics = [#tpu.dimension_semantics<parallel>], iteration_bounds = array<i64: 2>, scalar_prefetch = 0 : i64, scratch_operands = 0 : i64, tpu.core_type = #tpu.core_type<tc>, window_params = [{transform_indices = @transform_0, window_bounds = array<i64: 1, 8, 32>}, {pipeline_mode = #tpu.pipeline_mode<synchronous>, transform_indices = @transform_1, window_bounds = array<i64: 2, 1, 32>}, {pipeline_mode = #tpu.pipeline_mode<synchronous>, transform_indices = @transform_2, window_bounds = array<i64: 2, 1, 32>}, {pipeline_mode = #tpu.pipeline_mode<synchronous>, transform_indices = @transform_3, window_bounds = array<i64: 2, 32, 64>}, {pipeline_mode = #tpu.pipeline_mode<synchronous>, transform_indices = @transform_4, window_bounds = array<i64: 2, 32, 64>}, {pipeline_mode = #tpu.pipeline_mode<synchronous>, transform_indices = @transform_5, window_bounds = array<i64: 2, 4, 64>}, {pipeline_mode = #tpu.pipeline_mode<synchronous>, transform_indices = @transform_6, window_bounds = array<i64: 2, 1, 64>}, {pipeline_mode = #tpu.pipeline_mode<synchronous>, transform_indices = @transform_7, window_bounds = array<i64: 2, 64, 16>}, {pipeline_mode = #tpu.pipeline_mode<synchronous>, transform_indices = @transform_8, window_bounds = array<i64: 2, 64, 16>}, {pipeline_mode = #tpu.pipeline_mode<synchronous>, transform_indices = @transform_9, window_bounds = array<i64: 2, 64, 64>}, {pipeline_mode = #tpu.pipeline_mode<synchronous>, transform_indices = @transform_10, window_bounds = array<i64: 2, 1, 64>}, {pipeline_mode = #tpu.pipeline_mode<synchronous>, transform_indices = @transform_11, window_bounds = array<i64: 2, 16, 64>}, {pipeline_mode = #tpu.pipeline_mode<synchronous>, transform_indices = @transform_12, window_bounds = array<i64: 2, 1, 64>}, {pipeline_mode = #tpu.pipeline_mode<synchronous>, transform_indices = @transform_13, window_bounds = array<i64: 2, 64, 32>}, {pipeline_mode = #tpu.pipeline_mode<synchronous>, transform_indices = @transform_14, window_bounds = array<i64: 1, 32>}, {pipeline_mode = #tpu.pipeline_mode<synchronous>, transform_indices = @transform_15, window_bounds = array<i64: 1, 32>}, {transform_indices = @transform_16, window_bounds = array<i64: 1, 8, 32>}]} {
    %c0 = arith.constant 0 : index
    %c0_0 = arith.constant 0 : index
    %c0_1 = arith.constant 0 : index
    %0 = vector.load %arg1[%c0, %c0_0, %c0_1] : memref<1x8x32xf32, #tpu.memory_space<vmem>>, vector<1x8x32xf32>
    %1 = vector.shape_cast %0 : vector<1x8x32xf32> to vector<8x32xf32>
    %2 = tpu.iota {dimensions = array<i32: 0>} : vector<8x1xi32>
    %c0_2 = arith.constant 0 : index
    %c0_3 = arith.constant 0 : index
    %c0_4 = arith.constant 0 : index
    %3 = vector.load %arg2[%c0_2, %c0_3, %c0_4] : memref<2x1x32xf32, #tpu.memory_space<vmem>>, vector<1x1x32xf32>
    %4 = vector.shape_cast %3 : vector<1x1x32xf32> to vector<1x32xf32>
    %c0_5 = arith.constant 0 : index
    %c0_6 = arith.constant 0 : index
    %c0_7 = arith.constant 0 : index
    %5 = vector.load %arg3[%c0_5, %c0_6, %c0_7] : memref<2x1x32xf32, #tpu.memory_space<vmem>>, vector<1x1x32xf32>
    %6 = vector.shape_cast %5 : vector<1x1x32xf32> to vector<1x32xf32>
    %cst = arith.constant dense<0.000000e+00> : vector<8xf32>
    %7 = vector.multi_reduction <add>, %1, %cst [1] : vector<8x32xf32> to vector<8xf32>
    %8 = vector.shape_cast %7 : vector<8xf32> to vector<8x1xf32>
    %cst_8 = arith.constant 3.200000e+01 : f32
    %9 = vector.broadcast %cst_8 : f32 to vector<8x1xf32>
    %10 = arith.divf %8, %9 : vector<8x1xf32>
    %11 = vector.broadcast %10 : vector<8x1xf32> to vector<8x32xf32>
    %12 = arith.subf %1, %11 : vector<8x32xf32>
    %13 = arith.mulf %12, %12 : vector<8x32xf32>
    %cst_9 = arith.constant dense<0.000000e+00> : vector<8xf32>
    %14 = vector.multi_reduction <add>, %13, %cst_9 [1] : vector<8x32xf32> to vector<8xf32>
    %15 = vector.shape_cast %14 : vector<8xf32> to vector<8x1xf32>
    %cst_10 = arith.constant 3.200000e+01 : f32
    %16 = vector.broadcast %cst_10 : f32 to vector<8x1xf32>
    %17 = arith.divf %15, %16 : vector<8x1xf32>
    %18 = vector.broadcast %10 : vector<8x1xf32> to vector<8x32xf32>
    %19 = arith.subf %1, %18 : vector<8x32xf32>
    %cst_11 = arith.constant 9.99999974E-6 : f32
    %20 = vector.broadcast %cst_11 : f32 to vector<8x1xf32>
    %21 = arith.addf %17, %20 : vector<8x1xf32>
    %22 = math.rsqrt %21 : vector<8x1xf32>
    %23 = vector.broadcast %22 : vector<8x1xf32> to vector<8x32xf32>
    %24 = arith.mulf %19, %23 : vector<8x32xf32>
    %25 = vector.broadcast %4 : vector<1x32xf32> to vector<8x32xf32>
    %26 = arith.mulf %24, %25 : vector<8x32xf32>
    %27 = vector.broadcast %6 : vector<1x32xf32> to vector<8x32xf32>
    %28 = arith.addf %26, %27 : vector<8x32xf32>
    %c0_12 = arith.constant 0 : index
    %c0_13 = arith.constant 0 : index
    %c0_14 = arith.constant 0 : index
    %29 = vector.load %arg4[%c0_12, %c0_13, %c0_14] : memref<2x32x64xf32, #tpu.memory_space<vmem>>, vector<1x32x64xf32>
    %30 = vector.shape_cast %29 : vector<1x32x64xf32> to vector<32x64xf32>
    %cst_15 = arith.constant dense<0.000000e+00> : vector<8x64xf32>
    %31 = tpu.matmul %28, %30, %cst_15 {dimension_numbers = #tpu.dot_dimension_numbers<[1], [0], [0], [1], [0, 0, 1, 1], [], []>} : vector<8x32xf32>, vector<32x64xf32>, vector<8x64xf32> -> vector<8x64xf32>
    %c0_16 = arith.constant 0 : index
    %c0_17 = arith.constant 0 : index
    %c0_18 = arith.constant 0 : index
    %32 = vector.load %arg5[%c0_16, %c0_17, %c0_18] : memref<2x32x64xf32, #tpu.memory_space<vmem>>, vector<1x32x64xf32>
    %33 = vector.shape_cast %32 : vector<1x32x64xf32> to vector<32x64xf32>
    %cst_19 = arith.constant dense<0.000000e+00> : vector<8x64xf32>
    %34 = tpu.matmul %28, %33, %cst_19 {dimension_numbers = #tpu.dot_dimension_numbers<[1], [0], [0], [1], [0, 0, 1, 1], [], []>} : vector<8x32xf32>, vector<32x64xf32>, vector<8x64xf32> -> vector<8x64xf32>
    %c0_20 = arith.constant 0 : index
    %c0_21 = arith.constant 0 : index
    %c0_22 = arith.constant 0 : index
    %35 = vector.load %arg6[%c0_20, %c0_21, %c0_22] : memref<2x4x64xf32, #tpu.memory_space<vmem>>, vector<1x4x64xf32>
    %36 = vector.shape_cast %35 : vector<1x4x64xf32> to vector<4x64xf32>
    %cst_23 = arith.constant 0.000000e+00 : f32
    %37 = vector.broadcast %cst_23 : f32 to vector<3x64xf32>
    %38 = tpu.concatenate %37, %31 in 0 : vector<3x64xf32>, vector<8x64xf32> -> vector<11x64xf32>
    %c0_24 = arith.constant 0 : index
    %c0_25 = arith.constant 0 : index
    %c0_26 = arith.constant 0 : index
    %39 = vector.load %arg7[%c0_24, %c0_25, %c0_26] : memref<2x1x64xf32, #tpu.memory_space<vmem>>, vector<1x1x64xf32>
    %40 = vector.shape_cast %39 : vector<1x1x64xf32> to vector<1x64xf32>
    %41 = vector.extract_strided_slice %38 {offsets = [0, 0], sizes = [8, 64], strides = [1, 1]} : vector<11x64xf32> to vector<8x64xf32>
    %42 = vector.extract_strided_slice %36 {offsets = [0, 0], sizes = [1, 64], strides = [1, 1]} : vector<4x64xf32> to vector<1x64xf32>
    %43 = vector.broadcast %42 : vector<1x64xf32> to vector<8x64xf32>
    %44 = arith.mulf %41, %43 : vector<8x64xf32>
    %45 = vector.broadcast %40 : vector<1x64xf32> to vector<8x64xf32>
    %46 = arith.addf %45, %44 : vector<8x64xf32>
    %47 = vector.extract_strided_slice %38 {offsets = [1, 0], sizes = [8, 64], strides = [1, 1]} : vector<11x64xf32> to vector<8x64xf32>
    %48 = vector.extract_strided_slice %36 {offsets = [1, 0], sizes = [1, 64], strides = [1, 1]} : vector<4x64xf32> to vector<1x64xf32>
    %49 = vector.broadcast %48 : vector<1x64xf32> to vector<8x64xf32>
    %50 = arith.mulf %47, %49 : vector<8x64xf32>
    %51 = arith.addf %46, %50 : vector<8x64xf32>
    %52 = vector.extract_strided_slice %38 {offsets = [2, 0], sizes = [8, 64], strides = [1, 1]} : vector<11x64xf32> to vector<8x64xf32>
    %53 = vector.extract_strided_slice %36 {offsets = [2, 0], sizes = [1, 64], strides = [1, 1]} : vector<4x64xf32> to vector<1x64xf32>
    %54 = vector.broadcast %53 : vector<1x64xf32> to vector<8x64xf32>
    %55 = arith.mulf %52, %54 : vector<8x64xf32>
    %56 = arith.addf %51, %55 : vector<8x64xf32>
    %57 = vector.extract_strided_slice %38 {offsets = [3, 0], sizes = [8, 64], strides = [1, 1]} : vector<11x64xf32> to vector<8x64xf32>
    %58 = vector.extract_strided_slice %36 {offsets = [3, 0], sizes = [1, 64], strides = [1, 1]} : vector<4x64xf32> to vector<1x64xf32>
    %59 = vector.broadcast %58 : vector<1x64xf32> to vector<8x64xf32>
    %60 = arith.mulf %57, %59 : vector<8x64xf32>
    %61 = arith.addf %56, %60 : vector<8x64xf32>
    %62 = arith.negf %61 : vector<8x64xf32>
    %63 = math.exp %62 : vector<8x64xf32>
    %cst_27 = arith.constant 1.000000e+00 : f32
    %64 = vector.broadcast %cst_27 : f32 to vector<8x64xf32>
    %65 = arith.addf %64, %63 : vector<8x64xf32>
    %66 = arith.divf %64, %65 : vector<8x64xf32>
    %67 = arith.mulf %61, %66 : vector<8x64xf32>
    %c0_28 = arith.constant 0 : index
    %c0_29 = arith.constant 0 : index
    %c0_30 = arith.constant 0 : index
    %68 = vector.load %arg8[%c0_28, %c0_29, %c0_30] : memref<2x64x16xf32, #tpu.memory_space<vmem>>, vector<1x64x16xf32>
    %69 = vector.shape_cast %68 : vector<1x64x16xf32> to vector<64x16xf32>
    %cst_31 = arith.constant dense<0.000000e+00> : vector<8x16xf32>
    %70 = tpu.matmul %67, %69, %cst_31 {dimension_numbers = #tpu.dot_dimension_numbers<[1], [0], [0], [1], [0, 0, 1, 1], [], []>} : vector<8x64xf32>, vector<64x16xf32>, vector<8x16xf32> -> vector<8x16xf32>
    %c0_32 = arith.constant 0 : index
    %c0_33 = arith.constant 0 : index
    %c0_34 = arith.constant 0 : index
    %71 = vector.load %arg9[%c0_32, %c0_33, %c0_34] : memref<2x64x16xf32, #tpu.memory_space<vmem>>, vector<1x64x16xf32>
    %72 = vector.shape_cast %71 : vector<1x64x16xf32> to vector<64x16xf32>
    %cst_35 = arith.constant dense<0.000000e+00> : vector<8x16xf32>
    %73 = tpu.matmul %67, %72, %cst_35 {dimension_numbers = #tpu.dot_dimension_numbers<[1], [0], [0], [1], [0, 0, 1, 1], [], []>} : vector<8x64xf32>, vector<64x16xf32>, vector<8x16xf32> -> vector<8x16xf32>
    %c0_36 = arith.constant 0 : index
    %c0_37 = arith.constant 0 : index
    %c0_38 = arith.constant 0 : index
    %74 = vector.load %arg10[%c0_36, %c0_37, %c0_38] : memref<2x64x64xf32, #tpu.memory_space<vmem>>, vector<1x64x64xf32>
    %75 = vector.shape_cast %74 : vector<1x64x64xf32> to vector<64x64xf32>
    %cst_39 = arith.constant dense<0.000000e+00> : vector<8x64xf32>
    %76 = tpu.matmul %67, %75, %cst_39 {dimension_numbers = #tpu.dot_dimension_numbers<[1], [0], [0], [1], [0, 0, 1, 1], [], []>} : vector<8x64xf32>, vector<64x64xf32>, vector<8x64xf32> -> vector<8x64xf32>
    %c0_40 = arith.constant 0 : index
    %c0_41 = arith.constant 0 : index
    %c0_42 = arith.constant 0 : index
    %77 = vector.load %arg11[%c0_40, %c0_41, %c0_42] : memref<2x1x64xf32, #tpu.memory_space<vmem>>, vector<1x1x64xf32>
    %78 = vector.shape_cast %77 : vector<1x1x64xf32> to vector<1x64xf32>
    %79 = vector.broadcast %78 : vector<1x64xf32> to vector<8x64xf32>
    %80 = arith.addf %76, %79 : vector<8x64xf32>
    %cst_43 = arith.constant 2.000000e+01 : f32
    %81 = vector.broadcast %cst_43 : f32 to vector<8x64xf32>
    %82 = arith.cmpf ole, %80, %81 : vector<8x64xf32>
    %cst_44 = arith.constant 2.000000e+01 : f32
    %83 = vector.broadcast %cst_44 : f32 to vector<8x64xf32>
    %84 = arith.minimumf %80, %83 : vector<8x64xf32>
    %85 = math.exp %84 : vector<8x64xf32>
    %86 = math.log1p %85 : vector<8x64xf32>
    %87 = arith.select %82, %86, %80 : vector<8x64xi1>, vector<8x64xf32>
    %c0_45 = arith.constant 0 : index
    %c0_46 = arith.constant 0 : index
    %c0_47 = arith.constant 0 : index
    %88 = vector.load %arg12[%c0_45, %c0_46, %c0_47] : memref<2x16x64xf32, #tpu.memory_space<vmem>>, vector<1x16x64xf32>
    %89 = vector.shape_cast %88 : vector<1x16x64xf32> to vector<16x64xf32>
    %90 = vector.shape_cast %87 : vector<8x64xf32> to vector<8x1x64xf32>
    %91 = vector.shape_cast %89 : vector<16x64xf32> to vector<1x16x64xf32>
    %92 = vector.broadcast %90 : vector<8x1x64xf32> to vector<8x16x64xf32>
    %93 = vector.broadcast %91 : vector<1x16x64xf32> to vector<8x16x64xf32>
    %94 = arith.mulf %92, %93 : vector<8x16x64xf32>
    %95 = math.exp %94 : vector<8x16x64xf32>
    %96 = arith.mulf %87, %67 : vector<8x64xf32>
    %97 = vector.shape_cast %96 : vector<8x64xf32> to vector<8x1x64xf32>
    %98 = vector.shape_cast %70 : vector<8x16xf32> to vector<8x16x1xf32>
    %99 = vector.broadcast %97 : vector<8x1x64xf32> to vector<8x16x64xf32>
    %100 = vector.broadcast %98 : vector<8x16x1xf32> to vector<8x16x64xf32>
    %101 = arith.mulf %99, %100 : vector<8x16x64xf32>
    %102 = vector.shape_cast %73 : vector<8x16xf32> to vector<8x16x1xf32>
    %cst_48 = arith.constant 0.000000e+00 : f32
    %103 = vector.broadcast %cst_48 : f32 to vector<16x64xf32>
    %cst_49 = arith.constant 0.000000e+00 : f32
    %104 = vector.broadcast %cst_49 : f32 to vector<8x64xf32>
    %105 = vector.extract_strided_slice %95 {offsets = [0, 0, 0], sizes = [1, 16, 64], strides = [1, 1, 1]} : vector<8x16x64xf32> to vector<1x16x64xf32>
    %106 = vector.shape_cast %105 : vector<1x16x64xf32> to vector<16x64xf32>
    %107 = arith.mulf %106, %103 : vector<16x64xf32>
    %108 = vector.extract_strided_slice %101 {offsets = [0, 0, 0], sizes = [1, 16, 64], strides = [1, 1, 1]} : vector<8x16x64xf32> to vector<1x16x64xf32>
    %109 = vector.shape_cast %108 : vector<1x16x64xf32> to vector<16x64xf32>
    %110 = arith.addf %107, %109 : vector<16x64xf32>
    %111 = vector.extract_strided_slice %102 {offsets = [0, 0, 0], sizes = [1, 16, 1], strides = [1, 1, 1]} : vector<8x16x1xf32> to vector<1x16x1xf32>
    %112 = vector.shape_cast %111 : vector<1x16x1xf32> to vector<16x1xf32>
    %113 = vector.broadcast %112 : vector<16x1xf32> to vector<16x64xf32>
    %114 = arith.mulf %113, %110 : vector<16x64xf32>
    %cst_50 = arith.constant dense<0.000000e+00> : vector<64xf32>
    %115 = vector.multi_reduction <add>, %114, %cst_50 [0] : vector<16x64xf32> to vector<64xf32>
    %116 = vector.shape_cast %115 : vector<64xf32> to vector<1x64xf32>
    %c0_i32 = arith.constant 0 : i32
    %117 = vector.broadcast %c0_i32 : i32 to vector<8x1xi32>
    %118 = arith.cmpi eq, %2, %117 : vector<8x1xi32>
    %cst_51 = arith.constant 0.000000e+00 : f32
    %119 = vector.shape_cast %118 : vector<8x1xi1> to vector<8x1xi1>
    %120 = vector.broadcast %119 : vector<8x1xi1> to vector<8x64xi1>
    %121 = vector.shape_cast %116 : vector<1x64xf32> to vector<1x64xf32>
    %122 = vector.broadcast %121 : vector<1x64xf32> to vector<8x64xf32>
    %123 = vector.broadcast %cst_51 : f32 to vector<8x64xf32>
    %124 = arith.select %120, %122, %123 : vector<8x64xi1>, vector<8x64xf32>
    %125 = arith.addf %104, %124 : vector<8x64xf32>
    %126 = vector.extract_strided_slice %95 {offsets = [1, 0, 0], sizes = [1, 16, 64], strides = [1, 1, 1]} : vector<8x16x64xf32> to vector<1x16x64xf32>
    %127 = vector.shape_cast %126 : vector<1x16x64xf32> to vector<16x64xf32>
    %128 = arith.mulf %127, %110 : vector<16x64xf32>
    %129 = vector.extract_strided_slice %101 {offsets = [1, 0, 0], sizes = [1, 16, 64], strides = [1, 1, 1]} : vector<8x16x64xf32> to vector<1x16x64xf32>
    %130 = vector.shape_cast %129 : vector<1x16x64xf32> to vector<16x64xf32>
    %131 = arith.addf %128, %130 : vector<16x64xf32>
    %132 = vector.extract_strided_slice %102 {offsets = [1, 0, 0], sizes = [1, 16, 1], strides = [1, 1, 1]} : vector<8x16x1xf32> to vector<1x16x1xf32>
    %133 = vector.shape_cast %132 : vector<1x16x1xf32> to vector<16x1xf32>
    %134 = vector.broadcast %133 : vector<16x1xf32> to vector<16x64xf32>
    %135 = arith.mulf %134, %131 : vector<16x64xf32>
    %cst_52 = arith.constant dense<0.000000e+00> : vector<64xf32>
    %136 = vector.multi_reduction <add>, %135, %cst_52 [0] : vector<16x64xf32> to vector<64xf32>
    %137 = vector.shape_cast %136 : vector<64xf32> to vector<1x64xf32>
    %c1_i32 = arith.constant 1 : i32
    %138 = vector.broadcast %c1_i32 : i32 to vector<8x1xi32>
    %139 = arith.cmpi eq, %2, %138 : vector<8x1xi32>
    %cst_53 = arith.constant 0.000000e+00 : f32
    %140 = vector.shape_cast %139 : vector<8x1xi1> to vector<8x1xi1>
    %141 = vector.broadcast %140 : vector<8x1xi1> to vector<8x64xi1>
    %142 = vector.shape_cast %137 : vector<1x64xf32> to vector<1x64xf32>
    %143 = vector.broadcast %142 : vector<1x64xf32> to vector<8x64xf32>
    %144 = vector.broadcast %cst_53 : f32 to vector<8x64xf32>
    %145 = arith.select %141, %143, %144 : vector<8x64xi1>, vector<8x64xf32>
    %146 = arith.addf %125, %145 : vector<8x64xf32>
    %147 = vector.extract_strided_slice %95 {offsets = [2, 0, 0], sizes = [1, 16, 64], strides = [1, 1, 1]} : vector<8x16x64xf32> to vector<1x16x64xf32>
    %148 = vector.shape_cast %147 : vector<1x16x64xf32> to vector<16x64xf32>
    %149 = arith.mulf %148, %131 : vector<16x64xf32>
    %150 = vector.extract_strided_slice %101 {offsets = [2, 0, 0], sizes = [1, 16, 64], strides = [1, 1, 1]} : vector<8x16x64xf32> to vector<1x16x64xf32>
    %151 = vector.shape_cast %150 : vector<1x16x64xf32> to vector<16x64xf32>
    %152 = arith.addf %149, %151 : vector<16x64xf32>
    %153 = vector.extract_strided_slice %102 {offsets = [2, 0, 0], sizes = [1, 16, 1], strides = [1, 1, 1]} : vector<8x16x1xf32> to vector<1x16x1xf32>
    %154 = vector.shape_cast %153 : vector<1x16x1xf32> to vector<16x1xf32>
    %155 = vector.broadcast %154 : vector<16x1xf32> to vector<16x64xf32>
    %156 = arith.mulf %155, %152 : vector<16x64xf32>
    %cst_54 = arith.constant dense<0.000000e+00> : vector<64xf32>
    %157 = vector.multi_reduction <add>, %156, %cst_54 [0] : vector<16x64xf32> to vector<64xf32>
    %158 = vector.shape_cast %157 : vector<64xf32> to vector<1x64xf32>
    %c2_i32 = arith.constant 2 : i32
    %159 = vector.broadcast %c2_i32 : i32 to vector<8x1xi32>
    %160 = arith.cmpi eq, %2, %159 : vector<8x1xi32>
    %cst_55 = arith.constant 0.000000e+00 : f32
    %161 = vector.shape_cast %160 : vector<8x1xi1> to vector<8x1xi1>
    %162 = vector.broadcast %161 : vector<8x1xi1> to vector<8x64xi1>
    %163 = vector.shape_cast %158 : vector<1x64xf32> to vector<1x64xf32>
    %164 = vector.broadcast %163 : vector<1x64xf32> to vector<8x64xf32>
    %165 = vector.broadcast %cst_55 : f32 to vector<8x64xf32>
    %166 = arith.select %162, %164, %165 : vector<8x64xi1>, vector<8x64xf32>
    %167 = arith.addf %146, %166 : vector<8x64xf32>
    %168 = vector.extract_strided_slice %95 {offsets = [3, 0, 0], sizes = [1, 16, 64], strides = [1, 1, 1]} : vector<8x16x64xf32> to vector<1x16x64xf32>
    %169 = vector.shape_cast %168 : vector<1x16x64xf32> to vector<16x64xf32>
    %170 = arith.mulf %169, %152 : vector<16x64xf32>
    %171 = vector.extract_strided_slice %101 {offsets = [3, 0, 0], sizes = [1, 16, 64], strides = [1, 1, 1]} : vector<8x16x64xf32> to vector<1x16x64xf32>
    %172 = vector.shape_cast %171 : vector<1x16x64xf32> to vector<16x64xf32>
    %173 = arith.addf %170, %172 : vector<16x64xf32>
    %174 = vector.extract_strided_slice %102 {offsets = [3, 0, 0], sizes = [1, 16, 1], strides = [1, 1, 1]} : vector<8x16x1xf32> to vector<1x16x1xf32>
    %175 = vector.shape_cast %174 : vector<1x16x1xf32> to vector<16x1xf32>
    %176 = vector.broadcast %175 : vector<16x1xf32> to vector<16x64xf32>
    %177 = arith.mulf %176, %173 : vector<16x64xf32>
    %cst_56 = arith.constant dense<0.000000e+00> : vector<64xf32>
    %178 = vector.multi_reduction <add>, %177, %cst_56 [0] : vector<16x64xf32> to vector<64xf32>
    %179 = vector.shape_cast %178 : vector<64xf32> to vector<1x64xf32>
    %c3_i32 = arith.constant 3 : i32
    %180 = vector.broadcast %c3_i32 : i32 to vector<8x1xi32>
    %181 = arith.cmpi eq, %2, %180 : vector<8x1xi32>
    %cst_57 = arith.constant 0.000000e+00 : f32
    %182 = vector.shape_cast %181 : vector<8x1xi1> to vector<8x1xi1>
    %183 = vector.broadcast %182 : vector<8x1xi1> to vector<8x64xi1>
    %184 = vector.shape_cast %179 : vector<1x64xf32> to vector<1x64xf32>
    %185 = vector.broadcast %184 : vector<1x64xf32> to vector<8x64xf32>
    %186 = vector.broadcast %cst_57 : f32 to vector<8x64xf32>
    %187 = arith.select %183, %185, %186 : vector<8x64xi1>, vector<8x64xf32>
    %188 = arith.addf %167, %187 : vector<8x64xf32>
    %189 = vector.extract_strided_slice %95 {offsets = [4, 0, 0], sizes = [1, 16, 64], strides = [1, 1, 1]} : vector<8x16x64xf32> to vector<1x16x64xf32>
    %190 = vector.shape_cast %189 : vector<1x16x64xf32> to vector<16x64xf32>
    %191 = arith.mulf %190, %173 : vector<16x64xf32>
    %192 = vector.extract_strided_slice %101 {offsets = [4, 0, 0], sizes = [1, 16, 64], strides = [1, 1, 1]} : vector<8x16x64xf32> to vector<1x16x64xf32>
    %193 = vector.shape_cast %192 : vector<1x16x64xf32> to vector<16x64xf32>
    %194 = arith.addf %191, %193 : vector<16x64xf32>
    %195 = vector.extract_strided_slice %102 {offsets = [4, 0, 0], sizes = [1, 16, 1], strides = [1, 1, 1]} : vector<8x16x1xf32> to vector<1x16x1xf32>
    %196 = vector.shape_cast %195 : vector<1x16x1xf32> to vector<16x1xf32>
    %197 = vector.broadcast %196 : vector<16x1xf32> to vector<16x64xf32>
    %198 = arith.mulf %197, %194 : vector<16x64xf32>
    %cst_58 = arith.constant dense<0.000000e+00> : vector<64xf32>
    %199 = vector.multi_reduction <add>, %198, %cst_58 [0] : vector<16x64xf32> to vector<64xf32>
    %200 = vector.shape_cast %199 : vector<64xf32> to vector<1x64xf32>
    %c4_i32 = arith.constant 4 : i32
    %201 = vector.broadcast %c4_i32 : i32 to vector<8x1xi32>
    %202 = arith.cmpi eq, %2, %201 : vector<8x1xi32>
    %cst_59 = arith.constant 0.000000e+00 : f32
    %203 = vector.shape_cast %202 : vector<8x1xi1> to vector<8x1xi1>
    %204 = vector.broadcast %203 : vector<8x1xi1> to vector<8x64xi1>
    %205 = vector.shape_cast %200 : vector<1x64xf32> to vector<1x64xf32>
    %206 = vector.broadcast %205 : vector<1x64xf32> to vector<8x64xf32>
    %207 = vector.broadcast %cst_59 : f32 to vector<8x64xf32>
    %208 = arith.select %204, %206, %207 : vector<8x64xi1>, vector<8x64xf32>
    %209 = arith.addf %188, %208 : vector<8x64xf32>
    %210 = vector.extract_strided_slice %95 {offsets = [5, 0, 0], sizes = [1, 16, 64], strides = [1, 1, 1]} : vector<8x16x64xf32> to vector<1x16x64xf32>
    %211 = vector.shape_cast %210 : vector<1x16x64xf32> to vector<16x64xf32>
    %212 = arith.mulf %211, %194 : vector<16x64xf32>
    %213 = vector.extract_strided_slice %101 {offsets = [5, 0, 0], sizes = [1, 16, 64], strides = [1, 1, 1]} : vector<8x16x64xf32> to vector<1x16x64xf32>
    %214 = vector.shape_cast %213 : vector<1x16x64xf32> to vector<16x64xf32>
    %215 = arith.addf %212, %214 : vector<16x64xf32>
    %216 = vector.extract_strided_slice %102 {offsets = [5, 0, 0], sizes = [1, 16, 1], strides = [1, 1, 1]} : vector<8x16x1xf32> to vector<1x16x1xf32>
    %217 = vector.shape_cast %216 : vector<1x16x1xf32> to vector<16x1xf32>
    %218 = vector.broadcast %217 : vector<16x1xf32> to vector<16x64xf32>
    %219 = arith.mulf %218, %215 : vector<16x64xf32>
    %cst_60 = arith.constant dense<0.000000e+00> : vector<64xf32>
    %220 = vector.multi_reduction <add>, %219, %cst_60 [0] : vector<16x64xf32> to vector<64xf32>
    %221 = vector.shape_cast %220 : vector<64xf32> to vector<1x64xf32>
    %c5_i32 = arith.constant 5 : i32
    %222 = vector.broadcast %c5_i32 : i32 to vector<8x1xi32>
    %223 = arith.cmpi eq, %2, %222 : vector<8x1xi32>
    %cst_61 = arith.constant 0.000000e+00 : f32
    %224 = vector.shape_cast %223 : vector<8x1xi1> to vector<8x1xi1>
    %225 = vector.broadcast %224 : vector<8x1xi1> to vector<8x64xi1>
    %226 = vector.shape_cast %221 : vector<1x64xf32> to vector<1x64xf32>
    %227 = vector.broadcast %226 : vector<1x64xf32> to vector<8x64xf32>
    %228 = vector.broadcast %cst_61 : f32 to vector<8x64xf32>
    %229 = arith.select %225, %227, %228 : vector<8x64xi1>, vector<8x64xf32>
    %230 = arith.addf %209, %229 : vector<8x64xf32>
    %231 = vector.extract_strided_slice %95 {offsets = [6, 0, 0], sizes = [1, 16, 64], strides = [1, 1, 1]} : vector<8x16x64xf32> to vector<1x16x64xf32>
    %232 = vector.shape_cast %231 : vector<1x16x64xf32> to vector<16x64xf32>
    %233 = arith.mulf %232, %215 : vector<16x64xf32>
    %234 = vector.extract_strided_slice %101 {offsets = [6, 0, 0], sizes = [1, 16, 64], strides = [1, 1, 1]} : vector<8x16x64xf32> to vector<1x16x64xf32>
    %235 = vector.shape_cast %234 : vector<1x16x64xf32> to vector<16x64xf32>
    %236 = arith.addf %233, %235 : vector<16x64xf32>
    %237 = vector.extract_strided_slice %102 {offsets = [6, 0, 0], sizes = [1, 16, 1], strides = [1, 1, 1]} : vector<8x16x1xf32> to vector<1x16x1xf32>
    %238 = vector.shape_cast %237 : vector<1x16x1xf32> to vector<16x1xf32>
    %239 = vector.broadcast %238 : vector<16x1xf32> to vector<16x64xf32>
    %240 = arith.mulf %239, %236 : vector<16x64xf32>
    %cst_62 = arith.constant dense<0.000000e+00> : vector<64xf32>
    %241 = vector.multi_reduction <add>, %240, %cst_62 [0] : vector<16x64xf32> to vector<64xf32>
    %242 = vector.shape_cast %241 : vector<64xf32> to vector<1x64xf32>
    %c6_i32 = arith.constant 6 : i32
    %243 = vector.broadcast %c6_i32 : i32 to vector<8x1xi32>
    %244 = arith.cmpi eq, %2, %243 : vector<8x1xi32>
    %cst_63 = arith.constant 0.000000e+00 : f32
    %245 = vector.shape_cast %244 : vector<8x1xi1> to vector<8x1xi1>
    %246 = vector.broadcast %245 : vector<8x1xi1> to vector<8x64xi1>
    %247 = vector.shape_cast %242 : vector<1x64xf32> to vector<1x64xf32>
    %248 = vector.broadcast %247 : vector<1x64xf32> to vector<8x64xf32>
    %249 = vector.broadcast %cst_63 : f32 to vector<8x64xf32>
    %250 = arith.select %246, %248, %249 : vector<8x64xi1>, vector<8x64xf32>
    %251 = arith.addf %230, %250 : vector<8x64xf32>
    %252 = vector.extract_strided_slice %95 {offsets = [7, 0, 0], sizes = [1, 16, 64], strides = [1, 1, 1]} : vector<8x16x64xf32> to vector<1x16x64xf32>
    %253 = vector.shape_cast %252 : vector<1x16x64xf32> to vector<16x64xf32>
    %254 = arith.mulf %253, %236 : vector<16x64xf32>
    %255 = vector.extract_strided_slice %101 {offsets = [7, 0, 0], sizes = [1, 16, 64], strides = [1, 1, 1]} : vector<8x16x64xf32> to vector<1x16x64xf32>
    %256 = vector.shape_cast %255 : vector<1x16x64xf32> to vector<16x64xf32>
    %257 = arith.addf %254, %256 : vector<16x64xf32>
    %258 = vector.extract_strided_slice %102 {offsets = [7, 0, 0], sizes = [1, 16, 1], strides = [1, 1, 1]} : vector<8x16x1xf32> to vector<1x16x1xf32>
    %259 = vector.shape_cast %258 : vector<1x16x1xf32> to vector<16x1xf32>
    %260 = vector.broadcast %259 : vector<16x1xf32> to vector<16x64xf32>
    %261 = arith.mulf %260, %257 : vector<16x64xf32>
    %cst_64 = arith.constant dense<0.000000e+00> : vector<64xf32>
    %262 = vector.multi_reduction <add>, %261, %cst_64 [0] : vector<16x64xf32> to vector<64xf32>
    %263 = vector.shape_cast %262 : vector<64xf32> to vector<1x64xf32>
    %c7_i32 = arith.constant 7 : i32
    %264 = vector.broadcast %c7_i32 : i32 to vector<8x1xi32>
    %265 = arith.cmpi eq, %2, %264 : vector<8x1xi32>
    %cst_65 = arith.constant 0.000000e+00 : f32
    %266 = vector.shape_cast %265 : vector<8x1xi1> to vector<8x1xi1>
    %267 = vector.broadcast %266 : vector<8x1xi1> to vector<8x64xi1>
    %268 = vector.shape_cast %263 : vector<1x64xf32> to vector<1x64xf32>
    %269 = vector.broadcast %268 : vector<1x64xf32> to vector<8x64xf32>
    %270 = vector.broadcast %cst_65 : f32 to vector<8x64xf32>
    %271 = arith.select %267, %269, %270 : vector<8x64xi1>, vector<8x64xf32>
    %272 = arith.addf %251, %271 : vector<8x64xf32>
    %c0_66 = arith.constant 0 : index
    %c0_67 = arith.constant 0 : index
    %c0_68 = arith.constant 0 : index
    %273 = vector.load %arg13[%c0_66, %c0_67, %c0_68] : memref<2x1x64xf32, #tpu.memory_space<vmem>>, vector<1x1x64xf32>
    %274 = vector.shape_cast %273 : vector<1x1x64xf32> to vector<1x64xf32>
    %275 = vector.broadcast %274 : vector<1x64xf32> to vector<8x64xf32>
    %276 = arith.mulf %67, %275 : vector<8x64xf32>
    %277 = arith.addf %272, %276 : vector<8x64xf32>
    %278 = arith.negf %34 : vector<8x64xf32>
    %279 = math.exp %278 : vector<8x64xf32>
    %cst_69 = arith.constant 1.000000e+00 : f32
    %280 = vector.broadcast %cst_69 : f32 to vector<8x64xf32>
    %281 = arith.addf %280, %279 : vector<8x64xf32>
    %282 = arith.divf %280, %281 : vector<8x64xf32>
    %283 = arith.mulf %34, %282 : vector<8x64xf32>
    %284 = arith.mulf %277, %283 : vector<8x64xf32>
    %c0_70 = arith.constant 0 : index
    %c0_71 = arith.constant 0 : index
    %c0_72 = arith.constant 0 : index
    %285 = vector.load %arg14[%c0_70, %c0_71, %c0_72] : memref<2x64x32xf32, #tpu.memory_space<vmem>>, vector<1x64x32xf32>
    %286 = vector.shape_cast %285 : vector<1x64x32xf32> to vector<64x32xf32>
    %cst_73 = arith.constant dense<0.000000e+00> : vector<8x32xf32>
    %287 = tpu.matmul %284, %286, %cst_73 {dimension_numbers = #tpu.dot_dimension_numbers<[1], [0], [0], [1], [0, 0, 1, 1], [], []>} : vector<8x64xf32>, vector<64x32xf32>, vector<8x32xf32> -> vector<8x32xf32>
    %288 = arith.addf %287, %1 : vector<8x32xf32>
    %c1 = arith.constant 1 : index
    %c0_74 = arith.constant 0 : index
    %c0_75 = arith.constant 0 : index
    %289 = vector.load %arg2[%c1, %c0_74, %c0_75] : memref<2x1x32xf32, #tpu.memory_space<vmem>>, vector<1x1x32xf32>
    %290 = vector.shape_cast %289 : vector<1x1x32xf32> to vector<1x32xf32>
    %c1_76 = arith.constant 1 : index
    %c0_77 = arith.constant 0 : index
    %c0_78 = arith.constant 0 : index
    %291 = vector.load %arg3[%c1_76, %c0_77, %c0_78] : memref<2x1x32xf32, #tpu.memory_space<vmem>>, vector<1x1x32xf32>
    %292 = vector.shape_cast %291 : vector<1x1x32xf32> to vector<1x32xf32>
    %cst_79 = arith.constant dense<0.000000e+00> : vector<8xf32>
    %293 = vector.multi_reduction <add>, %288, %cst_79 [1] : vector<8x32xf32> to vector<8xf32>
    %294 = vector.shape_cast %293 : vector<8xf32> to vector<8x1xf32>
    %cst_80 = arith.constant 3.200000e+01 : f32
    %295 = vector.broadcast %cst_80 : f32 to vector<8x1xf32>
    %296 = arith.divf %294, %295 : vector<8x1xf32>
    %297 = vector.broadcast %296 : vector<8x1xf32> to vector<8x32xf32>
    %298 = arith.subf %288, %297 : vector<8x32xf32>
    %299 = arith.mulf %298, %298 : vector<8x32xf32>
    %cst_81 = arith.constant dense<0.000000e+00> : vector<8xf32>
    %300 = vector.multi_reduction <add>, %299, %cst_81 [1] : vector<8x32xf32> to vector<8xf32>
    %301 = vector.shape_cast %300 : vector<8xf32> to vector<8x1xf32>
    %cst_82 = arith.constant 3.200000e+01 : f32
    %302 = vector.broadcast %cst_82 : f32 to vector<8x1xf32>
    %303 = arith.divf %301, %302 : vector<8x1xf32>
    %304 = vector.broadcast %296 : vector<8x1xf32> to vector<8x32xf32>
    %305 = arith.subf %288, %304 : vector<8x32xf32>
    %cst_83 = arith.constant 9.99999974E-6 : f32
    %306 = vector.broadcast %cst_83 : f32 to vector<8x1xf32>
    %307 = arith.addf %303, %306 : vector<8x1xf32>
    %308 = math.rsqrt %307 : vector<8x1xf32>
    %309 = vector.broadcast %308 : vector<8x1xf32> to vector<8x32xf32>
    %310 = arith.mulf %305, %309 : vector<8x32xf32>
    %311 = vector.broadcast %290 : vector<1x32xf32> to vector<8x32xf32>
    %312 = arith.mulf %310, %311 : vector<8x32xf32>
    %313 = vector.broadcast %292 : vector<1x32xf32> to vector<8x32xf32>
    %314 = arith.addf %312, %313 : vector<8x32xf32>
    %c1_84 = arith.constant 1 : index
    %c0_85 = arith.constant 0 : index
    %c0_86 = arith.constant 0 : index
    %315 = vector.load %arg4[%c1_84, %c0_85, %c0_86] : memref<2x32x64xf32, #tpu.memory_space<vmem>>, vector<1x32x64xf32>
    %316 = vector.shape_cast %315 : vector<1x32x64xf32> to vector<32x64xf32>
    %cst_87 = arith.constant dense<0.000000e+00> : vector<8x64xf32>
    %317 = tpu.matmul %314, %316, %cst_87 {dimension_numbers = #tpu.dot_dimension_numbers<[1], [0], [0], [1], [0, 0, 1, 1], [], []>} : vector<8x32xf32>, vector<32x64xf32>, vector<8x64xf32> -> vector<8x64xf32>
    %c1_88 = arith.constant 1 : index
    %c0_89 = arith.constant 0 : index
    %c0_90 = arith.constant 0 : index
    %318 = vector.load %arg5[%c1_88, %c0_89, %c0_90] : memref<2x32x64xf32, #tpu.memory_space<vmem>>, vector<1x32x64xf32>
    %319 = vector.shape_cast %318 : vector<1x32x64xf32> to vector<32x64xf32>
    %cst_91 = arith.constant dense<0.000000e+00> : vector<8x64xf32>
    %320 = tpu.matmul %314, %319, %cst_91 {dimension_numbers = #tpu.dot_dimension_numbers<[1], [0], [0], [1], [0, 0, 1, 1], [], []>} : vector<8x32xf32>, vector<32x64xf32>, vector<8x64xf32> -> vector<8x64xf32>
    %c1_92 = arith.constant 1 : index
    %c0_93 = arith.constant 0 : index
    %c0_94 = arith.constant 0 : index
    %321 = vector.load %arg6[%c1_92, %c0_93, %c0_94] : memref<2x4x64xf32, #tpu.memory_space<vmem>>, vector<1x4x64xf32>
    %322 = vector.shape_cast %321 : vector<1x4x64xf32> to vector<4x64xf32>
    %cst_95 = arith.constant 0.000000e+00 : f32
    %323 = vector.broadcast %cst_95 : f32 to vector<3x64xf32>
    %324 = tpu.concatenate %323, %317 in 0 : vector<3x64xf32>, vector<8x64xf32> -> vector<11x64xf32>
    %c1_96 = arith.constant 1 : index
    %c0_97 = arith.constant 0 : index
    %c0_98 = arith.constant 0 : index
    %325 = vector.load %arg7[%c1_96, %c0_97, %c0_98] : memref<2x1x64xf32, #tpu.memory_space<vmem>>, vector<1x1x64xf32>
    %326 = vector.shape_cast %325 : vector<1x1x64xf32> to vector<1x64xf32>
    %327 = vector.extract_strided_slice %324 {offsets = [0, 0], sizes = [8, 64], strides = [1, 1]} : vector<11x64xf32> to vector<8x64xf32>
    %328 = vector.extract_strided_slice %322 {offsets = [0, 0], sizes = [1, 64], strides = [1, 1]} : vector<4x64xf32> to vector<1x64xf32>
    %329 = vector.broadcast %328 : vector<1x64xf32> to vector<8x64xf32>
    %330 = arith.mulf %327, %329 : vector<8x64xf32>
    %331 = vector.broadcast %326 : vector<1x64xf32> to vector<8x64xf32>
    %332 = arith.addf %331, %330 : vector<8x64xf32>
    %333 = vector.extract_strided_slice %324 {offsets = [1, 0], sizes = [8, 64], strides = [1, 1]} : vector<11x64xf32> to vector<8x64xf32>
    %334 = vector.extract_strided_slice %322 {offsets = [1, 0], sizes = [1, 64], strides = [1, 1]} : vector<4x64xf32> to vector<1x64xf32>
    %335 = vector.broadcast %334 : vector<1x64xf32> to vector<8x64xf32>
    %336 = arith.mulf %333, %335 : vector<8x64xf32>
    %337 = arith.addf %332, %336 : vector<8x64xf32>
    %338 = vector.extract_strided_slice %324 {offsets = [2, 0], sizes = [8, 64], strides = [1, 1]} : vector<11x64xf32> to vector<8x64xf32>
    %339 = vector.extract_strided_slice %322 {offsets = [2, 0], sizes = [1, 64], strides = [1, 1]} : vector<4x64xf32> to vector<1x64xf32>
    %340 = vector.broadcast %339 : vector<1x64xf32> to vector<8x64xf32>
    %341 = arith.mulf %338, %340 : vector<8x64xf32>
    %342 = arith.addf %337, %341 : vector<8x64xf32>
    %343 = vector.extract_strided_slice %324 {offsets = [3, 0], sizes = [8, 64], strides = [1, 1]} : vector<11x64xf32> to vector<8x64xf32>
    %344 = vector.extract_strided_slice %322 {offsets = [3, 0], sizes = [1, 64], strides = [1, 1]} : vector<4x64xf32> to vector<1x64xf32>
    %345 = vector.broadcast %344 : vector<1x64xf32> to vector<8x64xf32>
    %346 = arith.mulf %343, %345 : vector<8x64xf32>
    %347 = arith.addf %342, %346 : vector<8x64xf32>
    %348 = arith.negf %347 : vector<8x64xf32>
    %349 = math.exp %348 : vector<8x64xf32>
    %cst_99 = arith.constant 1.000000e+00 : f32
    %350 = vector.broadcast %cst_99 : f32 to vector<8x64xf32>
    %351 = arith.addf %350, %349 : vector<8x64xf32>
    %352 = arith.divf %350, %351 : vector<8x64xf32>
    %353 = arith.mulf %347, %352 : vector<8x64xf32>
    %c1_100 = arith.constant 1 : index
    %c0_101 = arith.constant 0 : index
    %c0_102 = arith.constant 0 : index
    %354 = vector.load %arg8[%c1_100, %c0_101, %c0_102] : memref<2x64x16xf32, #tpu.memory_space<vmem>>, vector<1x64x16xf32>
    %355 = vector.shape_cast %354 : vector<1x64x16xf32> to vector<64x16xf32>
    %cst_103 = arith.constant dense<0.000000e+00> : vector<8x16xf32>
    %356 = tpu.matmul %353, %355, %cst_103 {dimension_numbers = #tpu.dot_dimension_numbers<[1], [0], [0], [1], [0, 0, 1, 1], [], []>} : vector<8x64xf32>, vector<64x16xf32>, vector<8x16xf32> -> vector<8x16xf32>
    %c1_104 = arith.constant 1 : index
    %c0_105 = arith.constant 0 : index
    %c0_106 = arith.constant 0 : index
    %357 = vector.load %arg9[%c1_104, %c0_105, %c0_106] : memref<2x64x16xf32, #tpu.memory_space<vmem>>, vector<1x64x16xf32>
    %358 = vector.shape_cast %357 : vector<1x64x16xf32> to vector<64x16xf32>
    %cst_107 = arith.constant dense<0.000000e+00> : vector<8x16xf32>
    %359 = tpu.matmul %353, %358, %cst_107 {dimension_numbers = #tpu.dot_dimension_numbers<[1], [0], [0], [1], [0, 0, 1, 1], [], []>} : vector<8x64xf32>, vector<64x16xf32>, vector<8x16xf32> -> vector<8x16xf32>
    %c1_108 = arith.constant 1 : index
    %c0_109 = arith.constant 0 : index
    %c0_110 = arith.constant 0 : index
    %360 = vector.load %arg10[%c1_108, %c0_109, %c0_110] : memref<2x64x64xf32, #tpu.memory_space<vmem>>, vector<1x64x64xf32>
    %361 = vector.shape_cast %360 : vector<1x64x64xf32> to vector<64x64xf32>
    %cst_111 = arith.constant dense<0.000000e+00> : vector<8x64xf32>
    %362 = tpu.matmul %353, %361, %cst_111 {dimension_numbers = #tpu.dot_dimension_numbers<[1], [0], [0], [1], [0, 0, 1, 1], [], []>} : vector<8x64xf32>, vector<64x64xf32>, vector<8x64xf32> -> vector<8x64xf32>
    %c1_112 = arith.constant 1 : index
    %c0_113 = arith.constant 0 : index
    %c0_114 = arith.constant 0 : index
    %363 = vector.load %arg11[%c1_112, %c0_113, %c0_114] : memref<2x1x64xf32, #tpu.memory_space<vmem>>, vector<1x1x64xf32>
    %364 = vector.shape_cast %363 : vector<1x1x64xf32> to vector<1x64xf32>
    %365 = vector.broadcast %364 : vector<1x64xf32> to vector<8x64xf32>
    %366 = arith.addf %362, %365 : vector<8x64xf32>
    %cst_115 = arith.constant 2.000000e+01 : f32
    %367 = vector.broadcast %cst_115 : f32 to vector<8x64xf32>
    %368 = arith.cmpf ole, %366, %367 : vector<8x64xf32>
    %cst_116 = arith.constant 2.000000e+01 : f32
    %369 = vector.broadcast %cst_116 : f32 to vector<8x64xf32>
    %370 = arith.minimumf %366, %369 : vector<8x64xf32>
    %371 = math.exp %370 : vector<8x64xf32>
    %372 = math.log1p %371 : vector<8x64xf32>
    %373 = arith.select %368, %372, %366 : vector<8x64xi1>, vector<8x64xf32>
    %c1_117 = arith.constant 1 : index
    %c0_118 = arith.constant 0 : index
    %c0_119 = arith.constant 0 : index
    %374 = vector.load %arg12[%c1_117, %c0_118, %c0_119] : memref<2x16x64xf32, #tpu.memory_space<vmem>>, vector<1x16x64xf32>
    %375 = vector.shape_cast %374 : vector<1x16x64xf32> to vector<16x64xf32>
    %376 = vector.shape_cast %373 : vector<8x64xf32> to vector<8x1x64xf32>
    %377 = vector.shape_cast %375 : vector<16x64xf32> to vector<1x16x64xf32>
    %378 = vector.broadcast %376 : vector<8x1x64xf32> to vector<8x16x64xf32>
    %379 = vector.broadcast %377 : vector<1x16x64xf32> to vector<8x16x64xf32>
    %380 = arith.mulf %378, %379 : vector<8x16x64xf32>
    %381 = math.exp %380 : vector<8x16x64xf32>
    %382 = arith.mulf %373, %353 : vector<8x64xf32>
    %383 = vector.shape_cast %382 : vector<8x64xf32> to vector<8x1x64xf32>
    %384 = vector.shape_cast %356 : vector<8x16xf32> to vector<8x16x1xf32>
    %385 = vector.broadcast %383 : vector<8x1x64xf32> to vector<8x16x64xf32>
    %386 = vector.broadcast %384 : vector<8x16x1xf32> to vector<8x16x64xf32>
    %387 = arith.mulf %385, %386 : vector<8x16x64xf32>
    %388 = vector.shape_cast %359 : vector<8x16xf32> to vector<8x16x1xf32>
    %cst_120 = arith.constant 0.000000e+00 : f32
    %389 = vector.broadcast %cst_120 : f32 to vector<16x64xf32>
    %cst_121 = arith.constant 0.000000e+00 : f32
    %390 = vector.broadcast %cst_121 : f32 to vector<8x64xf32>
    %391 = vector.extract_strided_slice %381 {offsets = [0, 0, 0], sizes = [1, 16, 64], strides = [1, 1, 1]} : vector<8x16x64xf32> to vector<1x16x64xf32>
    %392 = vector.shape_cast %391 : vector<1x16x64xf32> to vector<16x64xf32>
    %393 = arith.mulf %392, %389 : vector<16x64xf32>
    %394 = vector.extract_strided_slice %387 {offsets = [0, 0, 0], sizes = [1, 16, 64], strides = [1, 1, 1]} : vector<8x16x64xf32> to vector<1x16x64xf32>
    %395 = vector.shape_cast %394 : vector<1x16x64xf32> to vector<16x64xf32>
    %396 = arith.addf %393, %395 : vector<16x64xf32>
    %397 = vector.extract_strided_slice %388 {offsets = [0, 0, 0], sizes = [1, 16, 1], strides = [1, 1, 1]} : vector<8x16x1xf32> to vector<1x16x1xf32>
    %398 = vector.shape_cast %397 : vector<1x16x1xf32> to vector<16x1xf32>
    %399 = vector.broadcast %398 : vector<16x1xf32> to vector<16x64xf32>
    %400 = arith.mulf %399, %396 : vector<16x64xf32>
    %cst_122 = arith.constant dense<0.000000e+00> : vector<64xf32>
    %401 = vector.multi_reduction <add>, %400, %cst_122 [0] : vector<16x64xf32> to vector<64xf32>
    %402 = vector.shape_cast %401 : vector<64xf32> to vector<1x64xf32>
    %c0_i32_123 = arith.constant 0 : i32
    %403 = vector.broadcast %c0_i32_123 : i32 to vector<8x1xi32>
    %404 = arith.cmpi eq, %2, %403 : vector<8x1xi32>
    %cst_124 = arith.constant 0.000000e+00 : f32
    %405 = vector.shape_cast %404 : vector<8x1xi1> to vector<8x1xi1>
    %406 = vector.broadcast %405 : vector<8x1xi1> to vector<8x64xi1>
    %407 = vector.shape_cast %402 : vector<1x64xf32> to vector<1x64xf32>
    %408 = vector.broadcast %407 : vector<1x64xf32> to vector<8x64xf32>
    %409 = vector.broadcast %cst_124 : f32 to vector<8x64xf32>
    %410 = arith.select %406, %408, %409 : vector<8x64xi1>, vector<8x64xf32>
    %411 = arith.addf %390, %410 : vector<8x64xf32>
    %412 = vector.extract_strided_slice %381 {offsets = [1, 0, 0], sizes = [1, 16, 64], strides = [1, 1, 1]} : vector<8x16x64xf32> to vector<1x16x64xf32>
    %413 = vector.shape_cast %412 : vector<1x16x64xf32> to vector<16x64xf32>
    %414 = arith.mulf %413, %396 : vector<16x64xf32>
    %415 = vector.extract_strided_slice %387 {offsets = [1, 0, 0], sizes = [1, 16, 64], strides = [1, 1, 1]} : vector<8x16x64xf32> to vector<1x16x64xf32>
    %416 = vector.shape_cast %415 : vector<1x16x64xf32> to vector<16x64xf32>
    %417 = arith.addf %414, %416 : vector<16x64xf32>
    %418 = vector.extract_strided_slice %388 {offsets = [1, 0, 0], sizes = [1, 16, 1], strides = [1, 1, 1]} : vector<8x16x1xf32> to vector<1x16x1xf32>
    %419 = vector.shape_cast %418 : vector<1x16x1xf32> to vector<16x1xf32>
    %420 = vector.broadcast %419 : vector<16x1xf32> to vector<16x64xf32>
    %421 = arith.mulf %420, %417 : vector<16x64xf32>
    %cst_125 = arith.constant dense<0.000000e+00> : vector<64xf32>
    %422 = vector.multi_reduction <add>, %421, %cst_125 [0] : vector<16x64xf32> to vector<64xf32>
    %423 = vector.shape_cast %422 : vector<64xf32> to vector<1x64xf32>
    %c1_i32_126 = arith.constant 1 : i32
    %424 = vector.broadcast %c1_i32_126 : i32 to vector<8x1xi32>
    %425 = arith.cmpi eq, %2, %424 : vector<8x1xi32>
    %cst_127 = arith.constant 0.000000e+00 : f32
    %426 = vector.shape_cast %425 : vector<8x1xi1> to vector<8x1xi1>
    %427 = vector.broadcast %426 : vector<8x1xi1> to vector<8x64xi1>
    %428 = vector.shape_cast %423 : vector<1x64xf32> to vector<1x64xf32>
    %429 = vector.broadcast %428 : vector<1x64xf32> to vector<8x64xf32>
    %430 = vector.broadcast %cst_127 : f32 to vector<8x64xf32>
    %431 = arith.select %427, %429, %430 : vector<8x64xi1>, vector<8x64xf32>
    %432 = arith.addf %411, %431 : vector<8x64xf32>
    %433 = vector.extract_strided_slice %381 {offsets = [2, 0, 0], sizes = [1, 16, 64], strides = [1, 1, 1]} : vector<8x16x64xf32> to vector<1x16x64xf32>
    %434 = vector.shape_cast %433 : vector<1x16x64xf32> to vector<16x64xf32>
    %435 = arith.mulf %434, %417 : vector<16x64xf32>
    %436 = vector.extract_strided_slice %387 {offsets = [2, 0, 0], sizes = [1, 16, 64], strides = [1, 1, 1]} : vector<8x16x64xf32> to vector<1x16x64xf32>
    %437 = vector.shape_cast %436 : vector<1x16x64xf32> to vector<16x64xf32>
    %438 = arith.addf %435, %437 : vector<16x64xf32>
    %439 = vector.extract_strided_slice %388 {offsets = [2, 0, 0], sizes = [1, 16, 1], strides = [1, 1, 1]} : vector<8x16x1xf32> to vector<1x16x1xf32>
    %440 = vector.shape_cast %439 : vector<1x16x1xf32> to vector<16x1xf32>
    %441 = vector.broadcast %440 : vector<16x1xf32> to vector<16x64xf32>
    %442 = arith.mulf %441, %438 : vector<16x64xf32>
    %cst_128 = arith.constant dense<0.000000e+00> : vector<64xf32>
    %443 = vector.multi_reduction <add>, %442, %cst_128 [0] : vector<16x64xf32> to vector<64xf32>
    %444 = vector.shape_cast %443 : vector<64xf32> to vector<1x64xf32>
    %c2_i32_129 = arith.constant 2 : i32
    %445 = vector.broadcast %c2_i32_129 : i32 to vector<8x1xi32>
    %446 = arith.cmpi eq, %2, %445 : vector<8x1xi32>
    %cst_130 = arith.constant 0.000000e+00 : f32
    %447 = vector.shape_cast %446 : vector<8x1xi1> to vector<8x1xi1>
    %448 = vector.broadcast %447 : vector<8x1xi1> to vector<8x64xi1>
    %449 = vector.shape_cast %444 : vector<1x64xf32> to vector<1x64xf32>
    %450 = vector.broadcast %449 : vector<1x64xf32> to vector<8x64xf32>
    %451 = vector.broadcast %cst_130 : f32 to vector<8x64xf32>
    %452 = arith.select %448, %450, %451 : vector<8x64xi1>, vector<8x64xf32>
    %453 = arith.addf %432, %452 : vector<8x64xf32>
    %454 = vector.extract_strided_slice %381 {offsets = [3, 0, 0], sizes = [1, 16, 64], strides = [1, 1, 1]} : vector<8x16x64xf32> to vector<1x16x64xf32>
    %455 = vector.shape_cast %454 : vector<1x16x64xf32> to vector<16x64xf32>
    %456 = arith.mulf %455, %438 : vector<16x64xf32>
    %457 = vector.extract_strided_slice %387 {offsets = [3, 0, 0], sizes = [1, 16, 64], strides = [1, 1, 1]} : vector<8x16x64xf32> to vector<1x16x64xf32>
    %458 = vector.shape_cast %457 : vector<1x16x64xf32> to vector<16x64xf32>
    %459 = arith.addf %456, %458 : vector<16x64xf32>
    %460 = vector.extract_strided_slice %388 {offsets = [3, 0, 0], sizes = [1, 16, 1], strides = [1, 1, 1]} : vector<8x16x1xf32> to vector<1x16x1xf32>
    %461 = vector.shape_cast %460 : vector<1x16x1xf32> to vector<16x1xf32>
    %462 = vector.broadcast %461 : vector<16x1xf32> to vector<16x64xf32>
    %463 = arith.mulf %462, %459 : vector<16x64xf32>
    %cst_131 = arith.constant dense<0.000000e+00> : vector<64xf32>
    %464 = vector.multi_reduction <add>, %463, %cst_131 [0] : vector<16x64xf32> to vector<64xf32>
    %465 = vector.shape_cast %464 : vector<64xf32> to vector<1x64xf32>
    %c3_i32_132 = arith.constant 3 : i32
    %466 = vector.broadcast %c3_i32_132 : i32 to vector<8x1xi32>
    %467 = arith.cmpi eq, %2, %466 : vector<8x1xi32>
    %cst_133 = arith.constant 0.000000e+00 : f32
    %468 = vector.shape_cast %467 : vector<8x1xi1> to vector<8x1xi1>
    %469 = vector.broadcast %468 : vector<8x1xi1> to vector<8x64xi1>
    %470 = vector.shape_cast %465 : vector<1x64xf32> to vector<1x64xf32>
    %471 = vector.broadcast %470 : vector<1x64xf32> to vector<8x64xf32>
    %472 = vector.broadcast %cst_133 : f32 to vector<8x64xf32>
    %473 = arith.select %469, %471, %472 : vector<8x64xi1>, vector<8x64xf32>
    %474 = arith.addf %453, %473 : vector<8x64xf32>
    %475 = vector.extract_strided_slice %381 {offsets = [4, 0, 0], sizes = [1, 16, 64], strides = [1, 1, 1]} : vector<8x16x64xf32> to vector<1x16x64xf32>
    %476 = vector.shape_cast %475 : vector<1x16x64xf32> to vector<16x64xf32>
    %477 = arith.mulf %476, %459 : vector<16x64xf32>
    %478 = vector.extract_strided_slice %387 {offsets = [4, 0, 0], sizes = [1, 16, 64], strides = [1, 1, 1]} : vector<8x16x64xf32> to vector<1x16x64xf32>
    %479 = vector.shape_cast %478 : vector<1x16x64xf32> to vector<16x64xf32>
    %480 = arith.addf %477, %479 : vector<16x64xf32>
    %481 = vector.extract_strided_slice %388 {offsets = [4, 0, 0], sizes = [1, 16, 1], strides = [1, 1, 1]} : vector<8x16x1xf32> to vector<1x16x1xf32>
    %482 = vector.shape_cast %481 : vector<1x16x1xf32> to vector<16x1xf32>
    %483 = vector.broadcast %482 : vector<16x1xf32> to vector<16x64xf32>
    %484 = arith.mulf %483, %480 : vector<16x64xf32>
    %cst_134 = arith.constant dense<0.000000e+00> : vector<64xf32>
    %485 = vector.multi_reduction <add>, %484, %cst_134 [0] : vector<16x64xf32> to vector<64xf32>
    %486 = vector.shape_cast %485 : vector<64xf32> to vector<1x64xf32>
    %c4_i32_135 = arith.constant 4 : i32
    %487 = vector.broadcast %c4_i32_135 : i32 to vector<8x1xi32>
    %488 = arith.cmpi eq, %2, %487 : vector<8x1xi32>
    %cst_136 = arith.constant 0.000000e+00 : f32
    %489 = vector.shape_cast %488 : vector<8x1xi1> to vector<8x1xi1>
    %490 = vector.broadcast %489 : vector<8x1xi1> to vector<8x64xi1>
    %491 = vector.shape_cast %486 : vector<1x64xf32> to vector<1x64xf32>
    %492 = vector.broadcast %491 : vector<1x64xf32> to vector<8x64xf32>
    %493 = vector.broadcast %cst_136 : f32 to vector<8x64xf32>
    %494 = arith.select %490, %492, %493 : vector<8x64xi1>, vector<8x64xf32>
    %495 = arith.addf %474, %494 : vector<8x64xf32>
    %496 = vector.extract_strided_slice %381 {offsets = [5, 0, 0], sizes = [1, 16, 64], strides = [1, 1, 1]} : vector<8x16x64xf32> to vector<1x16x64xf32>
    %497 = vector.shape_cast %496 : vector<1x16x64xf32> to vector<16x64xf32>
    %498 = arith.mulf %497, %480 : vector<16x64xf32>
    %499 = vector.extract_strided_slice %387 {offsets = [5, 0, 0], sizes = [1, 16, 64], strides = [1, 1, 1]} : vector<8x16x64xf32> to vector<1x16x64xf32>
    %500 = vector.shape_cast %499 : vector<1x16x64xf32> to vector<16x64xf32>
    %501 = arith.addf %498, %500 : vector<16x64xf32>
    %502 = vector.extract_strided_slice %388 {offsets = [5, 0, 0], sizes = [1, 16, 1], strides = [1, 1, 1]} : vector<8x16x1xf32> to vector<1x16x1xf32>
    %503 = vector.shape_cast %502 : vector<1x16x1xf32> to vector<16x1xf32>
    %504 = vector.broadcast %503 : vector<16x1xf32> to vector<16x64xf32>
    %505 = arith.mulf %504, %501 : vector<16x64xf32>
    %cst_137 = arith.constant dense<0.000000e+00> : vector<64xf32>
    %506 = vector.multi_reduction <add>, %505, %cst_137 [0] : vector<16x64xf32> to vector<64xf32>
    %507 = vector.shape_cast %506 : vector<64xf32> to vector<1x64xf32>
    %c5_i32_138 = arith.constant 5 : i32
    %508 = vector.broadcast %c5_i32_138 : i32 to vector<8x1xi32>
    %509 = arith.cmpi eq, %2, %508 : vector<8x1xi32>
    %cst_139 = arith.constant 0.000000e+00 : f32
    %510 = vector.shape_cast %509 : vector<8x1xi1> to vector<8x1xi1>
    %511 = vector.broadcast %510 : vector<8x1xi1> to vector<8x64xi1>
    %512 = vector.shape_cast %507 : vector<1x64xf32> to vector<1x64xf32>
    %513 = vector.broadcast %512 : vector<1x64xf32> to vector<8x64xf32>
    %514 = vector.broadcast %cst_139 : f32 to vector<8x64xf32>
    %515 = arith.select %511, %513, %514 : vector<8x64xi1>, vector<8x64xf32>
    %516 = arith.addf %495, %515 : vector<8x64xf32>
    %517 = vector.extract_strided_slice %381 {offsets = [6, 0, 0], sizes = [1, 16, 64], strides = [1, 1, 1]} : vector<8x16x64xf32> to vector<1x16x64xf32>
    %518 = vector.shape_cast %517 : vector<1x16x64xf32> to vector<16x64xf32>
    %519 = arith.mulf %518, %501 : vector<16x64xf32>
    %520 = vector.extract_strided_slice %387 {offsets = [6, 0, 0], sizes = [1, 16, 64], strides = [1, 1, 1]} : vector<8x16x64xf32> to vector<1x16x64xf32>
    %521 = vector.shape_cast %520 : vector<1x16x64xf32> to vector<16x64xf32>
    %522 = arith.addf %519, %521 : vector<16x64xf32>
    %523 = vector.extract_strided_slice %388 {offsets = [6, 0, 0], sizes = [1, 16, 1], strides = [1, 1, 1]} : vector<8x16x1xf32> to vector<1x16x1xf32>
    %524 = vector.shape_cast %523 : vector<1x16x1xf32> to vector<16x1xf32>
    %525 = vector.broadcast %524 : vector<16x1xf32> to vector<16x64xf32>
    %526 = arith.mulf %525, %522 : vector<16x64xf32>
    %cst_140 = arith.constant dense<0.000000e+00> : vector<64xf32>
    %527 = vector.multi_reduction <add>, %526, %cst_140 [0] : vector<16x64xf32> to vector<64xf32>
    %528 = vector.shape_cast %527 : vector<64xf32> to vector<1x64xf32>
    %c6_i32_141 = arith.constant 6 : i32
    %529 = vector.broadcast %c6_i32_141 : i32 to vector<8x1xi32>
    %530 = arith.cmpi eq, %2, %529 : vector<8x1xi32>
    %cst_142 = arith.constant 0.000000e+00 : f32
    %531 = vector.shape_cast %530 : vector<8x1xi1> to vector<8x1xi1>
    %532 = vector.broadcast %531 : vector<8x1xi1> to vector<8x64xi1>
    %533 = vector.shape_cast %528 : vector<1x64xf32> to vector<1x64xf32>
    %534 = vector.broadcast %533 : vector<1x64xf32> to vector<8x64xf32>
    %535 = vector.broadcast %cst_142 : f32 to vector<8x64xf32>
    %536 = arith.select %532, %534, %535 : vector<8x64xi1>, vector<8x64xf32>
    %537 = arith.addf %516, %536 : vector<8x64xf32>
    %538 = vector.extract_strided_slice %381 {offsets = [7, 0, 0], sizes = [1, 16, 64], strides = [1, 1, 1]} : vector<8x16x64xf32> to vector<1x16x64xf32>
    %539 = vector.shape_cast %538 : vector<1x16x64xf32> to vector<16x64xf32>
    %540 = arith.mulf %539, %522 : vector<16x64xf32>
    %541 = vector.extract_strided_slice %387 {offsets = [7, 0, 0], sizes = [1, 16, 64], strides = [1, 1, 1]} : vector<8x16x64xf32> to vector<1x16x64xf32>
    %542 = vector.shape_cast %541 : vector<1x16x64xf32> to vector<16x64xf32>
    %543 = arith.addf %540, %542 : vector<16x64xf32>
    %544 = vector.extract_strided_slice %388 {offsets = [7, 0, 0], sizes = [1, 16, 1], strides = [1, 1, 1]} : vector<8x16x1xf32> to vector<1x16x1xf32>
    %545 = vector.shape_cast %544 : vector<1x16x1xf32> to vector<16x1xf32>
    %546 = vector.broadcast %545 : vector<16x1xf32> to vector<16x64xf32>
    %547 = arith.mulf %546, %543 : vector<16x64xf32>
    %cst_143 = arith.constant dense<0.000000e+00> : vector<64xf32>
    %548 = vector.multi_reduction <add>, %547, %cst_143 [0] : vector<16x64xf32> to vector<64xf32>
    %549 = vector.shape_cast %548 : vector<64xf32> to vector<1x64xf32>
    %c7_i32_144 = arith.constant 7 : i32
    %550 = vector.broadcast %c7_i32_144 : i32 to vector<8x1xi32>
    %551 = arith.cmpi eq, %2, %550 : vector<8x1xi32>
    %cst_145 = arith.constant 0.000000e+00 : f32
    %552 = vector.shape_cast %551 : vector<8x1xi1> to vector<8x1xi1>
    %553 = vector.broadcast %552 : vector<8x1xi1> to vector<8x64xi1>
    %554 = vector.shape_cast %549 : vector<1x64xf32> to vector<1x64xf32>
    %555 = vector.broadcast %554 : vector<1x64xf32> to vector<8x64xf32>
    %556 = vector.broadcast %cst_145 : f32 to vector<8x64xf32>
    %557 = arith.select %553, %555, %556 : vector<8x64xi1>, vector<8x64xf32>
    %558 = arith.addf %537, %557 : vector<8x64xf32>
    %c1_146 = arith.constant 1 : index
    %c0_147 = arith.constant 0 : index
    %c0_148 = arith.constant 0 : index
    %559 = vector.load %arg13[%c1_146, %c0_147, %c0_148] : memref<2x1x64xf32, #tpu.memory_space<vmem>>, vector<1x1x64xf32>
    %560 = vector.shape_cast %559 : vector<1x1x64xf32> to vector<1x64xf32>
    %561 = vector.broadcast %560 : vector<1x64xf32> to vector<8x64xf32>
    %562 = arith.mulf %353, %561 : vector<8x64xf32>
    %563 = arith.addf %558, %562 : vector<8x64xf32>
    %564 = arith.negf %320 : vector<8x64xf32>
    %565 = math.exp %564 : vector<8x64xf32>
    %cst_149 = arith.constant 1.000000e+00 : f32
    %566 = vector.broadcast %cst_149 : f32 to vector<8x64xf32>
    %567 = arith.addf %566, %565 : vector<8x64xf32>
    %568 = arith.divf %566, %567 : vector<8x64xf32>
    %569 = arith.mulf %320, %568 : vector<8x64xf32>
    %570 = arith.mulf %563, %569 : vector<8x64xf32>
    %c1_150 = arith.constant 1 : index
    %c0_151 = arith.constant 0 : index
    %c0_152 = arith.constant 0 : index
    %571 = vector.load %arg14[%c1_150, %c0_151, %c0_152] : memref<2x64x32xf32, #tpu.memory_space<vmem>>, vector<1x64x32xf32>
    %572 = vector.shape_cast %571 : vector<1x64x32xf32> to vector<64x32xf32>
    %cst_153 = arith.constant dense<0.000000e+00> : vector<8x32xf32>
    %573 = tpu.matmul %570, %572, %cst_153 {dimension_numbers = #tpu.dot_dimension_numbers<[1], [0], [0], [1], [0, 0, 1, 1], [], []>} : vector<8x64xf32>, vector<64x32xf32>, vector<8x32xf32> -> vector<8x32xf32>
    %574 = arith.addf %573, %288 : vector<8x32xf32>
    %c0_154 = arith.constant 0 : index
    %c0_155 = arith.constant 0 : index
    %575 = vector.load %arg15[%c0_154, %c0_155] : memref<1x32xf32, #tpu.memory_space<vmem>>, vector<1x32xf32>
    %c0_156 = arith.constant 0 : index
    %c0_157 = arith.constant 0 : index
    %576 = vector.load %arg16[%c0_156, %c0_157] : memref<1x32xf32, #tpu.memory_space<vmem>>, vector<1x32xf32>
    %cst_158 = arith.constant dense<0.000000e+00> : vector<8xf32>
    %577 = vector.multi_reduction <add>, %574, %cst_158 [1] : vector<8x32xf32> to vector<8xf32>
    %578 = vector.shape_cast %577 : vector<8xf32> to vector<8x1xf32>
    %cst_159 = arith.constant 3.200000e+01 : f32
    %579 = vector.broadcast %cst_159 : f32 to vector<8x1xf32>
    %580 = arith.divf %578, %579 : vector<8x1xf32>
    %581 = vector.broadcast %580 : vector<8x1xf32> to vector<8x32xf32>
    %582 = arith.subf %574, %581 : vector<8x32xf32>
    %583 = arith.mulf %582, %582 : vector<8x32xf32>
    %cst_160 = arith.constant dense<0.000000e+00> : vector<8xf32>
    %584 = vector.multi_reduction <add>, %583, %cst_160 [1] : vector<8x32xf32> to vector<8xf32>
    %585 = vector.shape_cast %584 : vector<8xf32> to vector<8x1xf32>
    %cst_161 = arith.constant 3.200000e+01 : f32
    %586 = vector.broadcast %cst_161 : f32 to vector<8x1xf32>
    %587 = arith.divf %585, %586 : vector<8x1xf32>
    %588 = vector.broadcast %580 : vector<8x1xf32> to vector<8x32xf32>
    %589 = arith.subf %574, %588 : vector<8x32xf32>
    %cst_162 = arith.constant 9.99999974E-6 : f32
    %590 = vector.broadcast %cst_162 : f32 to vector<8x1xf32>
    %591 = arith.addf %587, %590 : vector<8x1xf32>
    %592 = math.rsqrt %591 : vector<8x1xf32>
    %593 = vector.broadcast %592 : vector<8x1xf32> to vector<8x32xf32>
    %594 = arith.mulf %589, %593 : vector<8x32xf32>
    %595 = vector.broadcast %575 : vector<1x32xf32> to vector<8x32xf32>
    %596 = arith.mulf %594, %595 : vector<8x32xf32>
    %597 = vector.broadcast %576 : vector<1x32xf32> to vector<8x32xf32>
    %598 = arith.addf %596, %597 : vector<8x32xf32>
    %c0_163 = arith.constant 0 : index
    %c0_164 = arith.constant 0 : index
    %c0_165 = arith.constant 0 : index
    %599 = vector.load %arg17[%c0_163, %c0_164, %c0_165] : memref<1x8x32xf32, #tpu.memory_space<vmem>>, vector<1x8x32xf32>
    %600 = vector.shape_cast %599 : vector<1x8x32xf32> to vector<8x32xf32>
    %601 = vector.shape_cast %598 : vector<8x32xf32> to vector<1x8x32xf32>
    tpu.vector_store %arg17[%c0_163, %c0_164, %c0_165], %601 {strides = array<i32>} : memref<1x8x32xf32, #tpu.memory_space<vmem>>, vector<1x8x32xf32>,
    return
  }
  func.func @transform_0(%arg0: i32) -> (i32, i32, i32) {
    %c0_i32 = arith.constant 0 : i32
    %c0_i32_0 = arith.constant 0 : i32
    %c0_i32_1 = arith.constant 0 : i32
    return %arg0, %c0_i32, %c0_i32_0 : i32, i32, i32
  }
  func.func @transform_1(%arg0: i32) -> (i32, i32, i32) {
    %c0_i32 = arith.constant 0 : i32
    %c0_i32_0 = arith.constant 0 : i32
    %c0_i32_1 = arith.constant 0 : i32
    %c0_i32_2 = arith.constant 0 : i32
    return %c0_i32, %c0_i32_0, %c0_i32_1 : i32, i32, i32
  }
  func.func @transform_2(%arg0: i32) -> (i32, i32, i32) {
    %c0_i32 = arith.constant 0 : i32
    %c0_i32_0 = arith.constant 0 : i32
    %c0_i32_1 = arith.constant 0 : i32
    %c0_i32_2 = arith.constant 0 : i32
    return %c0_i32, %c0_i32_0, %c0_i32_1 : i32, i32, i32
  }
  func.func @transform_3(%arg0: i32) -> (i32, i32, i32) {
    %c0_i32 = arith.constant 0 : i32
    %c0_i32_0 = arith.constant 0 : i32
    %c0_i32_1 = arith.constant 0 : i32
    %c0_i32_2 = arith.constant 0 : i32
    return %c0_i32, %c0_i32_0, %c0_i32_1 : i32, i32, i32
  }
  func.func @transform_4(%arg0: i32) -> (i32, i32, i32) {
    %c0_i32 = arith.constant 0 : i32
    %c0_i32_0 = arith.constant 0 : i32
    %c0_i32_1 = arith.constant 0 : i32
    %c0_i32_2 = arith.constant 0 : i32
    return %c0_i32, %c0_i32_0, %c0_i32_1 : i32, i32, i32
  }
  func.func @transform_5(%arg0: i32) -> (i32, i32, i32) {
    %c0_i32 = arith.constant 0 : i32
    %c0_i32_0 = arith.constant 0 : i32
    %c0_i32_1 = arith.constant 0 : i32
    %c0_i32_2 = arith.constant 0 : i32
    return %c0_i32, %c0_i32_0, %c0_i32_1 : i32, i32, i32
  }
  func.func @transform_6(%arg0: i32) -> (i32, i32, i32) {
    %c0_i32 = arith.constant 0 : i32
    %c0_i32_0 = arith.constant 0 : i32
    %c0_i32_1 = arith.constant 0 : i32
    %c0_i32_2 = arith.constant 0 : i32
    return %c0_i32, %c0_i32_0, %c0_i32_1 : i32, i32, i32
  }
  func.func @transform_7(%arg0: i32) -> (i32, i32, i32) {
    %c0_i32 = arith.constant 0 : i32
    %c0_i32_0 = arith.constant 0 : i32
    %c0_i32_1 = arith.constant 0 : i32
    %c0_i32_2 = arith.constant 0 : i32
    return %c0_i32, %c0_i32_0, %c0_i32_1 : i32, i32, i32
  }
  func.func @transform_8(%arg0: i32) -> (i32, i32, i32) {
    %c0_i32 = arith.constant 0 : i32
    %c0_i32_0 = arith.constant 0 : i32
    %c0_i32_1 = arith.constant 0 : i32
    %c0_i32_2 = arith.constant 0 : i32
    return %c0_i32, %c0_i32_0, %c0_i32_1 : i32, i32, i32
  }
  func.func @transform_9(%arg0: i32) -> (i32, i32, i32) {
    %c0_i32 = arith.constant 0 : i32
    %c0_i32_0 = arith.constant 0 : i32
    %c0_i32_1 = arith.constant 0 : i32
    %c0_i32_2 = arith.constant 0 : i32
    return %c0_i32, %c0_i32_0, %c0_i32_1 : i32, i32, i32
  }
  func.func @transform_10(%arg0: i32) -> (i32, i32, i32) {
    %c0_i32 = arith.constant 0 : i32
    %c0_i32_0 = arith.constant 0 : i32
    %c0_i32_1 = arith.constant 0 : i32
    %c0_i32_2 = arith.constant 0 : i32
    return %c0_i32, %c0_i32_0, %c0_i32_1 : i32, i32, i32
  }
  func.func @transform_11(%arg0: i32) -> (i32, i32, i32) {
    %c0_i32 = arith.constant 0 : i32
    %c0_i32_0 = arith.constant 0 : i32
    %c0_i32_1 = arith.constant 0 : i32
    %c0_i32_2 = arith.constant 0 : i32
    return %c0_i32, %c0_i32_0, %c0_i32_1 : i32, i32, i32
  }
  func.func @transform_12(%arg0: i32) -> (i32, i32, i32) {
    %c0_i32 = arith.constant 0 : i32
    %c0_i32_0 = arith.constant 0 : i32
    %c0_i32_1 = arith.constant 0 : i32
    %c0_i32_2 = arith.constant 0 : i32
    return %c0_i32, %c0_i32_0, %c0_i32_1 : i32, i32, i32
  }
  func.func @transform_13(%arg0: i32) -> (i32, i32, i32) {
    %c0_i32 = arith.constant 0 : i32
    %c0_i32_0 = arith.constant 0 : i32
    %c0_i32_1 = arith.constant 0 : i32
    %c0_i32_2 = arith.constant 0 : i32
    return %c0_i32, %c0_i32_0, %c0_i32_1 : i32, i32, i32
  }
  func.func @transform_14(%arg0: i32) -> (i32, i32) {
    %c0_i32 = arith.constant 0 : i32
    %c0_i32_0 = arith.constant 0 : i32
    %c0_i32_1 = arith.constant 0 : i32
    return %c0_i32, %c0_i32_0 : i32, i32
  }
  func.func @transform_15(%arg0: i32) -> (i32, i32) {
    %c0_i32 = arith.constant 0 : i32
    %c0_i32_0 = arith.constant 0 : i32
    %c0_i32_1 = arith.constant 0 : i32
    return %c0_i32, %c0_i32_0 : i32, i32
  }
  func.func @transform_16(%arg0: i32) -> (i32, i32, i32) {
    %c0_i32 = arith.constant 0 : i32
    %c0_i32_0 = arith.constant 0 : i32
    %c0_i32_1 = arith.constant 0 : i32
    return %arg0, %c0_i32, %c0_i32_0 : i32, i32, i32
  }
}

</mosaic_0001>

<bundles_post_ra>
// kernel: tpu_custom_call.1
= control target key start
LH: loop header
LB: loop body
LE: loop exit
PB: predicated region body
PF: predicated region fallthrough
CT: control target
= control target key end

     0   :  { %s4618_s0 = inlined_call_operand.vmem [shape: f32[2,8,32], index: 0, kind: input, shape index: {}]   ;;  %s4619_s1 = inlined_call_operand.vmem [shape: f32[2,1,32], index: 1, kind: input, shape index: {}]   ;;  %s4620_s2 = inlined_call_operand.vmem [shape: f32[2,1,32], index: 2, kind: input, shape index: {}]   ;;  %s4621_s3 = inlined_call_operand.vmem [shape: f32[2,32,64], index: 3, kind: input, shape index: {}]   ;;  %s4622_s4 = inlined_call_operand.vmem [shape: f32[2,32,64], index: 4, kind: input, shape index: {}]   ;;  %s4623_s5 = inlined_call_operand.vmem [shape: f32[2,4,64], index: 5, kind: input, shape index: {}]   ;;  %s4624_s6 = inlined_call_operand.vmem [shape: f32[2,1,64], index: 6, kind: input, shape index: {}]   ;;  %s4625_s7 = inlined_call_operand.vmem [shape: f32[2,64,16], index: 7, kind: input, shape index: {}]   ;;  %s4626_s8 = inlined_call_operand.vmem [shape: f32[2,64,16], index: 8, kind: input, shape index: {}]   ;;  %s4627_s9 = inlined_call_operand.vmem [shape: f32[2,64,64], index: 9, kind: input, shape index: {}]   ;;  %s4628_s10 = inlined_call_operand.vmem [shape: f32[2,1,64], index: 10, kind: input, shape index: {}]   ;;  %s4629_s11 = inlined_call_operand.vmem [shape: f32[2,16,64], index: 11, kind: input, shape index: {}]   ;;  %s4630_s12 = inlined_call_operand.vmem [shape: f32[2,1,64], index: 12, kind: input, shape index: {}]   ;;  %s4631_s13 = inlined_call_operand.vmem [shape: f32[2,64,32], index: 13, kind: input, shape index: {}]   ;;  %s4632_s14 = inlined_call_operand.vmem [shape: f32[1,32], index: 14, kind: input, shape index: {}]   ;;  %s4633_s15 = inlined_call_operand.vmem [shape: f32[1,32], index: 15, kind: input, shape index: {}]   ;;  %s4634_s16 = inlined_call_operand.hbm [shape: f32[2,8,32], index: 16, kind: output, shape index: {}]  }
   0x1   :  { %4640 = sst [smem:[#allocation10_spill]] %s4618_s0 }
   0x2   :  { %4641 = sst [smem:[#allocation11_spill]] %s4619_s1 }
   0x3   :  { %21 = vsyncpa [#allocation3], 0 }
   0x4   :  { %23 = vsyncpa [#allocation3 + $0x1], 0  ;;  %s3771_s21 = smov 0   ;;  %s3773_s22 = smov 0  }
   0x5   :  { %s3775_s23 = smov 0   ;;  %s3777_s24 = smov 0  }
   0x6 LB: > { %4642 = sst [smem:[#allocation5_spill]] %s3667_s21  ;;  %s3792_s25 = sadd.s32 4294967295, %s3679_s24   ;;  %s3679_s24 = sphi %s3777_s24, %s4653_s24   ;;  %s3675_s23 = sphi %s3775_s23, %s4655_s23   ;;  %s3671_s22 = sphi %s3773_s22, %s4657_s22   ;;  %s3667_s21 = sphi %s3771_s21, %s4656_s21  }
   0x7   : > { %4643 = sst [smem:[#allocation6_spill]] %s3675_s23  ;;  %s2985_s26 = sadd.s32 4294967294, %s3679_s24  }
   0x8   : > { %s3796_s27 = sadd.s32 1, %s3679_s24   ;;  %s377_s28 = sadd.s32 1, %s3675_s23 }
   0x9   : > { %4644 = sst [smem:[#allocation7_spill]] %s3796_s27  ;;  %s374_s29 = ssub.s32 %s3679_s24, %s3796_s27 }
   0xa   : > { %p387_p0 = scmp.ne.s32.totalorder %s3675_s23, %s3671_s22  ;;  %p375_p1 = scmp.eq.s32.totalorder %s374_s29, 0 }
   0xb   : > { %p388_p2 = scmp.eq.s32.totalorder %s3792_s25, 1  ;;  %p393_p3 = scmp.ne.s32.totalorder %s3671_s22, %s3667_s21 }
   0xc   : > { %p394_p4 = scmp.eq.s32.totalorder %s2985_s26, 1  ;;  %p2988_p7 = scmp.ge.s32.totalorder %s3679_s24, 1 }
   0xd   : > { %s3807_s30 = scalar_select %p375_p1, %s3675_s23, %s377_s28  }
   0xe   : > { %p3809_p5 = por %p388_p2, %p387_p0  ;;  %p3813_p6 = por %p394_p4, %p393_p3 }
   0xf   : > { %4645 = sst [smem:[#allocation8_spill]] %s3807_s30  ;;  %p464_p8 = scmp.lt.s32.totalorder %s3679_s24, 3 }
  0x10   : > { %s4647_s17 = scalar_select %p3813_p6, 1, 0 }
  0x11   : > { %p465_p9 = pnand %p2988_p7, %p464_p8 }
  0x12   : > { %4648 = sst [smem:[#allocation9_spill]] %s4647_s17  ;;  %p513_p10 = scmp.lt.s32.totalorder (!%p465_p9), %s3792_s25, 1  ;;  %vm522_vm0 = vcmask (!%p465_p9), 261120   ;;  %v551_v7 = vld [vmem:[%s4621_s3] sm:$0xff] (!%p465_p9)  ;;  %v552_v8 = vld [vmem:[%s4621_s3 + $0x8] sm:$0xff] (!%p465_p9)  ;;  %v3681_v10 = vmov (!%p465_p9), 0.0|0.0   ;;  %v518_v54 = vlaneseq (!%p465_p9) }
  0x13   : > { %468 = sbr.rel (%p465_p9) target bundleno = 2758 (0xac6), region = 84  ;;  %s4649_s28 = sld [smem:[#allocation10_spill]] (!%p465_p9)  ;;  %v628_v9 = vld [vmem:[%s4622_s4] sm:$0xff] (!%p465_p9)  ;;  %3359 = vmatprep.subr.bf16.mxu0 (!%p465_p9), %v3681_v10  ;;  %3365 = vmatprep.subr.bf16.mxu1 (!%p465_p9), %v3681_v10  ;;  %v3360_v11 = vpack.c.bf16 (!%p465_p9), %v552_v8, %v551_v7  ;;  %v629_v12 = vld [vmem:[%s4622_s4 + $0x8] sm:$0xff] (!%p465_p9)  ;;  %v553_v13 = vld [vmem:[%s4621_s3 + $0x10] sm:$0xff] (!%p465_p9)  ;;  %vm3682_vm1 = vmmov (!%p465_p9), 0  }
  0x14   : > { %v554_v14 = vld [vmem:[%s4621_s3 + $0x18] sm:$0xff] (!%p465_p9)  ;;  %v3366_v15 = vpack.c.bf16 (!%p465_p9), %v629_v12, %v628_v9  ;;  %v630_v16 = vld [vmem:[%s4622_s4 + $0x10] sm:$0xff] (!%p465_p9)  ;;  %v3683_v18 = vmov (!%p465_p9), 0.0   ;;  %s4650_s1 = sld [smem:[#allocation11_spill]] (!%p465_p9)  ;;  %v2992_v27 = vld [vmem:[%s4620_s2] ss:$0 sm:$0xff] (!%p465_p9) }
  0x15   : > { %v631_v17 = vld [vmem:[%s4622_s4 + $0x18] sm:$0xff] (!%p465_p9)  ;;  %3171 = vmatprep.mubr.msk.f32.mxu0 (!%p465_p9), %vm3682_vm1, %v3683_v18  ;;  %3182 = vmatprep.mubr.msk.f32.mxu1 (!%p465_p9), %vm3682_vm1, %v3683_v18  ;;  %v3363_v19 = vpack.c.bf16 (!%p465_p9), %v554_v14, %v553_v13  ;;  %v770_v30 = vld [vmem:[%s4625_s7] sm:$0xff] (!%p465_p9)  ;;  %v771_v31 = vld [vmem:[%s4625_s7 + $0x8] sm:$0xff] (!%p465_p9)  ;;  %v3931_v55 = vshrl.u32 (!%p465_p9), %v518_v54, 7  ;;  %vm706_vm2 = vcmask (!%p465_p9), 1042432   ;;  %vm729_vm3 = vcmask (!%p465_p9), 1046528  }
  0x16   : > { %3361 = vmatpush3.bf16.msra.mxu0 (!%p465_p9), %v3360_v11  ;;  %3367 = vmatpush3.bf16.msra.mxu1 (!%p465_p9), %v3366_v15  ;;  %v3369_v20 = vpack.c.bf16 (!%p465_p9), %v631_v17, %v630_v16  ;;  %v3372_v32 = vpack.c.bf16 (!%p465_p9), %v771_v31, %v770_v30  ;;  %v852_v33 = vld [vmem:[%s4626_s8] sm:$0xff] (!%p465_p9)  ;;  %v853_v34 = vld [vmem:[%s4626_s8 + $0x8] sm:$0xff] (!%p465_p9)  ;;  %v772_v36 = vld [vmem:[%s4625_s7 + $0x10] sm:$0xff] (!%p465_p9)  ;;  %vm743_vm4 = vcmask (!%p465_p9), 1045504   ;;  %vm757_vm5 = vcmask (!%p465_p9), 1044480   ;;  %s510_s20 = sand.u32 (!%p465_p9), 1, %s3671_s22  }
  0x17   : > { %3362 = vmatprep.subr.bf16.mxu0 (!%p465_p9), %v3681_v10  ;;  %3368 = vmatprep.subr.bf16.mxu1 (!%p465_p9), %v3681_v10  ;;  %v3384_v35 = vpack.c.bf16 (!%p465_p9), %v853_v34, %v852_v33  ;;  %v773_v37 = vld [vmem:[%s4625_s7 + $0x18] sm:$0xff] (!%p465_p9)  ;;  %v854_v38 = vld [vmem:[%s4626_s8 + $0x10] sm:$0xff] (!%p465_p9)  ;;  %v774_v41 = vld [vmem:[%s4625_s7 + $0x20] sm:$0xff] (!%p465_p9)  ;;  %v3934_v56 = vsub.s32 (!%p465_p9), 1, %v3931_v55  ;;  %v3937_v57 = vsub.s32 (!%p465_p9), 2, %v3931_v55  ;;  %v3940_v58 = vsub.s32 (!%p465_p9), 3, %v3931_v55 }
  0x18   : > { %v3375_v39 = vpack.c.bf16 (!%p465_p9), %v773_v37, %v772_v36  ;;  %v855_v40 = vld [vmem:[%s4626_s8 + $0x18] sm:$0xff] (!%p465_p9)  ;;  %v775_v42 = vld [vmem:[%s4625_s7 + $0x28] sm:$0xff] (!%p465_p9)  ;;  %v856_v44 = vld [vmem:[%s4626_s8 + $0x20] sm:$0xff] (!%p465_p9)  ;;  %v3946_v60 = vsub.s32 (!%p465_p9), 0, %v3931_v55  ;;  %vm778_vm6 = vcmask (!%p465_p9), 523264   ;;  %vm1487_vm9 = vcmp.eq.s32.totalorder (!%p465_p9), %v3931_v55, 1 }
  0x19   : > { %v3387_v43 = vpack.c.bf16 (!%p465_p9), %v855_v40, %v854_v38  ;;  %v857_v45 = vld [vmem:[%s4626_s8 + $0x28] sm:$0xff] (!%p465_p9)  ;;  %v3378_v46 = vpack.c.bf16 (!%p465_p9), %v775_v42, %v774_v41  ;;  %v776_v48 = vld [vmem:[%s4625_s7 + $0x30] sm:$0xff] (!%p465_p9)  ;;  %v777_v49 = vld [vmem:[%s4625_s7 + $0x38] sm:$0xff] (!%p465_p9)  ;;  %vm1467_vm10 = vcmp.eq.s32.totalorder (!%p465_p9), %v3931_v55, 0  ;;  %vm1507_vm11 = vcmp.eq.s32.totalorder (!%p465_p9), %v3931_v55, 2  ;;  %s3068_s17 = sshll.u32 (!%p465_p9), %s3792_s25, 7 }
  0x1a   : > { %s514_s18 = scalar_select %p513_p10, %s3792_s25, 1  ;;  %3364 = vmatpush3.bf16.msra.mxu0 %v3363_v19  ;;  %3370 = vmatpush3.bf16.msra.mxu1 %v3369_v20  ;;  %v2991_v25 = vld [vmem:[%s4650_s1] ss:$0 sm:$0xff]  ;;  %v3390_v47 = vpack.c.bf16 %v857_v45, %v856_v44  ;;  %v858_v50 = vld [vmem:[%s4626_s8 + $0x30] sm:$0xff]  ;;  %v859_v51 = vld [vmem:[%s4626_s8 + $0x38] sm:$0xff]  ;;  %v3381_v52 = vpack.c.bf16 %v777_v49, %v776_v48  ;;  %vm1527_vm12 = vcmp.eq.s32.totalorder %v3931_v55, 3 }
  0x1b   : > { %3371 = vmatprep.subr.bf16.mxu0 %v3681_v10  ;;  %3383 = vmatprep.subr.bf16.mxu1 %v3681_v10  ;;  %v3393_v53 = vpack.c.bf16 %v859_v51, %v858_v50  ;;  %v702_v59 = vld [vmem:[%s4623_s5] sm:$0xf]  ;;  %v931_v34 = vld [vmem:[%s4627_s9 + $0x8] sm:$0xff]  ;;  %v932_v38 = vld [vmem:[%s4627_s9 + $0x10] sm:$0xff]  ;;  %vm1547_vm13 = vcmp.eq.s32.totalorder %v3931_v55, 4  ;;  %vm1567_vm14 = vcmp.eq.s32.totalorder %v3931_v55, 5 }
  0x1c   : > { %s2990_s19 = sshll.u32 %s514_s18, 3  ;;  %v724_v61 = vrot.slane %v702_v59, %v3934_v56  ;;  %v738_v62 = vrot.slane %v702_v59, %v3937_v57  ;;  %v752_v63 = vrot.slane %v702_v59, %v3940_v58  ;;  %v2995_v7 = vld [vmem:[%s4624_s6] ss:$0 sm:$0xff]  ;;  %v935_v42 = vld [vmem:[%s4627_s9 + $0x28] sm:$0xff]  ;;  %v936_v44 = vld [vmem:[%s4627_s9 + $0x30] sm:$0xff]  ;;  %vm1587_vm15 = vcmp.eq.s32.totalorder %v3931_v55, 6 }
  0x1d   : > { %s3824_s29 = scalar_lea.vmem %s4649_s28, %s2990_s19  ;;  %v930_v33 = vld [vmem:[%s4627_s9] sm:$0xff]  ;;  %v937_v45 = vld [vmem:[%s4627_s9 + $0x38] sm:$0xff]  ;;  %s2989_s19 = sshll.u32 %s510_s20, 3 }
  0x1e   : > { %v517_v0 = vld [vmem:[%s3824_s29] sm:$0xff]  ;;  %v3396_v36 = vpack.c.bf16 %v931_v34, %v930_v33  ;;  %v3684_v34 = vmov 1966171168   ;;  %s512_s28 = scalar_lea.vmem [#allocation2], %s2989_s19  ;;  %s2913_s26 = scalar_lea.sflag [#allocation3], %s510_s20 }
  0x1f   : > { %v523_v1 = vsel %vm522_vm0, %v517_v0, 0.0  ;;  %v934_v41 = vld [vmem:[%s4627_s9 + $0x20] sm:$0xff]  ;;  %s2926_s30 = sshll.u32 %s512_s28, 4  ;;  %s3685_s25 = smov [#allocation2]   ;;  %s4577_s30 = int_to_ptr.vmem [resolvable:$true] %s2926_s30 }
  0x20   : > { %524 = vadd.xlane.f32.xlu0 %v523_v1  ;;  %v712_v1 = vrot.slane %v702_v59, %v3946_v60  ;;  %v4010_v59 = vsub.s32 5, %v3931_v55  ;;  %s3617_s21 = scalar_lea.vmem %s4577_s30, 128  ;;  %s3621_s19 = sshll.u32 %s3685_s25, 4  ;;  %s3622_s19 = int_to_ptr.vmem [resolvable:$false] %s3621_s19 }
  0x21   : > { %p3618_p11 = scmp.ne.s32.totalorder %s4577_s30, %s3617_s21  ;;  %s3623_s27 = scalar_lea.vmem %s3622_s19, 256 }
  0x22   : > { %p3624_p0 = scmp.lt.s32.totalorder %s4577_s30, %s3622_s19  ;;  %p3625_p1 = scmp.lt.s32.totalorder %s3623_s27, %s3617_s21 }
  0x23   : > { %p3619_p12 = pnand %p3618_p11, %p3809_p5 }
  0x24   : > { %p3626_p2 = por %p3625_p1, %p3624_p0 }
  0x25   : > { %p3620_p13 = pneg %p3619_p12 }
  0x27   : > { %p3627_p3 = pnand %p3626_p2, %p3620_p13 }
  0xad   : > { %v525_v2 = vpop.xlane.xlu0 %524 }
  0xae   : > { %v527_v3 = vmul.f32 0.03125, %v525_v2 }
  0xb0   : > { %v528_v4 = vsub.f32 %v517_v0, %v527_v3 }
  0xb2   : > { %v529_v5 = vmul.f32 %v528_v4, %v528_v4 }
  0xb4   : > { %v530_v6 = vsel %vm522_vm0, %v529_v5, 0.0 }
  0xb5   : > { %531 = vadd.xlane.f32.xlu0 %v530_v6 }
 0x142   : > { %v532_v21 = vpop.xlane.xlu0 %531 }
 0x143   : > { %v533_v22 = vmul.f32 0.03125, %v532_v21 }
 0x145   : > { %v534_v23 = vadd.f32 1e-05, %v533_v22 }
 0x147   : > { %3522 = vrsqrt.f32 %v534_v23 }
 0x151   : > { %v3523_v24 = vpop.eup %3522 }
 0x152   : > { %v536_v26 = vmul.f32 %v3523_v24, %v528_v4 }
 0x154   : > { %v543_v28 = vmul.f32 %v2991_v25, %v536_v26 }
 0x156   : > { %v550_v29 = vadd.f32 %v2992_v27, %v543_v28 }
 0x158   : > { %3172 = vmatmul.mubr.msk.f32.vlgmr.msra.gmra.mrb[0].mxu0 %vm522_vm0, %v550_v29  ;;  %3183 = vmatmul.mubr.msk.f32.vlgmr.msra.gmra.mrb[0].mxu1 %vm522_vm0, %v550_v29 }
 0x159   : > { %3201 = vmatprep.mubr.msk.f32.mxu0 %vm3682_vm1, %v3683_v18  ;;  %3220 = vmatprep.mubr.msk.f32.mxu1 %vm3682_vm1, %v3683_v18 }
 0x15a   : > { %3373 = vmatpush3.bf16.msra.mxu0 %v3372_v32  ;;  %3385 = vmatpush3.bf16.msra.mxu1 %v3384_v35 }
 0x15b   : > { %3374 = vmatprep.subr.bf16.mxu0 %v3681_v10  ;;  %3386 = vmatprep.subr.bf16.mxu1 %v3681_v10 }
 0x15e   : > { %3376 = vmatpush3.bf16.msra.mxu0 %v3375_v39  ;;  %3388 = vmatpush3.bf16.msra.mxu1 %v3387_v43  ;;  %v933_v39 = vld [vmem:[%s4627_s9 + $0x18] sm:$0xff]  ;;  %v3402_v43 = vpack.c.bf16 %v935_v42, %v934_v41 }
 0x15f   : > { %3377 = vmatprep.subr.bf16.mxu0 %v3681_v10  ;;  %3389 = vmatprep.subr.bf16.mxu1 %v3681_v10  ;;  %v3399_v40 = vpack.c.bf16 %v933_v39, %v932_v38  ;;  %v1636_v41 = vld [vmem:[%s4631_s13 + $0x38] sm:$0xff] }
 0x162   : > { %3379 = vmatpush3.bf16.msra.mxu0 %v3378_v46  ;;  %3391 = vmatpush3.bf16.msra.mxu1 %v3390_v47  ;;  %v3405_v46 = vpack.c.bf16 %v937_v45, %v936_v44 }
 0x163   : > { %3380 = vmatprep.subr.bf16.mxu0 %v3681_v10  ;;  %3392 = vmatprep.subr.bf16.mxu1 %v3681_v10 }
 0x166   : > { %3382 = vmatpush3.bf16.msra.mxu0 %v3381_v52  ;;  %3394 = vmatpush3.bf16.msra.mxu1 %v3393_v53  ;;  %v4006_v53 = vsub.s32 4, %v3931_v55 }
 0x167   : > { %3395 = vmatprep.subr.bf16.mxu0 %v3681_v10  ;;  %3407 = vmatprep.subr.bf16.mxu1 %v3681_v10 }
 0x22b   : > { %v624_v0 = vpop.f32.mrb[0].mxu0  ;;  %v3952_v2 = vpop.f32.mrb[0].mxu1 }
 0x22c   : > { %v704_v3 = vrot.slane %v624_v0, 5  ;;  %v3173_v4 = vpop.f32.mrb[1].mxu0  ;;  %v3184_v5 = vpop.f32.mrb[1].mxu1 }
 0x22e   : > { %v707_v6 = vsel %vm706_vm2, 0.0, %v704_v3  ;;  %v726_v8 = vmul.f32 %v724_v61, %v704_v3  ;;  %v740_v9 = vmul.f32 %v738_v62, %v704_v3  ;;  %v754_v11 = vmul.f32 %v752_v63, %v704_v3 }
 0x22f   : > { %v713_v12 = vmul.f32 %v712_v1, %v707_v6  ;;  %v725_v13 = vmul.f32 %v724_v61, %v707_v6  ;;  %v739_v14 = vmul.f32 %v738_v62, %v707_v6  ;;  %v753_v15 = vmul.f32 %v752_v63, %v707_v6 }
 0x230   : > { %v731_v16 = vrot.slane %v726_v8, 1  ;;  %v745_v21 = vrot.slane %v740_v9, 2  ;;  %v759_v24 = vrot.slane %v754_v11, 3  ;;  %v4019_v6 = vsub.s32 6, %v3931_v55 }
 0x231   : > { %v720_v17 = vadd.f32 %v2995_v7, %v713_v12  ;;  %v730_v19 = vrot.slane %v725_v13, 1  ;;  %v744_v20 = vrot.slane %v739_v14, 2  ;;  %v758_v23 = vrot.slane %v753_v15, 3  ;;  %v2999_v14 = vld [vmem:[%s4628_s10] ss:$0 sm:$0xff] }
 0x232   : > { %v4025_v11 = vsub.s32 7, %v3931_v55 }
 0x233   : > { %v732_v22 = vsel %vm729_vm3, %v730_v19, %v731_v16  ;;  %v746_v26 = vsel %vm743_vm4, %v744_v20, %v745_v21  ;;  %v760_v28 = vsel %vm757_vm5, %v758_v23, %v759_v24  ;;  %v1629_v23 = vld [vmem:[%s4631_s13] sm:$0xff]  ;;  %v1630_v24 = vld [vmem:[%s4631_s13 + $0x8] sm:$0xff] }
 0x234   : > { %v734_v25 = vadd.f32 %v732_v22, %v720_v17 }
 0x236   : > { %v748_v27 = vadd.f32 %v746_v26, %v734_v25  ;;  %v1631_v25 = vld [vmem:[%s4631_s13 + $0x10] sm:$0xff]  ;;  %v3408_v26 = vpack.c.bf16 %v1630_v24, %v1629_v23 }
 0x238   : > { %v762_v29 = vadd.f32 %v760_v28, %v748_v27  ;;  %v1632_v27 = vld [vmem:[%s4631_s13 + $0x18] sm:$0xff] }
 0x23a   : > { %v2996_v30 = vmul.f32 -1.442695, %v762_v29 }
 0x23c   : > { %3524 = vpow2.f32 %v2996_v30  ;;  %v1633_v30 = vld [vmem:[%s4631_s13 + $0x20] sm:$0xff] }
 0x246   : > { %v3525_v31 = vpop.eup %3524 }
 0x247   : > { %v766_v32 = vadd.f32 1.0, %v3525_v31  ;;  %v1634_v31 = vld [vmem:[%s4631_s13 + $0x28] sm:$0xff] }
 0x248   : > { %v3414_v38 = vpack.c.bf16 %v1634_v31, %v1633_v30 }
 0x249   : > { %3526 = vrcp.f32 %v766_v32 }
 0x253   : > { %v3527_v35 = vpop.eup %3526 }
 0x254   : > { %v3967_v37 = vmul.f32 %v3527_v35, %v762_v29  ;;  %v3411_v29 = vpack.c.bf16 %v1632_v27, %v1631_v25  ;;  %v1034_v35 = vunpack.c.l.s4 %v3684_v34 }
 0x256   : > { %3202 = vmatmul.mubr.msk.f32.vlgmr.msra.gmra.mrb[2].mxu0 %vm778_vm6, %v3967_v37  ;;  %3221 = vmatmul.mubr.msk.f32.vlgmr.msra.gmra.mrb[2].mxu1 %vm778_vm6, %v3967_v37 }
 0x257   : > { %3397 = vmatpush3.bf16.msra.mxu0 %v3396_v36  ;;  %3239 = vmatprep.mubr.msk.f32.mxu0 %vm3682_vm1, %v3683_v18 }
 0x258   : > { %3398 = vmatprep.subr.bf16.mxu0 %v3681_v10  ;;  %3258 = vmatprep.mubr.msk.f32.mxu1 %vm3682_vm1, %v3683_v18 }
 0x259   : > { %3409 = vmatpush3.bf16.msra.mxu1 %v3408_v26 }
 0x25a   : > { %3410 = vmatprep.subr.bf16.mxu1 %v3681_v10 }
 0x25b   : > { %3400 = vmatpush3.bf16.msra.mxu0 %v3399_v40  ;;  %v1635_v40 = vld [vmem:[%s4631_s13 + $0x30] sm:$0xff] }
 0x25c   : > { %3401 = vmatprep.subr.bf16.mxu0 %v3681_v10  ;;  %v3417_v44 = vpack.c.bf16 %v1636_v41, %v1635_v40 }
 0x25d   : > { %3412 = vmatpush3.bf16.msra.mxu1 %v3411_v29 }
 0x25e   : > { %3413 = vmatprep.subr.bf16.mxu1 %v3681_v10 }
 0x25f   : > { %3403 = vmatpush3.bf16.msra.mxu0 %v3402_v43  ;;  %v1035_v43 = vunpack.c.0.s8 %v1034_v35 }
 0x260   : > { %3404 = vmatprep.subr.bf16.mxu0 %v3681_v10 }
 0x261   : > { %3415 = vmatpush3.bf16.msra.mxu1 %v3414_v38 }
 0x262   : > { %3416 = vmatprep.subr.bf16.mxu1 %v3681_v10 }
 0x263   : > { %3406 = vmatpush3.bf16.msra.mxu0 %v3405_v46  ;;  %v4062_v46 = vsub.s32 %v1035_v43, %v3931_v55 }
 0x264   : > { %3419 = vmatprep.subr.bf16.mxu0 %v3681_v10 }
 0x265   : > { %3418 = vmatpush3.bf16.msra.mxu1 %v3417_v44 }
 0x266   : > { %3240 = vmatmul.mubr.msk.f32.vlgmr.msra.gmra.mrb[4].mxu0 %vm778_vm6, %v3967_v37  ;;  %3425 = vmatprep.subr.bf16.mxu1 %v3681_v10 }
 0x267   : > { %3269 = vmatprep.mubr.msk.f32.mxu0 %vm3682_vm1, %v3683_v18 }
 0x329   : > { %v848_v47 = vpop.f32.mrb[2].mxu0  ;;  %v926_v48 = vpop.f32.mrb[2].mxu1 }
 0x32a   : > { %v3203_v49 = vpop.f32.mrb[3].mxu0  ;;  %v3222_v50 = vpop.f32.mrb[3].mxu1  ;;  %v1234_v51 = vrot.slane %v848_v47, %v3934_v56  ;;  %v1223_v52 = vrot.slane %v848_v47, %v3946_v60  ;;  %v1267_v54 = vrot.slane %v848_v47, %v4006_v53  ;;  %v1278_v61 = vrot.slane %v848_v47, %v4010_v59 }
 0x32b   : > { %v1367_v62 = vrot.slane %v926_v48, %v3946_v60  ;;  %v1245_v63 = vrot.slane %v848_v47, %v3937_v57  ;;  %v1378_v3 = vrot.slane %v926_v48, %v3934_v56  ;;  %v1389_v4 = vrot.slane %v926_v48, %v3937_v57 }
 0x32c   : > { %1236 = vbcast.lane.b32.xlu0 %v1234_v51, 256  ;;  %1225 = vbcast.lane.b32.xlu1 %v1223_v52, 256  ;;  %v1256_v5 = vrot.slane %v848_v47, %v3940_v58  ;;  %v1289_v7 = vrot.slane %v848_v47, %v4019_v6  ;;  %v1400_v8 = vrot.slane %v926_v48, %v3940_v58 }
 0x32d   : > { %v1411_v9 = vrot.slane %v926_v48, %v4006_v53  ;;  %v1300_v12 = vrot.slane %v848_v47, %v4025_v11  ;;  %v1422_v13 = vrot.slane %v926_v48, %v4010_v59  ;;  %v1433_v15 = vrot.slane %v926_v48, %v4019_v6 }
 0x32e   : > { %v1444_v17 = vrot.slane %v926_v48, %v4025_v11 }
 0x330   : > { %1273 = vbcast.lane.b32.xlu0 %v1267_v54, 264  ;;  %1229 = vbcast.lane.b32.xlu1 %v1223_v52, 264  ;;  %v4071_v52 = vld [vmem:[%s4629_s11 + $0x8] sm:$0xff] }
 0x334   : > { %1284 = vbcast.lane.b32.xlu0 %v1278_v61, 264  ;;  %1240 = vbcast.lane.b32.xlu1 %v1234_v51, 264 }
 0x338   : > { %1373 = vbcast.lane.b32.xlu0 %v1367_v62, 264  ;;  %1247 = vbcast.lane.b32.xlu1 %v1245_v63, 256 }
 0x339   : > { %v1011_v0 = vpop.f32.mrb[4].mxu0 }
 0x33a   : > { %v3241_v1 = vpop.f32.mrb[5].mxu0  ;;  %v1012_v16 = vadd.f32 %v2999_v14, %v1011_v0 }
 0x33b   : > { %v4082_v1 = vld [vmem:[%s4629_s11] sm:$0xff] }
 0x33c   : > { %1384 = vbcast.lane.b32.xlu0 %v1378_v3, 264  ;;  %1251 = vbcast.lane.b32.xlu1 %v1245_v63, 264  ;;  %v1016_v19 = vmin.f32 %v1012_v16, 20.0  ;;  %vm1015_vm8 = vcmp.le.f32.partialorder %v1012_v16, 20.0 }
 0x33e   : > { %v1017_v20 = vmul.f32 1.442695, %v1016_v19 }
 0x340   : > { %1395 = vbcast.lane.b32.xlu0 %v1389_v4, 264  ;;  %1258 = vbcast.lane.b32.xlu1 %v1256_v5, 256  ;;  %3528 = vpow2.f32 %v1017_v20 }
 0x344   : > { %1295 = vbcast.lane.b32.xlu0 %v1289_v7, 264  ;;  %1262 = vbcast.lane.b32.xlu1 %v1256_v5, 264 }
 0x348   : > { %1406 = vbcast.lane.b32.xlu0 %v1400_v8, 264  ;;  %1269 = vbcast.lane.b32.xlu1 %v1267_v54, 256 }
 0x34a   : > { %v3529_v21 = vpop.eup %3528 }
 0x34b   : > { %v1019_v22 = vadd.f32 1.0, %v3529_v21  ;;  %v1022_v28 = vmul.f32 -0.5, %v3529_v21  ;;  %v1025_v36 = vand.u32 2147483647, %v3529_v21 }
 0x34c   : > { %1417 = vbcast.lane.b32.xlu0 %v1411_v9, 264  ;;  %1280 = vbcast.lane.b32.xlu1 %v1278_v61, 256 }
 0x34d   : > { %3530 = vlog2.f32 %v1019_v22  ;;  %v1023_v33 = vadd.f32 1.0, %v1022_v28  ;;  %vm1026_vm7 = vcmp.lt.f32.partialorder %v1025_v36, 0.0004427343 }
 0x34f   : > { %v1024_v42 = vmul.f32 %v3529_v21, %v1023_v33 }
 0x350   : > { %1306 = vbcast.lane.b32.xlu0 %v1300_v12, 264  ;;  %1369 = vbcast.lane.b32.xlu1 %v1367_v62, 256 }
 0x354   : > { %1428 = vbcast.lane.b32.xlu0 %v1422_v13, 264  ;;  %1380 = vbcast.lane.b32.xlu1 %v1378_v3, 256 }
 0x357   : > { %v3531_v32 = vpop.eup %3530 }
 0x358   : > { %1439 = vbcast.lane.b32.xlu0 %v1433_v15, 264  ;;  %1391 = vbcast.lane.b32.xlu1 %v1389_v4, 256  ;;  %v1021_v39 = vmul.f32 0.6931472, %v3531_v32 }
 0x35a   : > { %v1027_v45 = vsel %vm1026_vm7, %v1024_v42, %v1021_v39  ;;  %vm1607_vm7 = vcmp.eq.s32.totalorder %v3931_v55, 7 }
 0x35b   : > { %v1028_v47 = vsel %vm1015_vm8, %v1027_v45, %v1012_v16 }
 0x35c   : > { %1450 = vbcast.lane.b32.xlu0 %v1444_v17, 264  ;;  %1291 = vbcast.lane.b32.xlu1 %v1289_v7, 256  ;;  %v1039_v48 = vrot.slane %v1028_v47, %v4062_v46  ;;  %v4077_v0 = vmul.f32 %v1028_v47, %v3967_v37  ;;  %v1032_v14 = vcombine.high %v1028_v47, %v1028_v47 }
 0x35e   : > { %v1055_v49 = vrot.slane %v1039_v48, %v4062_v46  ;;  %v1047_v50 = vcombine.high %v1039_v48, %v1039_v48  ;;  %v1046_v23 = vrot.slane %v1032_v14, %v4062_v46 }
 0x360   : > { %1402 = vbcast.lane.b32.xlu1 %v1400_v8, 256  ;;  %v1084_v51 = vrot.slane %v1055_v49, %v3946_v60  ;;  %v1069_v54 = vrot.slane %v1047_v50, %v4062_v46  ;;  %v1077_v5 = vcombine.high %v1055_v49, %v1055_v49  ;;  %v1178_v8 = vrot.slane %v4077_v0, %v4062_v46 }
 0x361   : > { %v1062_v32 = vrot.slane %v1046_v23, %v4062_v46  ;;  %v1048_v42 = vcombine.high %v1046_v23, %v1046_v23 }
 0x362   : > { %v1122_v61 = vmul.f32 %v1084_v51, %v4071_v52  ;;  %v1088_v62 = vrot.slane %v1069_v54, %v3946_v60  ;;  %v1079_v20 = vcombine.high %v1069_v54, %v1069_v54  ;;  %v1186_v26 = vcombine.high %v1178_v8, %v1178_v8 }
 0x363   : > { %v1100_v43 = vrot.slane %v1062_v32, %v3946_v60 }
 0x364   : > { %1413 = vbcast.lane.b32.xlu1 %v1411_v9, 256  ;;  %v1139_v63 = vmul.f32 1.442695, %v1122_v61  ;;  %v1124_v7 = vmul.f32 %v1088_v62, %v4071_v52  ;;  %v1121_v9 = vmul.f32 %v1084_v51, %v4082_v1  ;;  %v1123_v25 = vmul.f32 %v1088_v62, %v4082_v1 }
 0x365   : > { %v1096_v29 = vrot.slane %v1079_v20, %v3946_v60  ;;  %v1208_v35 = vrot.slane %v1186_v26, %v4062_v46 }
 0x366   : > { %3532 = vpow2.f32 %v1139_v63  ;;  %v1143_v16 = vmul.f32 1.442695, %v1124_v7  ;;  %v1137_v19 = vmul.f32 1.442695, %v1121_v9  ;;  %v1141_v34 = vmul.f32 1.442695, %v1123_v25 }
 0x367   : > { %v1128_v40 = vmul.f32 %v1096_v29, %v4071_v52  ;;  %v1315_v45 = vrot.slane %v1208_v35, %v3946_v60  ;;  %v4119_v63 = vrot.slane %v1048_v42, %v4062_v46 }
 0x368   : > { %1302 = vbcast.lane.b32.xlu1 %v1300_v12, 256  ;;  %3534 = vpow2.f32 %v1143_v16  ;;  %v1127_v16 = vmul.f32 %v1096_v29, %v4082_v1 }
 0x369   : > { %3536 = vpow2.f32 %v1137_v19  ;;  %v1151_v49 = vmul.f32 1.442695, %v1128_v40 }
 0x36c   : > { %1424 = vbcast.lane.b32.xlu1 %v1422_v13, 256 }
 0x370   : > { %1435 = vbcast.lane.b32.xlu1 %v1433_v15, 256  ;;  %v1092_v15 = vrot.slane %v1077_v5, %v3946_v60  ;;  %v3533_v28 = vpop.eup %3532  ;;  %v1130_v5 = vmul.f32 %v1100_v43, %v4071_v52 }
 0x371   : > { %v1453_v38 = vmul.f32 0.0, %v3533_v28 }
 0x372   : > { %v1126_v24 = vmul.f32 %v1092_v15, %v4071_v52  ;;  %v1125_v44 = vmul.f32 %v1092_v15, %v4082_v1  ;;  %v3535_v47 = vpop.eup %3534  ;;  %v1155_v19 = vmul.f32 1.442695, %v1130_v5 }
 0x373   : > { %v3537_v50 = vpop.eup %3536 }
 0x374   : > { %1446 = vbcast.lane.b32.xlu1 %v1444_v17, 256  ;;  %v1194_v17 = vrot.slane %v1178_v8, %v4062_v46  ;;  %v1147_v33 = vmul.f32 1.442695, %v1126_v24  ;;  %v1145_v8 = vmul.f32 1.442695, %v1125_v44  ;;  %v1218_v24 = vcombine.high %v1208_v35, %v1208_v35 }
 0x376   : > { %v1311_v27 = vrot.slane %v1194_v17, %v3946_v60  ;;  %3538 = vpow2.f32 %v1147_v33  ;;  %v1216_v54 = vcombine.high %v1194_v17, %v1194_v17  ;;  %v1104_v17 = vrot.slane %v4119_v63, %v3946_v60 }
 0x377   : > { %3540 = vpow2.f32 %v1141_v34  ;;  %v1078_v33 = vcombine.high %v1062_v32, %v1062_v32  ;;  %v1323_v35 = vrot.slane %v1218_v24, %v3946_v60 }
 0x378   : > { %3542 = vpow2.f32 %v1151_v49  ;;  %v1319_v14 = vrot.slane %v1216_v54, %v3946_v60  ;;  %v1132_v29 = vmul.f32 %v1104_v17, %v4071_v52 }
 0x379   : > { %3544 = vpow2.f32 %v1145_v8  ;;  %v1108_v49 = vrot.slane %v1078_v33, %v3946_v60 }
 0x37a   : > { %3546 = vpow2.f32 %v1155_v19 }
 0x380   : > { %v3539_v25 = vpop.eup %3538 }
 0x381   : > { %v3541_v26 = vpop.eup %3540 }
 0x382   : > { %v3543_v32 = vpop.eup %3542 }
 0x39e   : > { %v4084_v3 = vpop.permute.xlu0 %1236  ;;  %v1226_v4 = vpop.permute.xlu1 %1225 }
 0x39f   : > { %v1348_v7 = vmul.f32 %v1311_v27, %v1226_v4  ;;  %v1350_v40 = vmul.f32 %v1315_v45, %v4084_v3  ;;  %v1131_v3 = vmul.f32 %v1104_v17, %v4082_v1 }
 0x3a2   : > { %v4090_v12 = vpop.permute.xlu0 %1273  ;;  %v1230_v13 = vpop.permute.xlu1 %1229 }
 0x3a3   : > { %v1349_v31 = vmul.f32 %v1311_v27, %v1230_v13  ;;  %v1452_v13 = vmul.f32 0.0, %v3537_v50  ;;  %v1171_v27 = vcombine.high %v4077_v0, %v4077_v0  ;;  %v1159_v50 = vmul.f32 1.442695, %v1132_v29 }
 0x3a5   : > { %v4108_v41 = vadd.f32 %v1453_v38, %v1349_v31  ;;  %v1454_v20 = vadd.f32 %v1452_v13, %v1348_v7  ;;  %v1149_v31 = vmul.f32 1.442695, %v1127_v16  ;;  %v1129_v38 = vmul.f32 %v1100_v43, %v4082_v1 }
 0x3a6   : > { %v1241_v21 = vpop.permute.xlu1 %1240  ;;  %v4094_v22 = vpop.permute.xlu0 %1284  ;;  %v1185_v44 = vrot.slane %v1171_v27, %v4062_v46  ;;  %v1134_v13 = vmul.f32 %v1108_v49, %v4071_v52 }
 0x3a7   : > { %v1351_v51 = vmul.f32 %v1315_v45, %v1241_v21  ;;  %v1473_v62 = vmul.f32 %v3535_v47, %v4108_v41  ;;  %v1472_v34 = vmul.f32 %v3541_v26, %v1454_v20  ;;  %3548 = vpow2.f32 %v1149_v31  ;;  %v3545_v45 = vpop.eup %3544 }
 0x3a8   : > { %v1153_v54 = vmul.f32 1.442695, %v1129_v38  ;;  %v4143_v7 = vrot.slane %v1185_v44, %v4062_v46  ;;  %3550 = vpow2.f32 %v1159_v50  ;;  %v1187_v19 = vcombine.high %v1185_v44, %v1185_v44  ;;  %v3547_v24 = vpop.eup %3546 }
 0x3a9   : > { %v1475_v15 = vadd.f32 %v1473_v62, %v1351_v51  ;;  %v1474_v51 = vadd.f32 %v1472_v34, %v1350_v40  ;;  %v1163_v31 = vmul.f32 1.442695, %v1134_v13  ;;  %v1133_v50 = vmul.f32 %v1108_v49, %v4082_v1 }
 0x3aa   : > { %v4101_v30 = vpop.permute.xlu1 %1247  ;;  %v4105_v36 = vpop.permute.xlu0 %1373  ;;  %3552 = vpow2.f32 %v1153_v54  ;;  %v1327_v17 = vrot.slane %v4143_v7, %v3946_v60  ;;  %v4154_v34 = vrot.slane %v1187_v19, %v4062_v46 }
 0x3ab   : > { %v1493_v28 = vmul.f32 %v3539_v25, %v1475_v15  ;;  %v1352_v62 = vmul.f32 %v1319_v14, %v4101_v30  ;;  %v1492_v16 = vmul.f32 %v3545_v45, %v1474_v51  ;;  %v1157_v25 = vmul.f32 1.442695, %v1131_v3 }
 0x3ac   : > { %v1357_v29 = vmul.f32 %v1327_v17, %v4090_v12  ;;  %v1457_v44 = vmul.f32 %v4108_v41, %v4105_v36 }
 0x3ad   : > { %3554 = vpow2.f32 %v1157_v25 }
 0x3ae   : > { %v1252_v39 = vpop.permute.xlu1 %1251  ;;  %v4115_v61 = vpop.permute.xlu0 %1384  ;;  %3556 = vpow2.f32 %v1163_v31  ;;  %v1459_v3 = vsel %vm778_vm6, %v1457_v44, 0.0 }
 0x3af   : > { %v1353_v21 = vmul.f32 %v1319_v14, %v1252_v39  ;;  %v1494_v14 = vadd.f32 %v1492_v16, %v1352_v62  ;;  %v1477_v38 = vmul.f32 %v1475_v15, %v4115_v61 }
 0x3b1   : > { %v1495_v39 = vadd.f32 %v1493_v28, %v1353_v21  ;;  %v3549_v33 = vpop.eup %3548  ;;  %v1479_v61 = vsel %vm778_vm6, %v1477_v38, 0.0 }
 0x3b2   : > { %v4113_v48 = vpop.permute.xlu1 %1258  ;;  %v1396_v23 = vpop.permute.xlu0 %1395 }
 0x3b3   : > { %v1513_v43 = vmul.f32 %v3543_v32, %v1495_v39  ;;  %v1512_v32 = vmul.f32 %v3549_v33, %v1494_v14  ;;  %v3551_v41 = vpop.eup %3550 }
 0x3b6   : > { %v1263_v9 = vpop.permute.xlu1 %1262  ;;  %v4137_v47 = vpop.permute.xlu0 %1295 }
 0x3b7   : > { %v1355_v0 = vmul.f32 %v1323_v35, %v1263_v9  ;;  %v1080_v9 = vcombine.high %v4119_v63, %v4119_v63  ;;  %v1354_v63 = vmul.f32 %v1323_v35, %v4113_v48 }
 0x3b9   : > { %v1515_v8 = vadd.f32 %v1513_v43, %v1355_v0  ;;  %v1112_v28 = vrot.slane %v1080_v9, %v3946_v60  ;;  %v1514_v62 = vadd.f32 %v1512_v32, %v1354_v63  ;;  %v1161_v9 = vmul.f32 1.442695, %v1133_v50 }
 0x3ba   : > { %v4126_v4 = vpop.permute.xlu1 %1269  ;;  %v1407_v21 = vpop.permute.xlu0 %1406  ;;  %v1217_v63 = vcombine.high %v4143_v7, %v4143_v7 }
 0x3bb   : > { %v1533_v26 = vmul.f32 %v3547_v24, %v1515_v8  ;;  %v1136_v43 = vmul.f32 %v1112_v28, %v4071_v52  ;;  %3558 = vpow2.f32 %v1161_v9 }
 0x3bd   : > { %v1535_v35 = vadd.f32 %v1533_v26, %v1357_v29  ;;  %v1167_v19 = vmul.f32 1.442695, %v1136_v43  ;;  %v1135_v26 = vmul.f32 %v1112_v28, %v4082_v1 }
 0x3be   : > { %v4134_v42 = vpop.permute.xlu1 %1280  ;;  %v1418_v48 = vpop.permute.xlu0 %1417 }
 0x3bf   : > { %v1553_v45 = vmul.f32 %v3551_v41, %v1535_v35  ;;  %3560 = vpow2.f32 %v1167_v19 }
 0x3c2   : > { %v1370_v5 = vpop.permute.xlu1 %1369  ;;  %v1307_v25 = vpop.permute.xlu0 %1306 }
 0x3c3   : > { %v1456_v40 = vmul.f32 %v1454_v20, %v1370_v5  ;;  %v1331_v20 = vrot.slane %v4154_v34, %v3946_v60  ;;  %v3553_v5 = vpop.eup %3552 }
 0x3c4   : > { %v1532_v24 = vmul.f32 %v3553_v5, %v1514_v62  ;;  %v3555_v29 = vpop.eup %3554 }
 0x3c5   : > { %v1458_v15 = vsel %vm778_vm6, %v1456_v40, 0.0  ;;  %v3557_v1 = vpop.eup %3556  ;;  %v1358_v28 = vmul.f32 %v1331_v20, %v4134_v42 }
 0x3c6   : > { %v1381_v30 = vpop.permute.xlu1 %1380  ;;  %v1460_v13 = vadd.f32 %v1459_v3, %v1458_v15  ;;  %v3559_v19 = vpop.eup %3558 }
 0x3c7   : > { %v1476_v27 = vmul.f32 %v1474_v51, %v1381_v30  ;;  %v1497_v51 = vmul.f32 %v1495_v39, %v1396_v23  ;;  %v1356_v23 = vmul.f32 %v1327_v17, %v4126_v4  ;;  %v1359_v30 = vmul.f32 %v1331_v20, %v4094_v22 }
 0x3c8   : > { %v1461_v38 = vrot.slane %v1460_v13, 4  ;;  %v1537_v22 = vmul.f32 %v1535_v35, %v1418_v48 }
 0x3c9   : > { %v1478_v54 = vsel %vm778_vm6, %v1476_v27, 0.0  ;;  %v1499_v52 = vsel %vm778_vm6, %v1497_v51, 0.0  ;;  %v1534_v27 = vadd.f32 %v1532_v24, %v1356_v23  ;;  %v1555_v31 = vadd.f32 %v1553_v45, %v1359_v30  ;;  %v3561_v24 = vpop.eup %3560 }
 0x3ca   : > { %v1392_v0 = vpop.permute.xlu1 %1391  ;;  %v1480_v39 = vadd.f32 %v1479_v61, %v1478_v54  ;;  %v1335_v51 = vrot.slane %v1217_v63, %v3946_v60  ;;  %v1429_v54 = vpop.permute.xlu0 %1428  ;;  %v1462_v61 = vadd.f32 %v1461_v38, %v1460_v13 }
 0x3cb   : > { %v1496_v12 = vmul.f32 %v1494_v14, %v1392_v0  ;;  %v1517_v14 = vmul.f32 %v1515_v8, %v1407_v21  ;;  %v1165_v21 = vmul.f32 1.442695, %v1135_v26  ;;  %v1552_v7 = vmul.f32 %v3555_v29, %v1534_v27 }
 0x3cc   : > { %v1481_v4 = vrot.slane %v1480_v39, 4  ;;  %v1361_v35 = vmul.f32 %v1335_v51, %v4137_v47  ;;  %v1463_v45 = vrot.slane %v1462_v61, 2  ;;  %v1557_v30 = vmul.f32 %v1555_v31, %v1429_v54 }
 0x3cd   : > { %v1498_v36 = vsel %vm778_vm6, %v1496_v12, 0.0  ;;  %v1519_v44 = vsel %vm778_vm6, %v1517_v14, 0.0  ;;  %v1573_v12 = vmul.f32 %v3557_v1, %v1555_v31  ;;  %3562 = vpow2.f32 %v1165_v21 }
 0x3ce   : > { %v1292_v49 = vpop.permute.xlu1 %1291  ;;  %v1500_v16 = vadd.f32 %v1499_v52, %v1498_v36  ;;  %v1482_v0 = vadd.f32 %v1481_v4, %v1480_v39  ;;  %v1539_v36 = vsel %vm778_vm6, %v1537_v22, 0.0  ;;  %v1554_v23 = vadd.f32 %v1552_v7, %v1358_v28  ;;  %v1440_v47 = vpop.permute.xlu0 %1439 }
 0x3cf   : > { %v1219_v39 = vcombine.high %v4154_v34, %v4154_v34  ;;  %v1575_v5 = vadd.f32 %v1573_v12, %v1361_v35  ;;  %v1360_v13 = vmul.f32 %v1335_v51, %v1292_v49 }
 0x3d0   : > { %v1501_v40 = vrot.slane %v1500_v16, 4  ;;  %v1483_v41 = vrot.slane %v1482_v0, 2  ;;  %v1572_v4 = vmul.f32 %v3559_v19, %v1554_v23 }
 0x3d1   : > { %v1577_v49 = vmul.f32 %v1575_v5, %v1440_v47 }
 0x3d2   : > { %v1403_v17 = vpop.permute.xlu1 %1402  ;;  %v1502_v15 = vadd.f32 %v1501_v40, %v1500_v16  ;;  %v1484_v14 = vadd.f32 %v1483_v41, %v1482_v0  ;;  %v1574_v40 = vadd.f32 %v1572_v4, %v1360_v13  ;;  %v1451_v0 = vpop.permute.xlu0 %1450 }
 0x3d3   : > { %v1516_v33 = vmul.f32 %v1514_v62, %v1403_v17  ;;  %v3002_v62 = vmul.f32 -1.442695, %v3952_v2  ;;  %v1339_v17 = vrot.slane %v1219_v39, %v3946_v60 }
 0x3d4   : > { %v1503_v9 = vrot.slane %v1502_v15, 2  ;;  %v1485_v21 = vrot.slane %v1484_v14, 1 }
 0x3d5   : > { %v1518_v8 = vsel %vm778_vm6, %v1516_v33, 0.0  ;;  %3564 = vpow2.f32 %v3002_v62  ;;  %v1464_v33 = vadd.f32 %v1463_v45, %v1462_v61 }
 0x3d6   : > { %v1520_v32 = vadd.f32 %v1519_v44, %v1518_v8  ;;  %v1414_v50 = vpop.permute.xlu1 %1413  ;;  %v1504_v29 = vadd.f32 %v1503_v9, %v1502_v15  ;;  %v1363_v44 = vmul.f32 %v1339_v17, %v1307_v25  ;;  %v1559_v8 = vsel %vm778_vm6, %v1557_v30, 0.0 }
 0x3d7   : > { %v1536_v43 = vmul.f32 %v1534_v27, %v1414_v50  ;;  %v1593_v27 = vmul.f32 %v3561_v24, %v1575_v5  ;;  %v3563_v28 = vpop.eup %3562  ;;  %v1465_v54 = vrot.slane %v1464_v33, 1  ;;  %v1579_v25 = vsel %vm778_vm6, %v1577_v49, 0.0 }
 0x3d8   : > { %v1521_v48 = vrot.slane %v1520_v32, 4  ;;  %v1505_v12 = vrot.slane %v1504_v29, 1  ;;  %v1592_v62 = vmul.f32 %v3563_v28, %v1574_v40 }
 0x3d9   : > { %v1538_v42 = vsel %vm778_vm6, %v1536_v43, 0.0 }
 0x3da   : > { %v1540_v20 = vadd.f32 %v1539_v36, %v1538_v42  ;;  %v1522_v3 = vadd.f32 %v1521_v48, %v1520_v32  ;;  %v1303_v52 = vpop.permute.xlu1 %1302  ;;  %v1595_v32 = vadd.f32 %v1593_v27, %v1363_v44  ;;  %v1486_v48 = vadd.f32 %v1485_v21, %v1484_v14 }
 0x3db   : > { %v1362_v1 = vmul.f32 %v1339_v17, %v1303_v52  ;;  %v1506_v52 = vadd.f32 %v1505_v12, %v1504_v29 }
 0x3dc   : > { %v1541_v16 = vrot.slane %v1540_v20, 4  ;;  %v1523_v63 = vrot.slane %v1522_v3, 2  ;;  %v1597_v35 = vmul.f32 %v1595_v32, %v1451_v0  ;;  %v1490_v47 = vsel %vm1487_vm9, %v1486_v48, 0.0 }
 0x3dd   : > { %v1594_v42 = vadd.f32 %v1592_v62, %v1362_v1 }
 0x3de   : > { %v1542_v26 = vadd.f32 %v1541_v16, %v1540_v20  ;;  %v1425_v34 = vpop.permute.xlu1 %1424  ;;  %v1524_v50 = vadd.f32 %v1523_v63, %v1522_v3  ;;  %v1466_v3 = vadd.f32 %v1465_v54, %v1464_v33  ;;  %v1599_v24 = vsel %vm778_vm6, %v1597_v35, 0.0 }
 0x3df   : > { %v1556_v38 = vmul.f32 %v1554_v23, %v1425_v34  ;;  %v3565_v41 = vpop.eup %3564  ;;  %v1510_v63 = vsel %vm1507_vm11, %v1506_v52, 0.0 }
 0x3e0   : > { %v1543_v22 = vrot.slane %v1542_v26, 2  ;;  %v1525_v20 = vrot.slane %v1524_v50, 1  ;;  %v1624_v19 = vadd.f32 1.0, %v3565_v41  ;;  %v1470_v27 = vsel %vm1467_vm10, %v1466_v3, 0.0 }
 0x3e1   : > { %v1558_v31 = vsel %vm778_vm6, %v1556_v38, 0.0 }
 0x3e2   : > { %v1560_v7 = vadd.f32 %v1559_v8, %v1558_v31  ;;  %v1436_v51 = vpop.permute.xlu1 %1435  ;;  %v1544_v61 = vadd.f32 %v1543_v22, %v1542_v26  ;;  %v1526_v14 = vadd.f32 %v1525_v20, %v1524_v50  ;;  %3566 = vrcp.f32 %v1624_v19  ;;  %v3009_v19 = vld [vmem:[%s4621_s3 + $0x28] sm:$0xff] }
 0x3e3   : > { %v1576_v43 = vmul.f32 %v1574_v40, %v1436_v51  ;;  %v1491_v40 = vadd.f32 %v1490_v47, %v1470_v27  ;;  %v3013_v47 = vld [vmem:[%s4622_s4 + $0x20] sm:$0xff]  ;;  %v3016_v27 = vld [vmem:[%s4622_s4 + $0x38] sm:$0xff] }
 0x3e4   : > { %v1561_v15 = vrot.slane %v1560_v7, 4  ;;  %v1545_v9 = vrot.slane %v1544_v61, 1  ;;  %v1530_v44 = vsel %vm1527_vm12, %v1526_v14, 0.0  ;;  %v3010_v14 = vld [vmem:[%s4621_s3 + $0x30] sm:$0xff] }
 0x3e5   : > { %v1578_v36 = vsel %vm778_vm6, %v1576_v43, 0.0  ;;  %v1511_v21 = vadd.f32 %v1510_v63, %v1491_v40 }
 0x3e6   : > { %v1562_v23 = vadd.f32 %v1561_v15, %v1560_v7  ;;  %v1580_v39 = vadd.f32 %v1579_v25, %v1578_v36  ;;  %v1447_v5 = vpop.permute.xlu1 %1446  ;;  %v1546_v34 = vadd.f32 %v1545_v9, %v1544_v61  ;;  %v3001_v25 = vld [vmem:[%s4630_s12] ss:$0 sm:$0xff] }
 0x3e7   : > { %v1596_v45 = vmul.f32 %v1594_v42, %v1447_v5  ;;  %v1531_v0 = vadd.f32 %v1530_v44, %v1511_v21  ;;  %v1619_v36 = vmul.f32 %v3001_v25, %v3967_v37  ;;  %v3006_v44 = vld [vmem:[%s4650_s1 + $0x1] ss:$0 sm:$0xff]  ;;  %s4575_s1 = scalar_lea.hbm %s4634_s16, %s3068_s17 }
 0x3e8   : > { %v1563_v13 = vrot.slane %v1562_v23, 2  ;;  %v1581_v16 = vrot.slane %v1580_v39, 4  ;;  %v1550_v1 = vsel %vm1547_vm13, %v1546_v34, 0.0  ;;  %v3026_v25 = vld [vmem:[%s4625_s7 + $0x60] sm:$0xff] }
 0x3e9   : > { %v1598_v30 = vsel %vm778_vm6, %v1596_v45, 0.0  ;;  %v1551_v51 = vadd.f32 %v1550_v1, %v1531_v0  ;;  %v3022_v1 = vld [vmem:[%s4625_s7 + $0x40] sm:$0xff] }
 0x3ea   : > { %v1564_v26 = vadd.f32 %v1563_v13, %v1562_v23  ;;  %v1582_v4 = vadd.f32 %v1581_v16, %v1580_v39  ;;  %v1600_v17 = vadd.f32 %v1599_v24, %v1598_v30  ;;  %v3616_v39 = vld [vmem:[%s3824_s29] sm:$0xff]  ;;  %v3014_v30 = vld [vmem:[%s4622_s4 + $0x28] sm:$0xff] }
 0x3eb   : > { %v3008_v16 = vld [vmem:[%s4621_s3 + $0x20] sm:$0xff] }
 0x3ec   : > { %v1565_v33 = vrot.slane %v1564_v26, 1  ;;  %v1583_v29 = vrot.slane %v1582_v4, 2  ;;  %v1601_v38 = vrot.slane %v1600_v17, 4  ;;  %v3567_v61 = vpop.eup %3566  ;;  %v3420_v24 = vpack.c.bf16 %v3009_v19, %v3008_v16 }
 0x3ed   : > { %v1627_v42 = vmul.f32 %v3567_v61, %v3952_v2  ;;  %v3027_v61 = vld [vmem:[%s4625_s7 + $0x68] sm:$0xff] }
 0x3ee   : > { %v1566_v49 = vadd.f32 %v1565_v33, %v1564_v26  ;;  %v1584_v22 = vadd.f32 %v1583_v29, %v1582_v4  ;;  %v1602_v8 = vadd.f32 %v1601_v38, %v1600_v17  ;;  %v3011_v26 = vld [vmem:[%s4621_s3 + $0x38] sm:$0xff]  ;;  %v3426_v4 = vpack.c.bf16 %v3014_v30, %v3013_v47  ;;  %v3015_v17 = vld [vmem:[%s4622_s4 + $0x30] sm:$0xff]  ;;  %3421 = vmatpush3.bf16.msra.mxu0 %v3420_v24 }
 0x3ef   : > { %v3423_v63 = vpack.c.bf16 %v3011_v26, %v3010_v14  ;;  %3422 = vmatprep.subr.bf16.mxu0 %v3681_v10  ;;  %v3429_v34 = vpack.c.bf16 %v3016_v27, %v3015_v17  ;;  %v3020_v14 = vld [vmem:[%s4624_s6 + $0x1] ss:$0 sm:$0xff] }
 0x3f0   : > { %v1585_v31 = vrot.slane %v1584_v22, 1  ;;  %v1603_v28 = vrot.slane %v1602_v8, 2  ;;  %v1570_v32 = vsel %vm1567_vm14, %v1566_v49, 0.0 }
 0x3f1   : > { %v1571_v43 = vadd.f32 %v1570_v32, %v1551_v51  ;;  %v3032_v32 = vld [vmem:[%s4626_s8 + $0x48] sm:$0xff] }
 0x3f2   : > { %v1586_v50 = vadd.f32 %v1585_v31, %v1584_v22  ;;  %v1604_v7 = vadd.f32 %v1603_v28, %v1602_v8  ;;  %3424 = vmatpush3.bf16.msra.mxu0 %v3423_v63  ;;  %v3007_v22 = vld [vmem:[%s4620_s2 + $0x1] ss:$0 sm:$0xff]  ;;  %v3023_v31 = vld [vmem:[%s4625_s7 + $0x48] sm:$0xff] }
 0x3f3   : > { %3431 = vmatprep.subr.bf16.mxu0 %v3681_v10  ;;  %v3031_v28 = vld [vmem:[%s4626_s8 + $0x40] sm:$0xff]  ;;  %v3432_v0 = vpack.c.bf16 %v3023_v31, %v3022_v1 }
 0x3f4   : > { %v1590_v54 = vsel %vm1587_vm15, %v1586_v50, 0.0  ;;  %v1605_v12 = vrot.slane %v1604_v7, 1  ;;  %v3024_v50 = vld [vmem:[%s4625_s7 + $0x50] sm:$0xff]  ;;  %v3444_v51 = vpack.c.bf16 %v3032_v32, %v3031_v28 }
 0x3f5   : > { %v1591_v15 = vadd.f32 %v1590_v54, %v1571_v43  ;;  %v3033_v54 = vld [vmem:[%s4626_s8 + $0x50] sm:$0xff] }
 0x3f6   : > { %v1606_v62 = vadd.f32 %v1605_v12, %v1604_v7  ;;  %v3025_v7 = vld [vmem:[%s4625_s7 + $0x58] sm:$0xff] }
 0x3f7   : > { %v3034_v12 = vld [vmem:[%s4626_s8 + $0x58] sm:$0xff]  ;;  %v3435_v43 = vpack.c.bf16 %v3025_v7, %v3024_v50 }
 0x3f8   : > { %v1610_v48 = vsel %vm1607_vm7, %v1606_v62, 0.0  ;;  %v3447_v62 = vpack.c.bf16 %v3034_v12, %v3033_v54  ;;  %v3040_v54 = vld [vmem:[%s4627_s9 + $0x40] sm:$0xff]  ;;  %v3041_v12 = vld [vmem:[%s4627_s9 + $0x48] sm:$0xff] }
 0x3f9   : > { %v1611_v35 = vadd.f32 %v1610_v48, %v1591_v15  ;;  %v3035_v15 = vld [vmem:[%s4626_s8 + $0x60] sm:$0xff]  ;;  %v3036_v48 = vld [vmem:[%s4626_s8 + $0x68] sm:$0xff] }
 0x3fb   : > { %v1620_v41 = vadd.f32 %v1619_v36, %v1611_v35  ;;  %v3438_v35 = vpack.c.bf16 %v3027_v61, %v3026_v25  ;;  %v3450_v36 = vpack.c.bf16 %v3036_v48, %v3035_v15  ;;  %v3042_v61 = vld [vmem:[%s4627_s9 + $0x50] sm:$0xff]  ;;  %v3043_v15 = vld [vmem:[%s4627_s9 + $0x58] sm:$0xff] }
 0x3fc   : > { %v3459_v48 = vpack.c.bf16 %v3043_v15, %v3042_v61 }
 0x3fd   : > { %v1628_v20 = vmul.f32 %v1627_v42, %v1620_v41  ;;  %v3028_v42 = vld [vmem:[%s4625_s7 + $0x70] sm:$0xff]  ;;  %v3029_v41 = vld [vmem:[%s4625_s7 + $0x78] sm:$0xff] }
 0x3ff   : > { %3259 = vmatmul.mubr.msk.f32.vlgmr.msra.gmra.mrb[4].mxu1 %vm778_vm6, %v1628_v20  ;;  %v3037_v20 = vld [vmem:[%s4626_s8 + $0x70] sm:$0xff] }
 0x400   : > { %3280 = vmatprep.mubr.msk.f32.mxu1 %vm3682_vm1, %v3683_v18  ;;  %3427 = vmatpush3.bf16.msra.mxu1 %v3426_v4 }
 0x401   : > { %3428 = vmatprep.subr.bf16.mxu1 %v3681_v10 }
 0x404   : > { %3430 = vmatpush3.bf16.msra.mxu1 %v3429_v34 }
 0x405   : > { %3443 = vmatprep.subr.bf16.mxu1 %v3681_v10 }
 0x4d2   : > { %v1706_v23 = vpop.f32.mrb[4].mxu1 }
 0x4d3   : > { %v4224_v5 = vadd.f32 %v3616_v39, %v1706_v23  ;;  %v3260_v3 = vpop.f32.mrb[5].mxu1  ;;  %v3038_v23 = vld [vmem:[%s4626_s8 + $0x78] sm:$0xff]  ;;  %v3441_v39 = vpack.c.bf16 %v3029_v41, %v3028_v42  ;;  %v3046_v41 = vld [vmem:[%s4627_s9 + $0x70] sm:$0xff] }
 0x4d4   : > { %v3453_v3 = vpack.c.bf16 %v3038_v23, %v3037_v20  ;;  %v3047_v20 = vld [vmem:[%s4627_s9 + $0x78] sm:$0xff] }
 0x4d5   : > { %v1714_v52 = vsel %vm522_vm0, %v4224_v5, 0.0  ;;  %v3465_v23 = vpack.c.bf16 %v3047_v20, %v3046_v41 }
 0x4d6   : > { %1715 = vadd.xlane.f32.xlu1 %v1714_v52  ;;  %v3018_v52 = vld [vmem:[%s4623_s5 + $0x4] sm:$0xf] }
 0x563   : > { %v1716_v45 = vpop.xlane.xlu1 %1715 }
 0x564   : > { %v1717_v37 = vmul.f32 0.03125, %v1716_v45  ;;  %v1917_v45 = vrot.slane %v3018_v52, %v3934_v56 }
 0x566   : > { %v1718_v2 = vsub.f32 %v4224_v5, %v1717_v37  ;;  %v1930_v37 = vrot.slane %v3018_v52, %v3937_v57 }
 0x568   : > { %v1719_v9 = vmul.f32 %v1718_v2, %v1718_v2 }
 0x56a   : > { %v1720_v13 = vsel %vm522_vm0, %v1719_v9, 0.0 }
 0x56b   : > { %1721 = vadd.xlane.f32.xlu0 %v1720_v13  ;;  %v1905_v13 = vrot.slane %v3018_v52, %v3946_v60 }
 0x5f8   : > { %v1722_v33 = vpop.xlane.xlu0 %1721 }
 0x5f9   : > { %v1723_v29 = vmul.f32 0.03125, %v1722_v33 }
 0x5fb   : > { %v1724_v38 = vadd.f32 1e-05, %v1723_v29 }
 0x5fd   : > { %3568 = vrsqrt.f32 %v1724_v38 }
 0x607   : > { %v3569_v40 = vpop.eup %3568 }
 0x608   : > { %v1726_v49 = vmul.f32 %v3569_v40, %v1718_v2  ;;  %v1943_v2 = vrot.slane %v3018_v52, %v3940_v58 }
 0x60a   : > { %v1733_v8 = vmul.f32 %v3006_v44, %v1726_v49 }
 0x60c   : > { %v1740_v21 = vadd.f32 %v3007_v22, %v1733_v8 }
 0x60e   : > { %3270 = vmatmul.mubr.msk.f32.vlgmr.msra.gmra.mrb[6].mxu0 %vm522_vm0, %v1740_v21  ;;  %3281 = vmatmul.mubr.msk.f32.vlgmr.msra.gmra.mrb[6].mxu1 %vm522_vm0, %v1740_v21 }
 0x60f   : > { %3299 = vmatprep.mubr.msk.f32.mxu0 %vm3682_vm1, %v3683_v18  ;;  %3318 = vmatprep.mubr.msk.f32.mxu1 %vm3682_vm1, %v3683_v18 }
 0x610   : > { %3433 = vmatpush3.bf16.msra.mxu0 %v3432_v0  ;;  %3445 = vmatpush3.bf16.msra.mxu1 %v3444_v51 }
 0x611   : > { %3434 = vmatprep.subr.bf16.mxu0 %v3681_v10  ;;  %3446 = vmatprep.subr.bf16.mxu1 %v3681_v10 }
 0x614   : > { %3436 = vmatpush3.bf16.msra.mxu0 %v3435_v43  ;;  %3448 = vmatpush3.bf16.msra.mxu1 %v3447_v62  ;;  %v3456_v62 = vpack.c.bf16 %v3041_v12, %v3040_v54 }
 0x615   : > { %3437 = vmatprep.subr.bf16.mxu0 %v3681_v10  ;;  %3449 = vmatprep.subr.bf16.mxu1 %v3681_v10 }
 0x618   : > { %3439 = vmatpush3.bf16.msra.mxu0 %v3438_v35  ;;  %3451 = vmatpush3.bf16.msra.mxu1 %v3450_v36  ;;  %v3044_v35 = vld [vmem:[%s4627_s9 + $0x60] sm:$0xff]  ;;  %v3045_v36 = vld [vmem:[%s4627_s9 + $0x68] sm:$0xff] }
 0x619   : > { %3440 = vmatprep.subr.bf16.mxu0 %v3681_v10  ;;  %3452 = vmatprep.subr.bf16.mxu1 %v3681_v10  ;;  %v3462_v42 = vpack.c.bf16 %v3045_v36, %v3044_v35  ;;  %v4433_v36 = vld [vmem:[%s4629_s11 + $0x10] sm:$0xff] }
 0x61c   : > { %3442 = vmatpush3.bf16.msra.mxu0 %v3441_v39  ;;  %3454 = vmatpush3.bf16.msra.mxu1 %v3453_v3 }
 0x61d   : > { %3455 = vmatprep.subr.bf16.mxu0 %v3681_v10  ;;  %3467 = vmatprep.subr.bf16.mxu1 %v3681_v10 }
 0x6e1   : > { %v1815_v9 = vpop.f32.mrb[6].mxu0  ;;  %v4333_v16 = vpop.f32.mrb[6].mxu1 }
 0x6e2   : > { %v1897_v19 = vrot.slane %v1815_v9, 5  ;;  %v3271_v47 = vpop.f32.mrb[7].mxu0  ;;  %v3282_v24 = vpop.f32.mrb[7].mxu1 }
 0x6e4   : > { %v1899_v30 = vsel %vm706_vm2, 0.0, %v1897_v19  ;;  %v1919_v26 = vmul.f32 %v1917_v45, %v1897_v19  ;;  %v1932_v4 = vmul.f32 %v1930_v37, %v1897_v19  ;;  %v1945_v17 = vmul.f32 %v1943_v2, %v1897_v19 }
 0x6e5   : > { %v1906_v27 = vmul.f32 %v1905_v13, %v1899_v30  ;;  %v1918_v63 = vmul.f32 %v1917_v45, %v1899_v30  ;;  %v1931_v34 = vmul.f32 %v1930_v37, %v1899_v30  ;;  %v1944_v33 = vmul.f32 %v1943_v2, %v1899_v30 }
 0x6e6   : > { %v1923_v29 = vrot.slane %v1919_v26, 1  ;;  %v1936_v49 = vrot.slane %v1932_v4, 2  ;;  %v1949_v21 = vrot.slane %v1945_v17, 3  ;;  %v3049_v4 = vld [vmem:[%s4628_s10 + $0x1] ss:$0 sm:$0xff] }
 0x6e7   : > { %v1913_v38 = vadd.f32 %v3020_v14, %v1906_v27  ;;  %v1922_v40 = vrot.slane %v1918_v63, 1  ;;  %v1935_v44 = vrot.slane %v1931_v34, 2  ;;  %v1948_v8 = vrot.slane %v1944_v33, 3 }
 0x6e9   : > { %v1924_v22 = vsel %vm729_vm3, %v1922_v40, %v1923_v29  ;;  %v1937_v31 = vsel %vm743_vm4, %v1935_v44, %v1936_v49  ;;  %v1950_v0 = vsel %vm757_vm5, %v1948_v8, %v1949_v21  ;;  %v3059_v49 = vld [vmem:[%s4631_s13 + $0x58] sm:$0xff] }
 0x6ea   : > { %v1926_v1 = vadd.f32 %v1924_v22, %v1913_v38 }
 0x6ec   : > { %v1939_v28 = vadd.f32 %v1937_v31, %v1926_v1  ;;  %v3060_v1 = vld [vmem:[%s4631_s13 + $0x60] sm:$0xff]  ;;  %v3061_v31 = vld [vmem:[%s4631_s13 + $0x68] sm:$0xff] }
 0x6ee   : > { %v1952_v32 = vadd.f32 %v1950_v0, %v1939_v28 }
 0x6f0   : > { %v3021_v50 = vmul.f32 -1.442695, %v1952_v32 }
 0x6f2   : > { %3570 = vpow2.f32 %v3021_v50  ;;  %v3474_v50 = vpack.c.bf16 %v3061_v31, %v3060_v1 }
 0x6fc   : > { %v3571_v7 = vpop.eup %3570 }
 0x6fd   : > { %v1956_v51 = vadd.f32 1.0, %v3571_v7  ;;  %v3062_v7 = vld [vmem:[%s4631_s13 + $0x70] sm:$0xff] }
 0x6ff   : > { %3572 = vrcp.f32 %v1956_v51  ;;  %v3063_v51 = vld [vmem:[%s4631_s13 + $0x78] sm:$0xff] }
 0x709   : > { %v3573_v43 = vpop.eup %3572 }
 0x70a   : > { %v4348_v25 = vmul.f32 %v3573_v43, %v1952_v32  ;;  %v3477_v43 = vpack.c.bf16 %v3063_v51, %v3062_v7 }
 0x70c   : > { %3300 = vmatmul.mubr.msk.f32.vlgmr.msra.gmra.mrb[8].mxu0 %vm778_vm6, %v4348_v25  ;;  %3319 = vmatmul.mubr.msk.f32.vlgmr.msra.gmra.mrb[8].mxu1 %vm778_vm6, %v4348_v25 }
 0x70d   : > { %3457 = vmatpush3.bf16.msra.mxu0 %v3456_v62  ;;  %3337 = vmatprep.mubr.msk.f32.mxu0 %vm3682_vm1, %v3683_v18 }
 0x70e   : > { %3458 = vmatprep.subr.bf16.mxu0 %v3681_v10  ;;  %3356 = vmatprep.mubr.msk.f32.mxu1 %vm3682_vm1, %v3683_v18 }
 0x711   : > { %3460 = vmatpush3.bf16.msra.mxu0 %v3459_v48 }
 0x712   : > { %3461 = vmatprep.subr.bf16.mxu0 %v3681_v10 }
 0x715   : > { %3463 = vmatpush3.bf16.msra.mxu0 %v3462_v42  ;;  %v4438_v42 = vld [vmem:[%s4629_s11 + $0x18] sm:$0xff] }
 0x716   : > { %3464 = vmatprep.subr.bf16.mxu0 %v3681_v10 }
 0x719   : > { %3466 = vmatpush3.bf16.msra.mxu0 %v3465_v23 }
 0x71c   : > { %3338 = vmatmul.mubr.msk.f32.vlgmr.msra.gmra.mrb[10].mxu0 %vm778_vm6, %v4348_v25 }
 0x7df   : > { %v2038_v18 = vpop.f32.mrb[8].mxu0  ;;  %v2117_v39 = vpop.f32.mrb[8].mxu1 }
 0x7e0   : > { %v3301_v3 = vpop.f32.mrb[9].mxu0  ;;  %v3320_v52 = vpop.f32.mrb[9].mxu1  ;;  %v2417_v45 = vrot.slane %v2038_v18, %v3946_v60  ;;  %v2428_v37 = vrot.slane %v2038_v18, %v3934_v56  ;;  %v2439_v2 = vrot.slane %v2038_v18, %v3937_v57  ;;  %v2450_v9 = vrot.slane %v2038_v18, %v3940_v58 }
 0x7e1   : > { %v2461_v47 = vrot.slane %v2038_v18, %v4006_v53  ;;  %v2472_v24 = vrot.slane %v2038_v18, %v4010_v59  ;;  %v2561_v30 = vrot.slane %v2117_v39, %v3946_v60  ;;  %v2572_v14 = vrot.slane %v2117_v39, %v3934_v56 }
 0x7e2   : > { %2423 = vbcast.lane.b32.xlu1 %v2417_v45, 264  ;;  %2419 = vbcast.lane.b32.xlu0 %v2417_v45, 256  ;;  %v2583_v26 = vrot.slane %v2117_v39, %v3937_v57  ;;  %v2483_v27 = vrot.slane %v2038_v18, %v4019_v6  ;;  %v2594_v34 = vrot.slane %v2117_v39, %v3940_v58 }
 0x7e3   : > { %v2605_v33 = vrot.slane %v2117_v39, %v4006_v53  ;;  %v2494_v57 = vrot.slane %v2038_v18, %v4025_v11  ;;  %v2616_v29 = vrot.slane %v2117_v39, %v4010_v59  ;;  %v2627_v38 = vrot.slane %v2117_v39, %v4019_v6  ;;  %v3056_v53 = vld [vmem:[%s4631_s13 + $0x40] sm:$0xff]  ;;  %v3057_v59 = vld [vmem:[%s4631_s13 + $0x48] sm:$0xff]  ;;  %v3058_v6 = vld [vmem:[%s4631_s13 + $0x50] sm:$0xff] }
 0x7e4   : > { %v2638_v44 = vrot.slane %v2117_v39, %v4025_v11  ;;  %v3468_v22 = vpack.c.bf16 %v3057_v59, %v3056_v53  ;;  %v3471_v8 = vpack.c.bf16 %v3059_v49, %v3058_v6 }
 0x7e6   : > { %2430 = vbcast.lane.b32.xlu1 %v2428_v37, 256  ;;  %2434 = vbcast.lane.b32.xlu0 %v2428_v37, 264 }
 0x7e7   : > { %3469 = vmatpush3.bf16.msra.mxu1 %v3468_v22 }
 0x7e8   : > { %3470 = vmatprep.subr.bf16.mxu1 %v3681_v10 }
 0x7ea   : > { %2441 = vbcast.lane.b32.xlu1 %v2439_v2, 256  ;;  %2445 = vbcast.lane.b32.xlu0 %v2439_v2, 264 }
 0x7eb   : > { %3472 = vmatpush3.bf16.msra.mxu1 %v3471_v8 }
 0x7ec   : > { %3473 = vmatprep.subr.bf16.mxu1 %v3681_v10 }
 0x7ee   : > { %2452 = vbcast.lane.b32.xlu1 %v2450_v9, 256  ;;  %2456 = vbcast.lane.b32.xlu0 %v2450_v9, 264 }
 0x7ef   : > { %v2204_v13 = vpop.f32.mrb[10].mxu0  ;;  %3475 = vmatpush3.bf16.msra.mxu1 %v3474_v50 }
 0x7f0   : > { %v3339_v19 = vpop.f32.mrb[11].mxu0  ;;  %v2205_v17 = vadd.f32 %v3049_v4, %v2204_v13  ;;  %3476 = vmatprep.subr.bf16.mxu1 %v3681_v10 }
 0x7f2   : > { %2463 = vbcast.lane.b32.xlu1 %v2461_v47, 256  ;;  %2467 = vbcast.lane.b32.xlu0 %v2461_v47, 264  ;;  %v2209_v63 = vmin.f32 %v2205_v17, 20.0  ;;  %vm2208_vm2 = vcmp.le.f32.partialorder %v2205_v17, 20.0 }
 0x7f3   : > { %3478 = vmatpush3.bf16.msra.mxu1 %v3477_v43 }
 0x7f4   : > { %v2210_v56 = vmul.f32 1.442695, %v2209_v63 }
 0x7f6   : > { %2474 = vbcast.lane.b32.xlu1 %v2472_v24, 256  ;;  %2478 = vbcast.lane.b32.xlu0 %v2472_v24, 264  ;;  %3574 = vpow2.f32 %v2210_v56 }
 0x7fa   : > { %2563 = vbcast.lane.b32.xlu1 %v2561_v30, 256  ;;  %2567 = vbcast.lane.b32.xlu0 %v2561_v30, 264 }
 0x7fe   : > { %2574 = vbcast.lane.b32.xlu1 %v2572_v14, 256  ;;  %2578 = vbcast.lane.b32.xlu0 %v2572_v14, 264 }
 0x800   : > { %v3575_v40 = vpop.eup %3574 }
 0x801   : > { %v2212_v58 = vadd.f32 1.0, %v3575_v40  ;;  %v2215_v11 = vmul.f32 -0.5, %v3575_v40  ;;  %v2218_v0 = vand.u32 2147483647, %v3575_v40 }
 0x802   : > { %2585 = vbcast.lane.b32.xlu1 %v2583_v26, 256  ;;  %2589 = vbcast.lane.b32.xlu0 %v2583_v26, 264 }
 0x803   : > { %3576 = vlog2.f32 %v2212_v58  ;;  %v2216_v28 = vadd.f32 1.0, %v2215_v11  ;;  %vm2219_vm1 = vcmp.lt.f32.partialorder %v2218_v0, 0.0004427343 }
 0x805   : > { %v2217_v54 = vmul.f32 %v3575_v40, %v2216_v28 }
 0x806   : > { %2485 = vbcast.lane.b32.xlu1 %v2483_v27, 256  ;;  %2489 = vbcast.lane.b32.xlu0 %v2483_v27, 264 }
 0x80a   : > { %2596 = vbcast.lane.b32.xlu1 %v2594_v34, 256  ;;  %2600 = vbcast.lane.b32.xlu0 %v2594_v34, 264 }
 0x80d   : > { %v3577_v21 = vpop.eup %3576 }
 0x80e   : > { %2607 = vbcast.lane.b32.xlu1 %v2605_v33, 256  ;;  %2611 = vbcast.lane.b32.xlu0 %v2605_v33, 264  ;;  %v2214_v32 = vmul.f32 0.6931472, %v3577_v21 }
 0x810   : > { %v2220_v12 = vsel %vm2219_vm1, %v2217_v54, %v2214_v32 }
 0x811   : > { %v2221_v62 = vsel %vm2208_vm2, %v2220_v12, %v2205_v17 }
 0x812   : > { %2496 = vbcast.lane.b32.xlu1 %v2494_v57, 256  ;;  %2500 = vbcast.lane.b32.xlu0 %v2494_v57, 264  ;;  %v2233_v61 = vrot.slane %v2221_v62, %v4062_v46  ;;  %v4445_v3 = vmul.f32 %v2221_v62, %v4348_v25  ;;  %v2226_v24 = vcombine.high %v2221_v62, %v2221_v62 }
 0x814   : > { %v2249_v15 = vrot.slane %v2233_v61, %v4062_v46  ;;  %v2241_v48 = vcombine.high %v2233_v61, %v2233_v61  ;;  %v2372_v2 = vrot.slane %v4445_v3, %v4062_v46  ;;  %v2240_v33 = vrot.slane %v2226_v24, %v4062_v46 }
 0x816   : > { %2618 = vbcast.lane.b32.xlu1 %v2616_v29, 256  ;;  %2622 = vbcast.lane.b32.xlu0 %v2616_v29, 264  ;;  %v2278_v35 = vrot.slane %v2249_v15, %v3946_v60  ;;  %v2263_v10 = vrot.slane %v2241_v48, %v4062_v46  ;;  %v2271_v52 = vcombine.high %v2249_v15, %v2249_v15 }
 0x817   : > { %v2388_v47 = vrot.slane %v2372_v2, %v4062_v46  ;;  %v2380_v34 = vcombine.high %v2372_v2, %v2372_v2  ;;  %v2256_v11 = vrot.slane %v2240_v33, %v4062_v46  ;;  %v2242_v7 = vcombine.high %v2240_v33, %v2240_v33 }
 0x818   : > { %v2315_v41 = vmul.f32 %v4433_v36, %v2278_v35  ;;  %v2316_v20 = vmul.f32 %v4438_v42, %v2278_v35  ;;  %v2282_v23 = vrot.slane %v2263_v10, %v3946_v60  ;;  %v2286_v9 = vrot.slane %v2271_v52, %v3946_v60 }
 0x819   : > { %v2273_v30 = vcombine.high %v2263_v10, %v2263_v10  ;;  %v2505_v63 = vrot.slane %v2388_v47, %v3946_v60  ;;  %v2402_v59 = vrot.slane %v2380_v34, %v4062_v46  ;;  %v2294_v51 = vrot.slane %v2256_v11, %v3946_v60 }
 0x81a   : > { %2629 = vbcast.lane.b32.xlu1 %v2627_v38, 256  ;;  %2633 = vbcast.lane.b32.xlu0 %v2627_v38, 264  ;;  %v2331_v18 = vmul.f32 1.442695, %v2315_v41  ;;  %v2333_v39 = vmul.f32 1.442695, %v2316_v20  ;;  %v2317_v45 = vmul.f32 %v4433_v36, %v2282_v23  ;;  %v2318_v37 = vmul.f32 %v4438_v42, %v2282_v23 }
 0x81b   : > { %v2319_v14 = vmul.f32 %v4433_v36, %v2286_v9  ;;  %v2320_v17 = vmul.f32 %v4438_v42, %v2286_v9  ;;  %v2290_v57 = vrot.slane %v2273_v30, %v3946_v60  ;;  %v2509_v32 = vrot.slane %v2402_v59, %v3946_v60 }
 0x81c   : > { %3578 = vpow2.f32 %v2331_v18  ;;  %v2335_v13 = vmul.f32 1.442695, %v2317_v45  ;;  %v2337_v19 = vmul.f32 1.442695, %v2318_v37  ;;  %v2410_v10 = vcombine.high %v2388_v47, %v2388_v47 }
 0x81d   : > { %3580 = vpow2.f32 %v2333_v39  ;;  %v2339_v29 = vmul.f32 1.442695, %v2319_v14  ;;  %v2341_v53 = vmul.f32 1.442695, %v2320_v17  ;;  %v2321_v22 = vmul.f32 %v4433_v36, %v2290_v57 }
 0x81e   : > { %2640 = vbcast.lane.b32.xlu1 %v2638_v44, 256  ;;  %2644 = vbcast.lane.b32.xlu0 %v2638_v44, 264  ;;  %3582 = vpow2.f32 %v2335_v13  ;;  %v2322_v28 = vmul.f32 %v4438_v42, %v2290_v57  ;;  %v4471_v41 = vrot.slane %v2242_v7, %v4062_v46  ;;  %v2323_v20 = vmul.f32 %v4433_v36, %v2294_v51 }
 0x81f   : > { %3584 = vpow2.f32 %v2337_v19  ;;  %v2343_v54 = vmul.f32 1.442695, %v2321_v22  ;;  %v2324_v45 = vmul.f32 %v4438_v42, %v2294_v51  ;;  %v2513_v2 = vrot.slane %v2410_v10, %v3946_v60 }
 0x820   : > { %3586 = vpow2.f32 %v2339_v29  ;;  %v2345_v35 = vmul.f32 1.442695, %v2322_v28  ;;  %v2298_v13 = vrot.slane %v4471_v41, %v3946_v60  ;;  %v2347_v19 = vmul.f32 1.442695, %v2323_v20 }
 0x821   : > { %3588 = vpow2.f32 %v2341_v53  ;;  %v2365_v47 = vcombine.high %v4445_v3, %v4445_v3  ;;  %v2272_v34 = vcombine.high %v2256_v11, %v2256_v11  ;;  %v2274_v51 = vcombine.high %v4471_v41, %v4471_v41 }
 0x822   : > { %3590 = vpow2.f32 %v2343_v54  ;;  %v2325_v33 = vmul.f32 %v4433_v36, %v2298_v13  ;;  %v2326_v57 = vmul.f32 %v4438_v42, %v2298_v13 }
 0x823   : > { %3592 = vpow2.f32 %v2345_v35 }
 0x824   : > { %3594 = vpow2.f32 %v2347_v19  ;;  %v2353_v11 = vmul.f32 1.442695, %v2326_v57 }
 0x826   : > { %v3579_v27 = vpop.eup %3578 }
 0x827   : > { %v3581_v56 = vpop.eup %3580  ;;  %v2646_v6 = vmul.f32 0.0, %v3579_v27  ;;  %v2349_v27 = vmul.f32 1.442695, %v2324_v45  ;;  %v2306_v45 = vrot.slane %v2274_v51, %v3946_v60 }
 0x828   : > { %v2647_v49 = vmul.f32 0.0, %v3581_v56  ;;  %v3583_v0 = vpop.eup %3582  ;;  %v2379_v56 = vrot.slane %v2365_v47, %v4062_v46 }
 0x829   : > { %v3585_v50 = vpop.eup %3584  ;;  %3596 = vpow2.f32 %v2349_v27 }
 0x82a   : > { %v3587_v37 = vpop.eup %3586  ;;  %v2381_v54 = vcombine.high %v2379_v56, %v2379_v56 }
 0x82b   : > { %v3589_v9 = vpop.eup %3588 }
 0x854   : > { %v2424_v26 = vpop.permute.xlu1 %2423  ;;  %v2420_v4 = vpop.permute.xlu0 %2419 }
 0x855   : > { %v2543_v38 = vmul.f32 %v2505_v63, %v2424_v26  ;;  %v2542_v40 = vmul.f32 %v2505_v63, %v2420_v4  ;;  %v2412_v63 = vcombine.high %v2402_v59, %v2402_v59  ;;  %v4494_v59 = vrot.slane %v2379_v56, %v4062_v46 }
 0x857   : > { %v4461_v1 = vadd.f32 %v2646_v6, %v2542_v40  ;;  %v4463_v31 = vadd.f32 %v2647_v49, %v2543_v38  ;;  %v2302_v6 = vrot.slane %v2272_v34, %v3946_v60  ;;  %v2351_v49 = vmul.f32 1.442695, %v2325_v33 }
 0x858   : > { %v2431_v58 = vpop.permute.xlu1 %2430  ;;  %v2435_v44 = vpop.permute.xlu0 %2434 }
 0x859   : > { %v2544_v12 = vmul.f32 %v2509_v32, %v2431_v58  ;;  %v2545_v43 = vmul.f32 %v2509_v32, %v2435_v44  ;;  %v2663_v15 = vmul.f32 %v3583_v0, %v4461_v1  ;;  %v2664_v48 = vmul.f32 %v3585_v50, %v4463_v31  ;;  %v3591_v58 = vpop.eup %3590 }
 0x85a   : > { %v2517_v44 = vrot.slane %v2412_v63, %v3946_v60  ;;  %v3593_v53 = vpop.eup %3592  ;;  %3598 = vpow2.f32 %v2351_v49  ;;  %v2328_v20 = vmul.f32 %v4438_v42, %v2302_v6 }
 0x85b   : > { %v2665_v39 = vadd.f32 %v2663_v15, %v2544_v12  ;;  %v2666_v52 = vadd.f32 %v2664_v48, %v2545_v43  ;;  %v2521_v15 = vrot.slane %v4494_v59, %v3946_v60  ;;  %3600 = vpow2.f32 %v2353_v11 }
 0x85c   : > { %v2442_v8 = vpop.permute.xlu1 %2441  ;;  %v2446_v21 = vpop.permute.xlu0 %2445  ;;  %v2357_v33 = vmul.f32 1.442695, %v2328_v20 }
 0x85d   : > { %v2546_v24 = vmul.f32 %v2513_v2, %v2442_v8  ;;  %v2547_v30 = vmul.f32 %v2513_v2, %v2446_v21  ;;  %v2680_v4 = vmul.f32 %v3587_v37, %v2665_v39  ;;  %v2681_v17 = vmul.f32 %v3589_v9, %v2666_v52 }
 0x85e   : > { %v4508_v37 = vrot.slane %v2381_v54, %v4062_v46 }
 0x85f   : > { %v2682_v3 = vadd.f32 %v2680_v4, %v2546_v24  ;;  %v2683_v40 = vadd.f32 %v2681_v17, %v2547_v30 }
 0x860   : > { %v2453_v62 = vpop.permute.xlu1 %2452  ;;  %v2457_v61 = vpop.permute.xlu0 %2456 }
 0x861   : > { %v2548_v22 = vmul.f32 %v2517_v44, %v2453_v62  ;;  %v2549_v8 = vmul.f32 %v2517_v44, %v2457_v61  ;;  %v2697_v0 = vmul.f32 %v3591_v58, %v2682_v3  ;;  %v2698_v32 = vmul.f32 %v3593_v53, %v2683_v40 }
 0x862   : > { %v2327_v62 = vmul.f32 %v4433_v36, %v2302_v6 }
 0x863   : > { %v2699_v35 = vadd.f32 %v2697_v0, %v2548_v22  ;;  %v2700_v10 = vadd.f32 %v2698_v32, %v2549_v8 }
 0x864   : > { %v4474_v23 = vpop.permute.xlu1 %2463  ;;  %v4476_v18 = vpop.permute.xlu0 %2467  ;;  %v2355_v30 = vmul.f32 1.442695, %v2327_v62 }
 0x865   : > { %v2550_v19 = vmul.f32 %v2521_v15, %v4474_v23  ;;  %v2551_v4 = vmul.f32 %v2521_v15, %v4476_v18  ;;  %v2525_v23 = vrot.slane %v4508_v37, %v3946_v60 }
 0x866   : > { %3602 = vpow2.f32 %v2355_v30 }
 0x867   : > { %3604 = vpow2.f32 %v2357_v33 }
 0x868   : > { %v4484_v14 = vpop.permute.xlu1 %2474  ;;  %v4486_v26 = vpop.permute.xlu0 %2478 }
 0x869   : > { %v2553_v0 = vmul.f32 %v2525_v23, %v4486_v26 }
 0x86c   : > { %v2564_v29 = vpop.permute.xlu1 %2563  ;;  %v2568_v38 = vpop.permute.xlu0 %2567 }
 0x86d   : > { %v2650_v12 = vmul.f32 %v4461_v1, %v2564_v29  ;;  %v2651_v43 = vmul.f32 %v4463_v31, %v2568_v38  ;;  %v3595_v31 = vpop.eup %3594  ;;  %v2329_v29 = vmul.f32 %v4433_v36, %v2306_v45  ;;  %v2330_v38 = vmul.f32 %v4438_v42, %v2306_v45 }
 0x86e   : > { %v3597_v13 = vpop.eup %3596  ;;  %v2714_v34 = vmul.f32 %v3595_v31, %v2699_v35  ;;  %v2411_v36 = vcombine.high %v4494_v59, %v4494_v59  ;;  %v3055_v59 = vmul.f32 -1.442695, %v4333_v16 }
 0x86f   : > { %v2652_v2 = vsel %vm778_vm6, %v2650_v12, 0.0  ;;  %v2653_v9 = vsel %vm778_vm6, %v2651_v43, 0.0  ;;  %v2715_v46 = vmul.f32 %v3597_v13, %v2700_v10  ;;  %v3599_v53 = vpop.eup %3598  ;;  %v2359_v42 = vmul.f32 1.442695, %v2329_v29 }
 0x870   : > { %v2575_v21 = vpop.permute.xlu1 %2574  ;;  %v2579_v28 = vpop.permute.xlu0 %2578  ;;  %v2654_v56 = vadd.f32 %v2653_v9, %v2652_v2  ;;  %v2716_v44 = vadd.f32 %v2714_v34, %v2550_v19  ;;  %v2413_v13 = vcombine.high %v4508_v37, %v4508_v37 }
 0x871   : > { %v2667_v50 = vmul.f32 %v2665_v39, %v2575_v21  ;;  %v2668_v7 = vmul.f32 %v2666_v52, %v2579_v28  ;;  %v2717_v18 = vadd.f32 %v2715_v46, %v2551_v4  ;;  %v3601_v22 = vpop.eup %3600  ;;  %v2361_v21 = vmul.f32 1.442695, %v2330_v38 }
 0x872   : > { %v2655_v6 = vrot.slane %v2654_v56, 4  ;;  %v2552_v28 = vmul.f32 %v2525_v23, %v4484_v14  ;;  %v2731_v43 = vmul.f32 %v3599_v53, %v2716_v44  ;;  %3606 = vpow2.f32 %v2359_v42  ;;  %v3603_v19 = vpop.eup %3602 }
 0x873   : > { %v2669_v41 = vsel %vm778_vm6, %v2667_v50, 0.0  ;;  %v2670_v39 = vsel %vm778_vm6, %v2668_v7, 0.0  ;;  %v2732_v15 = vmul.f32 %v3601_v22, %v2717_v18  ;;  %v2529_v14 = vrot.slane %v2411_v36, %v3946_v60 }
 0x874   : > { %v2586_v61 = vpop.permute.xlu1 %2585  ;;  %v2590_v48 = vpop.permute.xlu0 %2589  ;;  %v2671_v17 = vadd.f32 %v2670_v39, %v2669_v41  ;;  %v2656_v62 = vadd.f32 %v2655_v6, %v2654_v56  ;;  %3608 = vpow2.f32 %v2361_v21  ;;  %v2733_v31 = vadd.f32 %v2731_v43, %v2552_v28 }
 0x875   : > { %v2684_v1 = vmul.f32 %v2682_v3, %v2586_v61  ;;  %v2685_v52 = vmul.f32 %v2683_v40, %v2590_v48  ;;  %v2734_v45 = vadd.f32 %v2732_v15, %v2553_v0  ;;  %3610 = vpow2.f32 %v3055_v59 }
 0x876   : > { %v2672_v3 = vrot.slane %v2671_v17, 4  ;;  %v2657_v2 = vrot.slane %v2656_v62, 2  ;;  %v2748_v33 = vmul.f32 %v3603_v19, %v2733_v31  ;;  %v2533_v23 = vrot.slane %v2413_v13, %v3946_v60 }
 0x877   : > { %v2686_v47 = vsel %vm778_vm6, %v2684_v1, 0.0  ;;  %v2687_v24 = vsel %vm778_vm6, %v2685_v52, 0.0 }
 0x878   : > { %v2486_v27 = vpop.permute.xlu1 %2485  ;;  %v2490_v63 = vpop.permute.xlu0 %2489  ;;  %v2688_v57 = vadd.f32 %v2687_v24, %v2686_v47  ;;  %v2673_v7 = vadd.f32 %v2672_v3, %v2671_v17  ;;  %v2658_v29 = vadd.f32 %v2657_v2, %v2656_v62 }
 0x879   : > { %v2554_v24 = vmul.f32 %v2529_v14, %v2486_v27  ;;  %v2555_v30 = vmul.f32 %v2529_v14, %v2490_v63  ;;  %v3605_v17 = vpop.eup %3604 }
 0x87a   : > { %v2689_v8 = vrot.slane %v2688_v57, 4  ;;  %v2674_v41 = vrot.slane %v2673_v7, 2  ;;  %v2659_v42 = vrot.slane %v2658_v29, 1 }
 0x87c   : > { %v2597_v40 = vpop.permute.xlu1 %2596  ;;  %v2601_v58 = vpop.permute.xlu0 %2600  ;;  %v2675_v34 = vadd.f32 %v2674_v41, %v2673_v7  ;;  %v2660_v41 = vadd.f32 %v2659_v42, %v2658_v29 }
 0x87d   : > { %v2701_v49 = vmul.f32 %v2699_v35, %v2597_v40  ;;  %v2702_v11 = vmul.f32 %v2700_v10, %v2601_v58  ;;  %v2690_v35 = vadd.f32 %v2689_v8, %v2688_v57  ;;  %v2749_v57 = vmul.f32 %v3605_v17, %v2734_v45  ;;  %v3607_v53 = vpop.eup %3606 }
 0x87e   : > { %v2676_v6 = vrot.slane %v2675_v34, 1  ;;  %v3609_v36 = vpop.eup %3608 }
 0x87f   : > { %v2703_v32 = vsel %vm778_vm6, %v2701_v49, 0.0  ;;  %v2704_v50 = vsel %vm778_vm6, %v2702_v11, 0.0  ;;  %v2691_v47 = vrot.slane %v2690_v35, 2  ;;  %v3611_v59 = vpop.eup %3610 }
 0x880   : > { %v2705_v51 = vadd.f32 %v2704_v50, %v2703_v32  ;;  %v2608_v54 = vpop.permute.xlu1 %2607  ;;  %v2612_v12 = vpop.permute.xlu0 %2611  ;;  %v2677_v15 = vadd.f32 %v2676_v6, %v2675_v34  ;;  %v2661_v34 = vsel %vm1467_vm10, %v2660_v41, 0.0 }
 0x881   : > { %v2718_v61 = vmul.f32 %v2716_v44, %v2608_v54  ;;  %v2719_v48 = vmul.f32 %v2717_v18, %v2612_v12  ;;  %v2692_v58 = vadd.f32 %v2691_v47, %v2690_v35  ;;  %v2750_v44 = vadd.f32 %v2748_v33, %v2554_v24 }
 0x882   : > { %v2706_v10 = vrot.slane %v2705_v51, 4  ;;  %v2751_v18 = vadd.f32 %v2749_v57, %v2555_v30  ;;  %v2678_v13 = vsel %vm1487_vm9, %v2677_v15, 0.0 }
 0x883   : > { %v2720_v26 = vsel %vm778_vm6, %v2718_v61, 0.0  ;;  %v2721_v20 = vsel %vm778_vm6, %v2719_v48, 0.0  ;;  %v2693_v32 = vrot.slane %v2692_v58, 1  ;;  %v2765_v7 = vmul.f32 %v3607_v53, %v2750_v44 }
 0x884   : > { %v2722_v39 = vadd.f32 %v2721_v20, %v2720_v26  ;;  %v2497_v1 = vpop.permute.xlu1 %2496  ;;  %v2501_v52 = vpop.permute.xlu0 %2500  ;;  %v2707_v9 = vadd.f32 %v2706_v10, %v2705_v51  ;;  %v2766_v51 = vmul.f32 %v3609_v36, %v2751_v18 }
 0x885   : > { %v2556_v49 = vmul.f32 %v2533_v23, %v2497_v1  ;;  %v2557_v11 = vmul.f32 %v2533_v23, %v2501_v52 }
 0x886   : > { %v2723_v4 = vrot.slane %v2722_v39, 4  ;;  %v2708_v38 = vrot.slane %v2707_v9, 2 }
 0x887   : > { %v2767_v61 = vadd.f32 %v2765_v7, %v2556_v49  ;;  %v2768_v48 = vadd.f32 %v2766_v51, %v2557_v11 }
 0x888   : > { %v2724_v46 = vadd.f32 %v2723_v4, %v2722_v39  ;;  %v2619_v56 = vpop.permute.xlu1 %2618  ;;  %v2623_v40 = vpop.permute.xlu0 %2622  ;;  %v2709_v21 = vadd.f32 %v2708_v38, %v2707_v9  ;;  %v2694_v39 = vadd.f32 %v2693_v32, %v2692_v58  ;;  %v2795_v9 = vadd.f32 1.0, %v3611_v59 }
 0x889   : > { %v2735_v3 = vmul.f32 %v2733_v31, %v2619_v56  ;;  %v2736_v37 = vmul.f32 %v2734_v45, %v2623_v40  ;;  %v2679_v38 = vadd.f32 %v2678_v13, %v2661_v34 }
 0x88a   : > { %v2725_v27 = vrot.slane %v2724_v46, 2  ;;  %v2710_v35 = vrot.slane %v2709_v21, 1  ;;  %3612 = vrcp.f32 %v2795_v9 }
 0x88b   : > { %v2737_v63 = vsel %vm778_vm6, %v2735_v3, 0.0  ;;  %v2738_v22 = vsel %vm778_vm6, %v2736_v37, 0.0 }
 0x88c   : > { %v2630_v8 = vpop.permute.xlu1 %2629  ;;  %v2739_v60 = vadd.f32 %v2738_v22, %v2737_v63  ;;  %v2634_v0 = vpop.permute.xlu0 %2633  ;;  %v2726_v54 = vadd.f32 %v2725_v27, %v2724_v46  ;;  %v2711_v24 = vadd.f32 %v2710_v35, %v2709_v21  ;;  %v2695_v46 = vsel %vm1507_vm11, %v2694_v39, 0.0  ;;  %v3054_v21 = vld [vmem:[%s4630_s12 + $0x1] ss:$0 sm:$0xff] }
 0x88d   : > { %v2752_v28 = vmul.f32 %v2750_v44, %v2630_v8  ;;  %v2753_v50 = vmul.f32 %v2751_v18, %v2634_v0  ;;  %v2696_v37 = vadd.f32 %v2695_v46, %v2679_v38 }
 0x88e   : > { %v2740_v12 = vrot.slane %v2739_v60, 4  ;;  %v2727_v31 = vrot.slane %v2726_v54, 1  ;;  %v2712_v23 = vsel %vm1527_vm12, %v2711_v24, 0.0 }
 0x88f   : > { %v2754_v43 = vsel %vm778_vm6, %v2752_v28, 0.0  ;;  %v2755_v62 = vsel %vm778_vm6, %v2753_v50, 0.0  ;;  %v2713_v63 = vadd.f32 %v2712_v23, %v2696_v37  ;;  %v2790_v50 = vmul.f32 %v3054_v21, %v4348_v25 }
 0x890   : > { %v2741_v10 = vadd.f32 %v2740_v12, %v2739_v60  ;;  %v2756_v14 = vadd.f32 %v2755_v62, %v2754_v43  ;;  %v2641_v26 = vpop.permute.xlu1 %2640  ;;  %v2645_v20 = vpop.permute.xlu0 %2644  ;;  %v2728_v56 = vadd.f32 %v2727_v31, %v2726_v54 }
 0x891   : > { %v2769_v1 = vmul.f32 %v2767_v61, %v2641_v26  ;;  %v2770_v52 = vmul.f32 %v2768_v48, %v2645_v20  ;;  %v3066_v20 = vld [vmem:[%s4633_s15] ss:$0 sm:$0xff] }
 0x892   : > { %v2742_v45 = vrot.slane %v2741_v10, 2  ;;  %v2757_v2 = vrot.slane %v2756_v14, 4  ;;  %v2729_v44 = vsel %vm1547_vm13, %v2728_v56, 0.0 }
 0x893   : > { %v2771_v19 = vsel %vm778_vm6, %v2769_v1, 0.0  ;;  %v2772_v47 = vsel %vm778_vm6, %v2770_v52, 0.0  ;;  %v2730_v11 = vadd.f32 %v2729_v44, %v2713_v63 }
 0x894   : > { %v2743_v30 = vadd.f32 %v2742_v45, %v2741_v10  ;;  %v2758_v4 = vadd.f32 %v2757_v2, %v2756_v14  ;;  %v2773_v17 = vadd.f32 %v2772_v47, %v2771_v19  ;;  %v3613_v60 = vpop.eup %3612  ;;  %v3065_v14 = vld [vmem:[%s4632_s14] ss:$0 sm:$0xff] }
 0x895   : > { %v2798_v7 = vmul.f32 %v3613_v60, %v4333_v16 }
 0x896   : > { %v2744_v33 = vrot.slane %v2743_v30, 1  ;;  %v2759_v57 = vrot.slane %v2758_v4, 2  ;;  %v2774_v29 = vrot.slane %v2773_v17, 4 }
 0x898   : > { %v2745_v3 = vadd.f32 %v2744_v33, %v2743_v30  ;;  %v2760_v40 = vadd.f32 %v2759_v57, %v2758_v4  ;;  %v2775_v58 = vadd.f32 %v2774_v29, %v2773_v17 }
 0x89a   : > { %v2761_v18 = vrot.slane %v2760_v40, 1  ;;  %v2776_v27 = vrot.slane %v2775_v58, 2  ;;  %v2746_v53 = vsel %vm1567_vm14, %v2745_v3, 0.0 }
 0x89b   : > { %v2747_v36 = vadd.f32 %v2746_v53, %v2730_v11 }
 0x89c   : > { %v2762_v6 = vadd.f32 %v2761_v18, %v2760_v40  ;;  %v2777_v49 = vadd.f32 %v2776_v27, %v2775_v58 }
 0x89e   : > { %v2763_v22 = vsel %vm1587_vm15, %v2762_v6, 0.0  ;;  %v2778_v8 = vrot.slane %v2777_v49, 1 }
 0x89f   : > { %v2764_v28 = vadd.f32 %v2763_v22, %v2747_v36 }
 0x8a0   : > { %v2779_v42 = vadd.f32 %v2778_v8, %v2777_v49 }
 0x8a2   : > { %v2780_v0 = vsel %vm1607_vm7, %v2779_v42, 0.0 }
 0x8a3   : > { %v2781_v32 = vadd.f32 %v2780_v0, %v2764_v28 }
 0x8a5   : > { %v2791_v51 = vadd.f32 %v2790_v50, %v2781_v32 }
 0x8a7   : > { %v2799_v54 = vmul.f32 %v2798_v7, %v2791_v51 }
 0x8a9   : > { %3357 = vmatmul.mubr.msk.f32.vlgmr.msra.gmra.mrb[10].mxu1 %vm778_vm6, %v2799_v54 }
 0x97c   : > { %v2878_v12 = vpop.f32.mrb[10].mxu1 }
 0x97d   : > { %v2879_v43 = vadd.f32 %v2878_v12, %v4224_v5  ;;  %v3358_v15 = vpop.f32.mrb[11].mxu1 }
 0x97f   : > { %v2884_v62 = vsel %vm522_vm0, %v2879_v43, 0.0 }
 0x980   : > { %2885 = vadd.xlane.f32.xlu1 %v2884_v62 }
 0xa0d   : > { %v2886_v61 = vpop.xlane.xlu1 %2885 }
 0xa0e   : > { %v2887_v55 = vmul.f32 0.03125, %v2886_v61 }
 0xa10   : > { %v2888_v48 = vsub.f32 %v2879_v43, %v2887_v55 }
 0xa12   : > { %v2889_v59 = vmul.f32 %v2888_v48, %v2888_v48 }
 0xa14   : > { %v2890_v25 = vsel %vm522_vm0, %v2889_v59, 0.0 }
 0xa15   : > { %2891 = vadd.xlane.f32.xlu0 %v2890_v25 }
 0xaa2   : > { %v2892_v16 = vpop.xlane.xlu0 %2891 }
 0xaa3   : > { %v2893_v35 = vmul.f32 0.03125, %v2892_v16 }
 0xaa5   : > { %v2894_v10 = vadd.f32 1e-05, %v2893_v35 }
 0xaa7   : > { %3614 = vrsqrt.f32 %v2894_v10 }
 0xab1   : > { %v3615_v5 = vpop.eup %3614 }
 0xab2   : > { %v2896_v26 = vmul.f32 %v3615_v5, %v2888_v48 }
 0xab4   : > { %v2903_v41 = vmul.f32 %v3065_v14, %v2896_v26 }
 0xab6   : > { %v2910_v39 = vadd.f32 %v3066_v20, %v2903_v41 }
 0xab8   : > { %2911 = vst.msk [vmem:[%s512_s28] sm:$0xff] %vm522_vm0, %v2910_v39 }
 0xab9   : > { %3630 = shalt.err (!%p3627_p3)
}
 0xaba   : > { %s3631_s20 = scalar_lea.hbm %s4575_s1, 128  ;;  %s3635_s28 = scalar_lea.hbm %s4634_s16, 256 }
 0xabb   : > { %p3632_p4 = scmp.ne.s32.totalorder %s4575_s1, %s3631_s20  ;;  %p3636_p9 = scmp.lt.u32.totalorder %s4575_s1, %s4634_s16 }
 0xabc   : > { %p3637_p10 = scmp.lt.u32.totalorder %s3635_s28, %s3631_s20  ;;  %p3639_p12 = scmp.lt.u32.totalorder %s3631_s20, %s4575_s1 }
 0xabd   : > { %p3633_p7 = pnand %p3632_p4, %p3809_p5 }
 0xabe   : > { %p3638_p11 = por %p3637_p10, %p3636_p9 }
 0xabf   : > { %p3634_p8 = pneg %p3633_p7 }
 0xac0   : > { %p3640_p13 = por %p3639_p12, %p3638_p11 }
 0xac2   : > { %p3641_p0 = pnand %p3640_p13, %p3634_p8 }
 0xac4   : > { %3644 = shalt.err (!%p3641_p0)
}
 0xac5   : > { %3479 = dma.vmem_to_hbm [thread:$0]  (%p3809_p5), %s4577_s30, 128, %s4575_s1, %s2913_s26  }
 0xac6 PF: > { %s4651_s21 = sld [smem:[#allocation5_spill]]  ;;  %p3485_p1 = scmp.ge.s32.totalorder %s3679_s24, 2 }
 0xac8   : > { %p3482_p2 = pnand %p3485_p1, %p3813_p6 }
 0xacc   : > { %s2938_s19 = sand.u32 1, %s4651_s21  }
 0xacd   : > { %s2939_s27 = scalar_lea.sflag [#allocation3], %s2938_s19 }
 0xace   : > { %3662 = dma.done.wait (!%p3482_p2), %s2939_s27, 128  }
 0xacf   : > { %3664 = vsyncadd (!%p3482_p2), %s2939_s27, 4294967168  ;;  %s4653_s24 = sld [smem:[#allocation7_spill]]  ;;  %s4654_s20 = sld [smem:[#allocation6_spill]] }
 0xad0   : > { %s4655_s23 = sld [smem:[#allocation8_spill]]  ;;  %s4656_s21 = smov %s3671_s22 }
 0xad5   : > { %p26_p3 = scmp.ge.s32.totalorder %s4653_s24, 4   ;;  %s4657_s22 = smov %s4654_s20 }
 0xad7   :  { %28 = sbr.rel (!%p26_p3) target bundleno = 6 (0x6), region = 132 }
 0xade   :  { %2944 = vsyncpa [#allocation3], 1 }
 0xadf   :  { %2946 = vsyncpa [#allocation3 + $0x1], 1 }

</bundles_post_ra>
